<compile_context>
chip_gen: v6e
topology: v6e:2x2x1
jax: 0.10.0
libtpu: 0.0.40
codegen_flags: <defaults>
</compile_context>

<pallas_src>
import jax
import jax.numpy as jnp
from jax.experimental import pallas as pl
from jax.experimental.pallas import tpu as pltpu

# ---------------------------------------------------------------------------
# Problem sizes (fixed by the module)
# ---------------------------------------------------------------------------
C, H_IMG, W_IMG = 3, 28, 28
IMG_FLAT = C * H_IMG * W_IMG          # 2352
Z = 32                                # latent size
IN_DIM = IMG_FLAT + Z                 # 2384
OUT_DIM = IMG_FLAT                    # 2352
HIDDEN = 256                          # assumed MLP width (see TODO above)

B_TILE_MAX = 256                      # batch tile for the streaming grid path


# ---------------------------------------------------------------------------
# Pallas kernel: 4-layer MLP + sigmoid.
# Activations: f32 in VMEM, cast to bf16 right before each MXU dot.
# Weights: int8 (resident), widened to bf16 in VMEM; per-channel f32 scale
# applied to the f32 dot result.
# ---------------------------------------------------------------------------
def _generator_mlp_kernel(src_ref, smp_ref,
                          w1a_ref, s1a_ref, w1b_ref, s1b_ref, b1_ref,
                          w2_ref, s2_ref, b2_ref,
                          w3_ref, s3_ref, b3_ref,
                          w4_ref, s4_ref, b4_ref,
                          o_ref):
    f32 = jnp.float32
    bf16 = jnp.bfloat16

    src = src_ref[...].astype(bf16)                   # (Bt, 2352)
    smp = smp_ref[...].astype(bf16)                   # (Bt, Z)

    # Layer 1: concat(source, sample) @ W1 == source @ W1a + sample @ W1b
    h = (jnp.dot(src, w1a_ref[...].astype(bf16), preferred_element_type=f32)
         * s1a_ref[...]
         + jnp.dot(smp, w1b_ref[...].astype(bf16), preferred_element_type=f32)
         * s1b_ref[...]
         + b1_ref[...])
    h = jnp.maximum(h, 0.0).astype(bf16)

    h = (jnp.dot(h, w2_ref[...].astype(bf16), preferred_element_type=f32)
         * s2_ref[...] + b2_ref[...])
    h = jnp.maximum(h, 0.0).astype(bf16)

    h = (jnp.dot(h, w3_ref[...].astype(bf16), preferred_element_type=f32)
         * s3_ref[...] + b3_ref[...])
    h = jnp.maximum(h, 0.0).astype(bf16)

    y = (jnp.dot(h, w4_ref[...].astype(bf16), preferred_element_type=f32)
         * s4_ref[...] + b4_ref[...])

    # sigmoid(y) = 1 / (1 + exp(-y)); exp + approx reciprocal both go to EUP.
    o_ref[...] = pl.reciprocal(1.0 + jnp.exp(-y), approx=True)


# ---------------------------------------------------------------------------
# Parameter initialization (deterministic, PyTorch nn.Linear-style uniform)
# ---------------------------------------------------------------------------
def init_params(key):
    dims = [IN_DIM, HIDDEN, HIDDEN, HIDDEN, OUT_DIM]
    params = []
    for i in range(4):
        fan_in, fan_out = dims[i], dims[i + 1]
        key, kw, kb = jax.random.split(key, 3)
        bound = 1.0 / jnp.sqrt(fan_in)
        w = jax.random.uniform(kw, (fan_in, fan_out), jnp.float32, -bound, bound)
        b = jax.random.uniform(kb, (fan_out,), jnp.float32, -bound, bound)
        params.append((w, b))
    return params


def _quantize_per_channel(w):
    """Symmetric per-output-channel int8 quantization. Returns (int8 w, f32 scale)."""
    absmax = jnp.max(jnp.abs(w), axis=0, keepdims=True)          # (1, out)
    scale = jnp.maximum(absmax, 1e-8) / 127.0
    w_q = jnp.clip(jnp.round(w / scale), -127.0, 127.0).astype(jnp.int8)
    return w_q, scale.astype(jnp.float32)


def prepare_params(params):
    """int8-quantize weights (4x fewer HBM bytes than f32), split W1 for the
    implicit concat, and reshape biases/scales to (1, N) f32 for broadcast."""
    (w1, b1), (w2, b2), (w3, b3), (w4, b4) = params
    w1a_q, s1a = _quantize_per_channel(w1[:IMG_FLAT])   # multiplies `source`
    w1b_q, s1b = _quantize_per_channel(w1[IMG_FLAT:])   # multiplies `sample`
    w2_q, s2 = _quantize_per_channel(w2)
    w3_q, s3 = _quantize_per_channel(w3)
    w4_q, s4 = _quantize_per_channel(w4)
    bias = lambda v: v.reshape(1, -1).astype(jnp.float32)
    return (w1a_q, s1a, w1b_q, s1b, bias(b1),
            w2_q, s2, bias(b2),
            w3_q, s3, bias(b3),
            w4_q, s4, bias(b4))


# ---------------------------------------------------------------------------
# Generator.forward equivalent
# ---------------------------------------------------------------------------
@jax.jit
def generator_forward(sample, condition, *prepared):
    b = condition.shape[0]
    # condition.view(B, -1): NCHW flattened C-contiguously, same as torch.view.
    source = condition.reshape(b, -1)                 # (B, 2352)

    # Batch tiling: a single block for small batches; for large batches stream
    # B_TILE_MAX-row activation tiles while the weights stay VMEM-resident.
    if b <= B_TILE_MAX:
        b_tile, b_pad = b, b
    else:
        b_tile = B_TILE_MAX
        b_pad = -(-b // b_tile) * b_tile
    if b_pad != b:
        pad = b_pad - b
        source = jnp.pad(source, ((0, pad), (0, 0)))
        sample = jnp.pad(sample, ((0, pad), (0, 0)))
    num_tiles = b_pad // b_tile

    def act_spec(width):
        return pl.BlockSpec((b_tile, width), lambda i: (i, 0))

    def resident_spec(arr):
        # Constant index_map -> block is not re-fetched across grid steps.
        return pl.BlockSpec(arr.shape, lambda i: (0, 0))

    out = pl.pallas_call(
        _generator_mlp_kernel,
        out_shape=jax.ShapeDtypeStruct((b_pad, OUT_DIM), jnp.float32),
        grid=(num_tiles,),
        in_specs=[act_spec(IMG_FLAT), act_spec(Z)]
                 + [resident_spec(p) for p in prepared],
        out_specs=act_spec(OUT_DIM),
        compiler_params=pltpu.CompilerParams(
            dimension_semantics=("parallel",),      # both TCs on v7x megacore
            vmem_limit_bytes=32 << 20),             # fits v7x scoped VMEM
    )(source, sample, *prepared)

    result = out[:b].reshape(b, C, H_IMG, W_IMG)
    return condition, result


# ---------------------------------------------------------------------------
# Pure-JAX references
#   * quantized reference: identical int8 weights / bf16 activations, f32
#     HIGHEST dots -> apples-to-apples check of the kernel math.
#   * f32 reference: original float weights -> loose sanity check that the
#     quantization stays faithful to the module.
# ---------------------------------------------------------------------------
def _reference_forward_quantized(sample, condition, prepared):
    (w1a, s1a, w1b, s1b, b1, w2, s2, b2, w3, s3, b3, w4, s4, b4) = prepared
    b = condition.shape[0]
    f32, bf16 = jnp.float32, jnp.bfloat16
    hp = jax.lax.Precision.HIGHEST
    src = condition.reshape(b, -1).astype(bf16).astype(f32)
    smp = sample.astype(bf16).astype(f32)
    h = (jnp.dot(src, w1a.astype(f32), precision=hp) * s1a
         + jnp.dot(smp, w1b.astype(f32), precision=hp) * s1b + b1)
    h = jnp.maximum(h, 0.0).astype(bf16).astype(f32)
    h = jnp.dot(h, w2.astype(f32), precision=hp) * s2 + b2
    h = jnp.maximum(h, 0.0).astype(bf16).astype(f32)
    h = jnp.dot(h, w3.astype(f32), precision=hp) * s3 + b3
    h = jnp.maximum(h, 0.0).astype(bf16).astype(f32)
    y = jnp.dot(h, w4.astype(f32), precision=hp) * s4 + b4
    return jax.nn.sigmoid(y).reshape(b, C, H_IMG, W_IMG)


def _reference_forward_f32(sample, condition, params):
    b = condition.shape[0]
    x = jnp.concatenate([condition.reshape(b, -1), sample], axis=1)
    for i, (w, bias) in enumerate(params):
        x = jnp.dot(x, w, precision=jax.lax.Precision.HIGHEST) + bias
        if i < 3:
            x = jnp.maximum(x, 0.0)
    return jax.nn.sigmoid(x).reshape(b, C, H_IMG, W_IMG)


if __name__ == "__main__":
    key = jax.random.PRNGKey(0)
    k_param, k_cond, k_samp = jax.random.split(key, 3)

    batch = 2
    params = init_params(k_param)
    prepared = prepare_params(params)

    condition = jax.random.normal(k_cond, (batch, C, H_IMG, W_IMG), jnp.float32)
    sample = jax.random.normal(k_samp, (batch, Z), jnp.float32)   # Generator.sample

    cond_out, result = generator_forward(sample, condition, *prepared)
    jax.block_until_ready(result)
    assert result.shape == (batch, C, H_IMG, W_IMG)
    assert jnp.array_equal(cond_out, condition)

    # Tight check against the bit-matched quantized reference (verifies the
    # kernel math; only MXU accumulation order and the approx reciprocal differ).
    ref_q = _reference_forward_quantized(sample, condition, prepared)
    assert jnp.allclose(result, ref_q, atol=1e-2, rtol=1e-2), (
        float(jnp.max(jnp.abs(result - ref_q))))

    # Loose sanity check against the full-f32 module semantics (int8 weight
    # quantization error stays far below this bound at these sizes).
    ref_f32 = _reference_forward_f32(sample, condition, params)
    assert jnp.allclose(result, ref_f32, atol=1e-1), (
        float(jnp.max(jnp.abs(result - ref_f32))))

    print("KERNEL_OK")
</pallas_src>

<mosaic_0001>
module attributes {stable_mosaic.version = 11 : i64} {
  func.func @_generator_mlp_kernel(%arg0: i32, %arg1: memref<2x2352xf32, #tpu.memory_space<vmem>>, %arg2: memref<2x32xf32, #tpu.memory_space<vmem>>, %arg3: memref<2352x256xi8, #tpu.memory_space<vmem>>, %arg4: memref<1x256xf32, #tpu.memory_space<vmem>>, %arg5: memref<32x256xi8, #tpu.memory_space<vmem>>, %arg6: memref<1x256xf32, #tpu.memory_space<vmem>>, %arg7: memref<1x256xf32, #tpu.memory_space<vmem>>, %arg8: memref<256x256xi8, #tpu.memory_space<vmem>>, %arg9: memref<1x256xf32, #tpu.memory_space<vmem>>, %arg10: memref<1x256xf32, #tpu.memory_space<vmem>>, %arg11: memref<256x256xi8, #tpu.memory_space<vmem>>, %arg12: memref<1x256xf32, #tpu.memory_space<vmem>>, %arg13: memref<1x256xf32, #tpu.memory_space<vmem>>, %arg14: memref<256x2352xi8, #tpu.memory_space<vmem>>, %arg15: memref<1x2352xf32, #tpu.memory_space<vmem>>, %arg16: memref<1x2352xf32, #tpu.memory_space<vmem>>, %arg17: memref<2x2352xf32, #tpu.memory_space<vmem>>) attributes {dimension_semantics = [#tpu.dimension_semantics<parallel>], iteration_bounds = array<i64: 1>, scalar_prefetch = 0 : i64, scratch_operands = 0 : i64, tpu.core_type = #tpu.core_type<tc>, window_params = [{transform_indices = @transform_0, window_bounds = array<i64: 2, 2352>}, {transform_indices = @transform_1, window_bounds = array<i64: 2, 32>}, {pipeline_mode = #tpu.pipeline_mode<synchronous>, transform_indices = @transform_2, window_bounds = array<i64: 2352, 256>}, {pipeline_mode = #tpu.pipeline_mode<synchronous>, transform_indices = @transform_3, window_bounds = array<i64: 1, 256>}, {pipeline_mode = #tpu.pipeline_mode<synchronous>, transform_indices = @transform_4, window_bounds = array<i64: 32, 256>}, {pipeline_mode = #tpu.pipeline_mode<synchronous>, transform_indices = @transform_5, window_bounds = array<i64: 1, 256>}, {pipeline_mode = #tpu.pipeline_mode<synchronous>, transform_indices = @transform_6, window_bounds = array<i64: 1, 256>}, {pipeline_mode = #tpu.pipeline_mode<synchronous>, transform_indices = @transform_7, window_bounds = array<i64: 256, 256>}, {pipeline_mode = #tpu.pipeline_mode<synchronous>, transform_indices = @transform_8, window_bounds = array<i64: 1, 256>}, {pipeline_mode = #tpu.pipeline_mode<synchronous>, transform_indices = @transform_9, window_bounds = array<i64: 1, 256>}, {pipeline_mode = #tpu.pipeline_mode<synchronous>, transform_indices = @transform_10, window_bounds = array<i64: 256, 256>}, {pipeline_mode = #tpu.pipeline_mode<synchronous>, transform_indices = @transform_11, window_bounds = array<i64: 1, 256>}, {pipeline_mode = #tpu.pipeline_mode<synchronous>, transform_indices = @transform_12, window_bounds = array<i64: 1, 256>}, {pipeline_mode = #tpu.pipeline_mode<synchronous>, transform_indices = @transform_13, window_bounds = array<i64: 256, 2352>}, {pipeline_mode = #tpu.pipeline_mode<synchronous>, transform_indices = @transform_14, window_bounds = array<i64: 1, 2352>}, {pipeline_mode = #tpu.pipeline_mode<synchronous>, transform_indices = @transform_15, window_bounds = array<i64: 1, 2352>}, {transform_indices = @transform_16, window_bounds = array<i64: 2, 2352>}]} {
    %c0 = arith.constant 0 : index
    %c0_0 = arith.constant 0 : index
    %0 = vector.load %arg1[%c0, %c0_0] : memref<2x2352xf32, #tpu.memory_space<vmem>>, vector<2x2352xf32>
    %1 = arith.truncf %0 : vector<2x2352xf32> to vector<2x2352xbf16>
    %c0_1 = arith.constant 0 : index
    %c0_2 = arith.constant 0 : index
    %2 = vector.load %arg2[%c0_1, %c0_2] : memref<2x32xf32, #tpu.memory_space<vmem>>, vector<2x32xf32>
    %3 = arith.truncf %2 : vector<2x32xf32> to vector<2x32xbf16>
    %c0_3 = arith.constant 0 : index
    %c0_4 = arith.constant 0 : index
    %4 = vector.load %arg3[%c0_3, %c0_4] : memref<2352x256xi8, #tpu.memory_space<vmem>>, vector<2352x256xi8>
    %5 = arith.sitofp %4 : vector<2352x256xi8> to vector<2352x256xbf16>
    %cst = arith.constant dense<0.000000e+00> : vector<2x256xf32>
    %6 = tpu.matmul %1, %5, %cst {dimension_numbers = #tpu.dot_dimension_numbers<[1], [0], [0], [1], [0, 0, 1, 1], [], []>} : vector<2x2352xbf16>, vector<2352x256xbf16>, vector<2x256xf32> -> vector<2x256xf32>
    %c0_5 = arith.constant 0 : index
    %c0_6 = arith.constant 0 : index
    %7 = vector.load %arg4[%c0_5, %c0_6] : memref<1x256xf32, #tpu.memory_space<vmem>>, vector<1x256xf32>
    %8 = vector.broadcast %7 : vector<1x256xf32> to vector<2x256xf32>
    %9 = arith.mulf %6, %8 : vector<2x256xf32>
    %c0_7 = arith.constant 0 : index
    %c0_8 = arith.constant 0 : index
    %10 = vector.load %arg5[%c0_7, %c0_8] : memref<32x256xi8, #tpu.memory_space<vmem>>, vector<32x256xi8>
    %11 = arith.sitofp %10 : vector<32x256xi8> to vector<32x256xbf16>
    %cst_9 = arith.constant dense<0.000000e+00> : vector<2x256xf32>
    %12 = tpu.matmul %3, %11, %cst_9 {dimension_numbers = #tpu.dot_dimension_numbers<[1], [0], [0], [1], [0, 0, 1, 1], [], []>} : vector<2x32xbf16>, vector<32x256xbf16>, vector<2x256xf32> -> vector<2x256xf32>
    %c0_10 = arith.constant 0 : index
    %c0_11 = arith.constant 0 : index
    %13 = vector.load %arg6[%c0_10, %c0_11] : memref<1x256xf32, #tpu.memory_space<vmem>>, vector<1x256xf32>
    %14 = vector.broadcast %13 : vector<1x256xf32> to vector<2x256xf32>
    %15 = arith.mulf %12, %14 : vector<2x256xf32>
    %16 = arith.addf %9, %15 : vector<2x256xf32>
    %c0_12 = arith.constant 0 : index
    %c0_13 = arith.constant 0 : index
    %17 = vector.load %arg7[%c0_12, %c0_13] : memref<1x256xf32, #tpu.memory_space<vmem>>, vector<1x256xf32>
    %18 = vector.broadcast %17 : vector<1x256xf32> to vector<2x256xf32>
    %19 = arith.addf %16, %18 : vector<2x256xf32>
    %cst_14 = arith.constant 0.000000e+00 : f32
    %20 = vector.broadcast %cst_14 : f32 to vector<2x256xf32>
    %21 = arith.maximumf %19, %20 : vector<2x256xf32>
    %22 = arith.truncf %21 : vector<2x256xf32> to vector<2x256xbf16>
    %c0_15 = arith.constant 0 : index
    %c0_16 = arith.constant 0 : index
    %23 = vector.load %arg8[%c0_15, %c0_16] : memref<256x256xi8, #tpu.memory_space<vmem>>, vector<256x256xi8>
    %24 = arith.sitofp %23 : vector<256x256xi8> to vector<256x256xbf16>
    %cst_17 = arith.constant dense<0.000000e+00> : vector<2x256xf32>
    %25 = tpu.matmul %22, %24, %cst_17 {dimension_numbers = #tpu.dot_dimension_numbers<[1], [0], [0], [1], [0, 0, 1, 1], [], []>} : vector<2x256xbf16>, vector<256x256xbf16>, vector<2x256xf32> -> vector<2x256xf32>
    %c0_18 = arith.constant 0 : index
    %c0_19 = arith.constant 0 : index
    %26 = vector.load %arg9[%c0_18, %c0_19] : memref<1x256xf32, #tpu.memory_space<vmem>>, vector<1x256xf32>
    %27 = vector.broadcast %26 : vector<1x256xf32> to vector<2x256xf32>
    %28 = arith.mulf %25, %27 : vector<2x256xf32>
    %c0_20 = arith.constant 0 : index
    %c0_21 = arith.constant 0 : index
    %29 = vector.load %arg10[%c0_20, %c0_21] : memref<1x256xf32, #tpu.memory_space<vmem>>, vector<1x256xf32>
    %30 = vector.broadcast %29 : vector<1x256xf32> to vector<2x256xf32>
    %31 = arith.addf %28, %30 : vector<2x256xf32>
    %cst_22 = arith.constant 0.000000e+00 : f32
    %32 = vector.broadcast %cst_22 : f32 to vector<2x256xf32>
    %33 = arith.maximumf %31, %32 : vector<2x256xf32>
    %34 = arith.truncf %33 : vector<2x256xf32> to vector<2x256xbf16>
    %c0_23 = arith.constant 0 : index
    %c0_24 = arith.constant 0 : index
    %35 = vector.load %arg11[%c0_23, %c0_24] : memref<256x256xi8, #tpu.memory_space<vmem>>, vector<256x256xi8>
    %36 = arith.sitofp %35 : vector<256x256xi8> to vector<256x256xbf16>
    %cst_25 = arith.constant dense<0.000000e+00> : vector<2x256xf32>
    %37 = tpu.matmul %34, %36, %cst_25 {dimension_numbers = #tpu.dot_dimension_numbers<[1], [0], [0], [1], [0, 0, 1, 1], [], []>} : vector<2x256xbf16>, vector<256x256xbf16>, vector<2x256xf32> -> vector<2x256xf32>
    %c0_26 = arith.constant 0 : index
    %c0_27 = arith.constant 0 : index
    %38 = vector.load %arg12[%c0_26, %c0_27] : memref<1x256xf32, #tpu.memory_space<vmem>>, vector<1x256xf32>
    %39 = vector.broadcast %38 : vector<1x256xf32> to vector<2x256xf32>
    %40 = arith.mulf %37, %39 : vector<2x256xf32>
    %c0_28 = arith.constant 0 : index
    %c0_29 = arith.constant 0 : index
    %41 = vector.load %arg13[%c0_28, %c0_29] : memref<1x256xf32, #tpu.memory_space<vmem>>, vector<1x256xf32>
    %42 = vector.broadcast %41 : vector<1x256xf32> to vector<2x256xf32>
    %43 = arith.addf %40, %42 : vector<2x256xf32>
    %cst_30 = arith.constant 0.000000e+00 : f32
    %44 = vector.broadcast %cst_30 : f32 to vector<2x256xf32>
    %45 = arith.maximumf %43, %44 : vector<2x256xf32>
    %46 = arith.truncf %45 : vector<2x256xf32> to vector<2x256xbf16>
    %c0_31 = arith.constant 0 : index
    %c0_32 = arith.constant 0 : index
    %47 = vector.load %arg14[%c0_31, %c0_32] : memref<256x2352xi8, #tpu.memory_space<vmem>>, vector<256x2352xi8>
    %48 = arith.sitofp %47 : vector<256x2352xi8> to vector<256x2352xbf16>
    %cst_33 = arith.constant dense<0.000000e+00> : vector<2x2352xf32>
    %49 = tpu.matmul %46, %48, %cst_33 {dimension_numbers = #tpu.dot_dimension_numbers<[1], [0], [0], [1], [0, 0, 1, 1], [], []>} : vector<2x256xbf16>, vector<256x2352xbf16>, vector<2x2352xf32> -> vector<2x2352xf32>
    %c0_34 = arith.constant 0 : index
    %c0_35 = arith.constant 0 : index
    %50 = vector.load %arg15[%c0_34, %c0_35] : memref<1x2352xf32, #tpu.memory_space<vmem>>, vector<1x2352xf32>
    %51 = vector.broadcast %50 : vector<1x2352xf32> to vector<2x2352xf32>
    %52 = arith.mulf %49, %51 : vector<2x2352xf32>
    %c0_36 = arith.constant 0 : index
    %c0_37 = arith.constant 0 : index
    %53 = vector.load %arg16[%c0_36, %c0_37] : memref<1x2352xf32, #tpu.memory_space<vmem>>, vector<1x2352xf32>
    %54 = vector.broadcast %53 : vector<1x2352xf32> to vector<2x2352xf32>
    %55 = arith.addf %52, %54 : vector<2x2352xf32>
    %cst_38 = arith.constant 0.000000e+00 : f32
    %56 = vector.broadcast %cst_38 : f32 to vector<2x2352xf32>
    %57 = arith.subf %56, %55 : vector<2x2352xf32>
    %58 = math.exp %57 : vector<2x2352xf32>
    %cst_39 = arith.constant 1.000000e+00 : f32
    %59 = vector.broadcast %cst_39 : f32 to vector<2x2352xf32>
    %60 = arith.addf %59, %58 : vector<2x2352xf32>
    %61 = tpu.reciprocal %60 {approx = true} : vector<2x2352xf32> -> vector<2x2352xf32>
    %c0_40 = arith.constant 0 : index
    %c0_41 = arith.constant 0 : index
    %62 = vector.load %arg17[%c0_40, %c0_41] : memref<2x2352xf32, #tpu.memory_space<vmem>>, vector<2x2352xf32>
    tpu.vector_store %arg17[%c0_40, %c0_41], %61 {strides = array<i32>} : memref<2x2352xf32, #tpu.memory_space<vmem>>, vector<2x2352xf32>,
    return
  }
  func.func @transform_0(%arg0: i32) -> (i32, i32) {
    %c0_i32 = arith.constant 0 : i32
    %c0_i32_0 = arith.constant 0 : i32
    return %arg0, %c0_i32 : i32, i32
  }
  func.func @transform_1(%arg0: i32) -> (i32, i32) {
    %c0_i32 = arith.constant 0 : i32
    %c0_i32_0 = arith.constant 0 : i32
    return %arg0, %c0_i32 : i32, i32
  }
  func.func @transform_2(%arg0: i32) -> (i32, i32) {
    %c0_i32 = arith.constant 0 : i32
    %c0_i32_0 = arith.constant 0 : i32
    %c0_i32_1 = arith.constant 0 : i32
    return %c0_i32, %c0_i32_0 : i32, i32
  }
  func.func @transform_3(%arg0: i32) -> (i32, i32) {
    %c0_i32 = arith.constant 0 : i32
    %c0_i32_0 = arith.constant 0 : i32
    %c0_i32_1 = arith.constant 0 : i32
    return %c0_i32, %c0_i32_0 : i32, i32
  }
  func.func @transform_4(%arg0: i32) -> (i32, i32) {
    %c0_i32 = arith.constant 0 : i32
    %c0_i32_0 = arith.constant 0 : i32
    %c0_i32_1 = arith.constant 0 : i32
    return %c0_i32, %c0_i32_0 : i32, i32
  }
  func.func @transform_5(%arg0: i32) -> (i32, i32) {
    %c0_i32 = arith.constant 0 : i32
    %c0_i32_0 = arith.constant 0 : i32
    %c0_i32_1 = arith.constant 0 : i32
    return %c0_i32, %c0_i32_0 : i32, i32
  }
  func.func @transform_6(%arg0: i32) -> (i32, i32) {
    %c0_i32 = arith.constant 0 : i32
    %c0_i32_0 = arith.constant 0 : i32
    %c0_i32_1 = arith.constant 0 : i32
    return %c0_i32, %c0_i32_0 : i32, i32
  }
  func.func @transform_7(%arg0: i32) -> (i32, i32) {
    %c0_i32 = arith.constant 0 : i32
    %c0_i32_0 = arith.constant 0 : i32
    %c0_i32_1 = arith.constant 0 : i32
    return %c0_i32, %c0_i32_0 : i32, i32
  }
  func.func @transform_8(%arg0: i32) -> (i32, i32) {
    %c0_i32 = arith.constant 0 : i32
    %c0_i32_0 = arith.constant 0 : i32
    %c0_i32_1 = arith.constant 0 : i32
    return %c0_i32, %c0_i32_0 : i32, i32
  }
  func.func @transform_9(%arg0: i32) -> (i32, i32) {
    %c0_i32 = arith.constant 0 : i32
    %c0_i32_0 = arith.constant 0 : i32
    %c0_i32_1 = arith.constant 0 : i32
    return %c0_i32, %c0_i32_0 : i32, i32
  }
  func.func @transform_10(%arg0: i32) -> (i32, i32) {
    %c0_i32 = arith.constant 0 : i32
    %c0_i32_0 = arith.constant 0 : i32
    %c0_i32_1 = arith.constant 0 : i32
    return %c0_i32, %c0_i32_0 : i32, i32
  }
  func.func @transform_11(%arg0: i32) -> (i32, i32) {
    %c0_i32 = arith.constant 0 : i32
    %c0_i32_0 = arith.constant 0 : i32
    %c0_i32_1 = arith.constant 0 : i32
    return %c0_i32, %c0_i32_0 : i32, i32
  }
  func.func @transform_12(%arg0: i32) -> (i32, i32) {
    %c0_i32 = arith.constant 0 : i32
    %c0_i32_0 = arith.constant 0 : i32
    %c0_i32_1 = arith.constant 0 : i32
    return %c0_i32, %c0_i32_0 : i32, i32
  }
  func.func @transform_13(%arg0: i32) -> (i32, i32) {
    %c0_i32 = arith.constant 0 : i32
    %c0_i32_0 = arith.constant 0 : i32
    %c0_i32_1 = arith.constant 0 : i32
    return %c0_i32, %c0_i32_0 : i32, i32
  }
  func.func @transform_14(%arg0: i32) -> (i32, i32) {
    %c0_i32 = arith.constant 0 : i32
    %c0_i32_0 = arith.constant 0 : i32
    %c0_i32_1 = arith.constant 0 : i32
    return %c0_i32, %c0_i32_0 : i32, i32
  }
  func.func @transform_15(%arg0: i32) -> (i32, i32) {
    %c0_i32 = arith.constant 0 : i32
    %c0_i32_0 = arith.constant 0 : i32
    %c0_i32_1 = arith.constant 0 : i32
    return %c0_i32, %c0_i32_0 : i32, i32
  }
  func.func @transform_16(%arg0: i32) -> (i32, i32) {
    %c0_i32 = arith.constant 0 : i32
    %c0_i32_0 = arith.constant 0 : i32
    return %arg0, %c0_i32 : i32, i32
  }
}

</mosaic_0001>

<bundles_post_ra>
// kernel: generator_forward.1
= control target key start
LH: loop header
LB: loop body
LE: loop exit
PB: predicated region body
PF: predicated region fallthrough
CT: control target
= control target key end

     0   :  { %vm2246_vm0 = vcmask 392192   ;;  %vm2680_vm1 = vcmask 261120   ;;  %vm4313_vm2 = vcmask 1041408   ;;  %vm4314_vm3 = vcmask 1043458   ;;  %s6135_s2 = inlined_call_operand.vmem [shape: s8[2352,256], index: 2, kind: input, shape index: {}]   ;;  %s6136_s0 = inlined_call_operand.vmem [shape: f32[2,2352], index: 0, kind: input, shape index: {}]   ;;  %s6137_s4 = inlined_call_operand.vmem [shape: s8[32,256], index: 4, kind: input, shape index: {}]   ;;  %s6138_s1 = inlined_call_operand.vmem [shape: f32[2,32], index: 1, kind: input, shape index: {}]   ;;  %s6139_s7 = inlined_call_operand.vmem [shape: s8[256,256], index: 7, kind: input, shape index: {}]   ;;  %s6140_s10 = inlined_call_operand.vmem [shape: s8[256,256], index: 10, kind: input, shape index: {}]   ;;  %s6141_s5 = inlined_call_operand.vmem [shape: f32[1,256], index: 5, kind: input, shape index: {}]   ;;  %s6142_s3 = inlined_call_operand.vmem [shape: f32[1,256], index: 3, kind: input, shape index: {}]   ;;  %s6143_s6 = inlined_call_operand.vmem [shape: f32[1,256], index: 6, kind: input, shape index: {}]   ;;  %s6144_s13 = inlined_call_operand.vmem [shape: s8[256,2352], index: 13, kind: input, shape index: {}]   ;;  %s6145_s8 = inlined_call_operand.vmem [shape: f32[1,256], index: 8, kind: input, shape index: {}]   ;;  %s6146_s9 = inlined_call_operand.vmem [shape: f32[1,256], index: 9, kind: input, shape index: {}]   ;;  %s6147_s11 = inlined_call_operand.vmem [shape: f32[1,256], index: 11, kind: input, shape index: {}]   ;;  %s6148_s12 = inlined_call_operand.vmem [shape: f32[1,256], index: 12, kind: input, shape index: {}]   ;;  %s6149_s14 = inlined_call_operand.vmem [shape: f32[1,2352], index: 14, kind: input, shape index: {}]   ;;  %s6150_s15 = inlined_call_operand.vmem [shape: f32[1,2352], index: 15, kind: input, shape index: {}]   ;;  %s6151_s16 = inlined_call_operand.vmem [shape: f32[2,2352], index: 16, kind: output, shape index: {}]  }
   0x1   :  { %6153 = sst [smem:[#allocation2_spill]] %s6135_s2  ;;  %vm4315_vm4 = vmor %vm4314_vm3, %vm4313_vm2  ;;  %vm4316_vm5 = vcmask 390148  }
   0x2   :  { %s6154_s23 = sld [smem:[#allocation2_spill]]  ;;  %vm4317_vm6 = vmor %vm4316_vm5, %vm4315_vm4 }
   0x8   :  { %v202_v0 = vld [vmem:[%s6154_s23 + $0x38] sm:$0xff]   ;;  %v200_v2 = vld [vmem:[%s6154_s23 + $0x30] sm:$0xff]   ;;  %v198_v12 = vld [vmem:[%s6154_s23 + $0x28] sm:$0xff]  }
   0x9   :  { %v234_v1 = vld [vmem:[%s6154_s23 + $0xb8] sm:$0xff]   ;;  %v496_v3 = vunpack.c.l.s8.bf16 %v202_v0  ;;  %v497_v4 = vunpack.c.h.s8.bf16 %v202_v0  ;;  %v232_v7 = vld [vmem:[%s6154_s23 + $0xb0] sm:$0xff]   ;;  %v494_v8 = vunpack.c.l.s8.bf16 %v200_v2  ;;  %v495_v9 = vunpack.c.h.s8.bf16 %v200_v2  ;;  %v230_v13 = vld [vmem:[%s6154_s23 + $0xa8] sm:$0xff]  }
   0xa   :  { %v528_v5 = vunpack.c.l.s8.bf16 %v234_v1  ;;  %v529_v6 = vunpack.c.h.s8.bf16 %v234_v1  ;;  %v526_v10 = vunpack.c.l.s8.bf16 %v232_v7  ;;  %v527_v11 = vunpack.c.h.s8.bf16 %v232_v7  ;;  %v196_v18 = vld [vmem:[%s6154_s23 + $0x20] sm:$0xff]   ;;  %v194_v34 = vld [vmem:[%s6154_s23 + $0x18] sm:$0xff]   ;;  %v192_v44 = vld [vmem:[%s6154_s23 + $0x10] sm:$0xff]  }
   0xb   :  { %v4338_v14 = vcombine.high %v496_v3, %v497_v4  ;;  %v4337_v16 = vcombine.low %v496_v3, %v497_v4  ;;  %v4336_v19 = vcombine.high %v494_v8, %v495_v9  ;;  %v228_v21 = vld [vmem:[%s6154_s23 + $0xa0] sm:$0xff]   ;;  %v492_v22 = vunpack.c.l.s8.bf16 %v198_v12  ;;  %v226_v35 = vld [vmem:[%s6154_s23 + $0x98] sm:$0xff]   ;;  %v224_v45 = vld [vmem:[%s6154_s23 + $0x90] sm:$0xff]  }
   0xc   :  { %v4370_v15 = vcombine.high %v528_v5, %v529_v6  ;;  %v4369_v17 = vcombine.low %v528_v5, %v529_v6  ;;  %v4368_v20 = vcombine.high %v526_v10, %v527_v11  ;;  %v493_v23 = vunpack.c.h.s8.bf16 %v198_v12  ;;  %v190_v54 = vld [vmem:[%s6154_s23 + $0x8] sm:$0xff]   ;;  %v188_v0 = vld [vmem:[%s6154_s23] sm:$0xff]  }
   0xd   :  { %2250 = vmatprep.subr.bf16.mxu0 %v4338_v14  ;;  %v524_v24 = vunpack.c.l.s8.bf16 %v230_v13  ;;  %v525_v25 = vunpack.c.h.s8.bf16 %v230_v13  ;;  %v4335_v26 = vcombine.low %v494_v8, %v495_v9  ;;  %v4367_v27 = vcombine.low %v526_v10, %v527_v11  ;;  %v222_v55 = vld [vmem:[%s6154_s23 + $0x88] sm:$0xff]   ;;  %v220_v1 = vld [vmem:[%s6154_s23 + $0x80] sm:$0xff]   ;;  %v218_v10 = vld [vmem:[%s6154_s23 + $0x78] sm:$0xff]  }
   0xe   :  { %2291 = vmatprep.subr.bf16.mxu1 %v4370_v15  ;;  %2251 = vmatpush1.bf16.msra.mxu0 %v4337_v16  ;;  %v490_v28 = vunpack.c.l.s8.bf16 %v196_v18  ;;  %v491_v29 = vunpack.c.h.s8.bf16 %v196_v18  ;;  %v4334_v30 = vcombine.high %v492_v22, %v493_v23  ;;  %v522_v32 = vunpack.c.l.s8.bf16 %v228_v21  ;;  %v250_v11 = vld [vmem:[%s6154_s23 + $0xf8] sm:$0xff]  }
   0xf   :  { %2292 = vmatpush1.bf16.msra.mxu1 %v4369_v17  ;;  %2252 = vmatprep.subr.bf16.mxu0 %v4336_v19  ;;  %v4366_v31 = vcombine.high %v524_v24, %v525_v25  ;;  %v523_v33 = vunpack.c.h.s8.bf16 %v228_v21  ;;  %v4333_v36 = vcombine.low %v492_v22, %v493_v23  ;;  %v4365_v37 = vcombine.low %v524_v24, %v525_v25  ;;  %v216_v22 = vld [vmem:[%s6154_s23 + $0x70] sm:$0xff]  }
  0x10   :  { %2293 = vmatprep.subr.bf16.mxu1 %v4368_v20  ;;  %v4332_v38 = vcombine.high %v490_v28, %v491_v29  ;;  %v488_v39 = vunpack.c.l.s8.bf16 %v194_v34  ;;  %v489_v41 = vunpack.c.h.s8.bf16 %v194_v34  ;;  %v520_v42 = vunpack.c.l.s8.bf16 %v226_v35  ;;  %v248_v23 = vld [vmem:[%s6154_s23 + $0xf0] sm:$0xff]   ;;  %v214_v34 = vld [vmem:[%s6154_s23 + $0x68] sm:$0xff]  }
  0x11   :  { %v4364_v40 = vcombine.high %v522_v32, %v523_v33  ;;  %v521_v43 = vunpack.c.h.s8.bf16 %v226_v35  ;;  %v4331_v46 = vcombine.low %v490_v28, %v491_v29  ;;  %v4363_v47 = vcombine.low %v522_v32, %v523_v33 }
  0x12   :  { %2253 = vmatpush1.bf16.msra.mxu0 %v4335_v26  ;;  %v486_v48 = vunpack.c.l.s8.bf16 %v192_v44  ;;  %v487_v49 = vunpack.c.h.s8.bf16 %v192_v44  ;;  %v4330_v50 = vcombine.high %v488_v39, %v489_v41  ;;  %v518_v52 = vunpack.c.l.s8.bf16 %v224_v45 }
  0x13   :  { %2294 = vmatpush1.bf16.msra.mxu1 %v4367_v27  ;;  %2254 = vmatprep.subr.bf16.mxu0 %v4334_v30  ;;  %v4362_v51 = vcombine.high %v520_v42, %v521_v43  ;;  %v519_v53 = vunpack.c.h.s8.bf16 %v224_v45  ;;  %v4329_v56 = vcombine.low %v488_v39, %v489_v41  ;;  %v4361_v57 = vcombine.low %v520_v42, %v521_v43  ;;  %v54_v30 = vld [vmem:[%s6136_s0] sm:$0xff] }
  0x14   :  { %2295 = vmatprep.subr.bf16.mxu1 %v4366_v31  ;;  %v4328_v58 = vcombine.high %v486_v48, %v487_v49  ;;  %v484_v59 = vunpack.c.l.s8.bf16 %v190_v54  ;;  %v485_v61 = vunpack.c.h.s8.bf16 %v190_v54  ;;  %v516_v62 = vunpack.c.l.s8.bf16 %v222_v55 }
  0x15   :  { %v4360_v60 = vcombine.high %v518_v52, %v519_v53  ;;  %v517_v63 = vunpack.c.h.s8.bf16 %v222_v55  ;;  %v4327_v2 = vcombine.low %v486_v48, %v487_v49  ;;  %v4359_v3 = vcombine.low %v518_v52, %v519_v53  ;;  %v244_v48 = vld [vmem:[%s6154_s23 + $0xe0] sm:$0xff]  }
  0x16   :  { %2255 = vmatpush1.bf16.msra.mxu0 %v4333_v36  ;;  %v482_v4 = vunpack.c.l.s8.bf16 %v188_v0  ;;  %v483_v5 = vunpack.c.h.s8.bf16 %v188_v0  ;;  %v4326_v6 = vcombine.high %v484_v59, %v485_v61  ;;  %v514_v8 = vunpack.c.l.s8.bf16 %v220_v1  ;;  %v246_v36 = vld [vmem:[%s6154_s23 + $0xe8] sm:$0xff]  }
  0x17   :  { %2296 = vmatpush1.bf16.msra.mxu1 %v4365_v37  ;;  %2256 = vmatprep.subr.bf16.mxu0 %v4332_v38  ;;  %v4358_v7 = vcombine.high %v516_v62, %v517_v63  ;;  %v515_v9 = vunpack.c.h.s8.bf16 %v220_v1  ;;  %v4724_v12 = vmov 1983009808   ;;  %v4325_v14 = vcombine.low %v484_v59, %v485_v61 }
  0x18   :  { %2297 = vmatprep.subr.bf16.mxu1 %v4364_v40  ;;  %v66_v13 = vunpack.c.l.s4 %v4724_v12  ;;  %v4357_v15 = vcombine.low %v516_v62, %v517_v63  ;;  %v4324_v16 = vcombine.high %v482_v4, %v483_v5  ;;  %v512_v17 = vunpack.c.l.s8.bf16 %v218_v10  ;;  %v242_v63 = vld [vmem:[%s6154_s23 + $0xd8] sm:$0xff]  }
  0x19   :  { %v4356_v18 = vcombine.high %v514_v8, %v515_v9  ;;  %v513_v19 = vunpack.c.h.s8.bf16 %v218_v10  ;;  %v544_v20 = vunpack.c.l.s8.bf16 %v250_v11  ;;  %v545_v21 = vunpack.c.h.s8.bf16 %v250_v11  ;;  %v208_v10 = vld [vmem:[%s6154_s23 + $0x50] sm:$0xff]  }
  0x1a   :  { %2257 = vmatpush1.bf16.msra.mxu0 %v4331_v46  ;;  %v4323_v24 = vcombine.low %v482_v4, %v483_v5  ;;  %v68_v25 = vlaneseq  ;;  %v4355_v26 = vcombine.low %v514_v8, %v515_v9  ;;  %v510_v27 = vunpack.c.l.s8.bf16 %v216_v22  ;;  %v240_v11 = vld [vmem:[%s6154_s23 + $0xd0] sm:$0xff]  }
  0x1b   :  { %2298 = vmatpush1.bf16.msra.mxu1 %v4363_v47  ;;  %2258 = vmatprep.subr.bf16.mxu0 %v4330_v50  ;;  %v511_v28 = vunpack.c.h.s8.bf16 %v216_v22  ;;  %v542_v29 = vunpack.c.l.s8.bf16 %v248_v23  ;;  %v4354_v31 = vcombine.high %v512_v17, %v513_v19  ;;  %v4386_v32 = vcombine.high %v544_v20, %v545_v21  ;;  %v212_v47 = vld [vmem:[%s6154_s23 + $0x60] sm:$0xff]  }
  0x1c   :  { %2299 = vmatprep.subr.bf16.mxu1 %v4362_v51  ;;  %v543_v33 = vunpack.c.h.s8.bf16 %v248_v23  ;;  %v67_v35 = vunpack.c.0.s8 %v66_v13  ;;  %v4353_v37 = vcombine.low %v512_v17, %v513_v19  ;;  %v4880_v38 = vshrl.u32 %v68_v25, 7 }
  0x1d   :  { %v64_v39 = vcombine.high %v54_v30, %v54_v30  ;;  %v4385_v40 = vcombine.low %v544_v20, %v545_v21  ;;  %v4352_v41 = vcombine.high %v510_v27, %v511_v28  ;;  %v508_v42 = vunpack.c.l.s8.bf16 %v214_v34  ;;  %v206_v20 = vld [vmem:[%s6154_s23 + $0x48] sm:$0xff]  }
  0x1e   :  { %2259 = vmatpush1.bf16.msra.mxu0 %v4329_v56  ;;  %v509_v43 = vunpack.c.h.s8.bf16 %v214_v34  ;;  %v4384_v44 = vcombine.high %v542_v29, %v543_v33  ;;  %v540_v45 = vunpack.c.l.s8.bf16 %v246_v36  ;;  %v541_v46 = vunpack.c.h.s8.bf16 %v246_v36  ;;  %v238_v21 = vld [vmem:[%s6154_s23 + $0xc8] sm:$0xff]  }
  0x1f   :  { %2300 = vmatpush1.bf16.msra.mxu1 %v4361_v57  ;;  %2260 = vmatprep.subr.bf16.mxu0 %v4328_v58  ;;  %v4889_v49 = vsub.s32 %v67_v35, %v4880_v38  ;;  %v4351_v50 = vcombine.low %v510_v27, %v511_v28  ;;  %v4383_v51 = vcombine.low %v542_v29, %v543_v33  ;;  %v506_v55 = vunpack.c.l.s8.bf16 %v212_v47 }
  0x20   :  { %2301 = vmatprep.subr.bf16.mxu1 %v4360_v60  ;;  %v4350_v54 = vcombine.high %v508_v42, %v509_v43  ;;  %v507_v56 = vunpack.c.h.s8.bf16 %v212_v47  ;;  %v538_v57 = vunpack.c.l.s8.bf16 %v244_v48  ;;  %v4382_v58 = vcombine.high %v540_v45, %v541_v46  ;;  %v210_v60 = vld [vmem:[%s6154_s23 + $0x58] sm:$0xff]  }
  0x21   :  { %v4892_v52 = vrot.slane %v54_v30, %v4889_v49  ;;  %v4895_v53 = vrot.slane %v64_v39, %v4889_v49  ;;  %v539_v59 = vunpack.c.h.s8.bf16 %v244_v48  ;;  %v504_v5 = vunpack.c.l.s8.bf16 %v210_v60  ;;  %v204_v30 = vld [vmem:[%s6154_s23 + $0x40] sm:$0xff]  }
  0x22   :  { %2261 = vmatpush1.bf16.msra.mxu0 %v4327_v2  ;;  %v4349_v2 = vcombine.low %v508_v42, %v509_v43  ;;  %v4348_v4 = vcombine.high %v506_v55, %v507_v56  ;;  %v536_v8 = vunpack.c.l.s8.bf16 %v242_v63  ;;  %v537_v9 = vunpack.c.h.s8.bf16 %v242_v63  ;;  %v298_v42 = vld [vmem:[%s6154_s23 + $0x1b8] sm:$0xff]  }
  0x23   :  { %2302 = vmatpush1.bf16.msra.mxu1 %v4359_v3  ;;  %2262 = vmatprep.subr.bf16.mxu0 %v4326_v6  ;;  %v79_v61 = vcombine.high %v4892_v52, %v4892_v52  ;;  %v80_v62 = vcombine.high %v4895_v53, %v4895_v53  ;;  %v4381_v3 = vcombine.low %v540_v45, %v541_v46  ;;  %v535_v19 = vunpack.c.h.s8.bf16 %v240_v11 }
  0x24   :  { %2303 = vmatprep.subr.bf16.mxu1 %v4358_v7  ;;  %v4380_v6 = vcombine.high %v538_v57, %v539_v59  ;;  %v505_v7 = vunpack.c.h.s8.bf16 %v210_v60  ;;  %v4347_v12 = vcombine.low %v506_v55, %v507_v56  ;;  %v4379_v13 = vcombine.low %v538_v57, %v539_v59  ;;  %v296_v55 = vld [vmem:[%s6154_s23 + $0x1b0] sm:$0xff]  }
  0x25   :  { %v168_v0 = vpack.c.bf16 %v79_v61, %v79_v61  ;;  %v170_v1 = vpack.c.bf16 %v80_v62, %v80_v62  ;;  %v4378_v17 = vcombine.high %v536_v8, %v537_v9  ;;  %v4377_v23 = vcombine.low %v536_v8, %v537_v9 }
  0x26   :  { %2263 = vmatpush1.bf16.msra.mxu0 %v4325_v14  ;;  %v502_v14 = vunpack.c.l.s8.bf16 %v208_v10  ;;  %v4345_v22 = vcombine.low %v504_v5, %v505_v7  ;;  %v500_v25 = vunpack.c.l.s8.bf16 %v206_v20  ;;  %v501_v27 = vunpack.c.h.s8.bf16 %v206_v20 }
  0x27   :  { %2304 = vmatpush1.bf16.msra.mxu1 %v4357_v15  ;;  %2264 = vmatprep.subr.bf16.mxu0 %v4324_v16  ;;  %v503_v15 = vunpack.c.h.s8.bf16 %v208_v10  ;;  %v4346_v16 = vcombine.high %v504_v5, %v505_v7  ;;  %v532_v28 = vunpack.c.l.s8.bf16 %v238_v21  ;;  %v533_v29 = vunpack.c.h.s8.bf16 %v238_v21 }
  0x28   :  { %2305 = vmatprep.subr.bf16.mxu1 %v4356_v18  ;;  %2282 = vmatprep.mubr.bf16.mxu0 %v168_v0  ;;  %v534_v18 = vunpack.c.l.s8.bf16 %v240_v11  ;;  %v498_v34 = vunpack.c.l.s8.bf16 %v204_v30  ;;  %v499_v35 = vunpack.c.h.s8.bf16 %v204_v30  ;;  %v4342_v39 = vcombine.high %v500_v25, %v501_v27  ;;  %v262_v0 = vld [vmem:[%s6154_s23 + $0x128] sm:$0xff]  }
  0x29   :  { %2323 = vmatprep.mubr.bf16.mxu1 %v170_v1  ;;  %v4341_v43 = vcombine.low %v500_v25, %v501_v27  ;;  %v590_v62 = vunpack.c.l.s8.bf16 %v296_v55  ;;  %v591_v63 = vunpack.c.h.s8.bf16 %v296_v55  ;;  %v294_v1 = vld [vmem:[%s6154_s23 + $0x1a8] sm:$0xff]   ;;  %v556_v8 = vunpack.c.l.s8.bf16 %v262_v0  ;;  %v258_v25 = vld [vmem:[%s6154_s23 + $0x118] sm:$0xff]  }
  0x2a   :  { %2265 = vmatpush1.bf16.msra.mxu0 %v4323_v24  ;;  %v4344_v24 = vcombine.high %v502_v14, %v503_v15  ;;  %v4375_v33 = vcombine.low %v534_v18, %v535_v19  ;;  %v4340_v45 = vcombine.high %v498_v34, %v499_v35  ;;  %v4339_v56 = vcombine.low %v498_v34, %v499_v35  ;;  %v290_v27 = vld [vmem:[%s6154_s23 + $0x198] sm:$0xff]  }
  0x2b   :  { %2306 = vmatpush1.bf16.msra.mxu1 %v4355_v26  ;;  %2266 = vmatprep.subr.bf16.mxu0 %v4354_v31  ;;  %v4376_v26 = vcombine.high %v534_v18, %v535_v19  ;;  %v236_v31 = vld [vmem:[%s6154_s23 + $0xc0] sm:$0xff]   ;;  %v557_v9 = vunpack.c.h.s8.bf16 %v262_v0  ;;  %v4432_v10 = vcombine.high %v590_v62, %v591_v63  ;;  %v588_v11 = vunpack.c.l.s8.bf16 %v294_v1 }
  0x2c   :  { %2307 = vmatprep.subr.bf16.mxu1 %v4386_v32  ;;  %v4343_v32 = vcombine.low %v502_v14, %v503_v15  ;;  %v530_v36 = vunpack.c.l.s8.bf16 %v236_v31 }
  0x2d   :  { %v4398_v18 = vcombine.high %v556_v8, %v557_v9 }
  0x2e   :  { %2267 = vmatpush2.bf16.msra.mxu0 %v4353_v37  ;;  %v531_v37 = vunpack.c.h.s8.bf16 %v236_v31  ;;  %v552_v31 = vunpack.c.l.s8.bf16 %v258_v25 }
  0x2f   :  { %2308 = vmatpush2.bf16.msra.mxu1 %v4385_v40  ;;  %2268 = vmatprep.subr.bf16.mxu0 %v4352_v41  ;;  %v4374_v40 = vcombine.high %v532_v28, %v533_v29  ;;  %v266_v41 = vld [vmem:[%s6154_s23 + $0x138] sm:$0xff]  }
  0x30   :  { %2309 = vmatprep.subr.bf16.mxu1 %v4384_v44  ;;  %v4373_v44 = vcombine.low %v532_v28, %v533_v29  ;;  %v4372_v46 = vcombine.high %v530_v36, %v531_v37  ;;  %v560_v47 = vunpack.c.l.s8.bf16 %v266_v41  ;;  %v561_v48 = vunpack.c.h.s8.bf16 %v266_v41 }
  0x31   :  { %v4371_v57 = vcombine.low %v530_v36, %v531_v37  ;;  %v4397_v29 = vcombine.low %v556_v8, %v557_v9  ;;  %v584_v36 = vunpack.c.l.s8.bf16 %v290_v27  ;;  %v585_v37 = vunpack.c.h.s8.bf16 %v290_v27  ;;  %v282_v8 = vld [vmem:[%s6154_s23 + $0x178] sm:$0xff]  }
  0x32   :  { %2269 = vmatpush2.bf16.msra.mxu0 %v4351_v50  ;;  %v592_v50 = vunpack.c.l.s8.bf16 %v298_v42  ;;  %v4402_v60 = vcombine.high %v560_v47, %v561_v48  ;;  %v4401_v5 = vcombine.low %v560_v47, %v561_v48  ;;  %v314_v9 = vld [vmem:[%s6154_s23 + $0x1f8] sm:$0xff]  }
  0x33   :  { %2310 = vmatpush2.bf16.msra.mxu1 %v4383_v51  ;;  %2270 = vmatprep.subr.bf16.mxu0 %v4350_v54  ;;  %v593_v51 = vunpack.c.h.s8.bf16 %v298_v42  ;;  %v264_v54 = vld [vmem:[%s6154_s23 + $0x130] sm:$0xff]   ;;  %v4425_v55 = vcombine.low %v584_v36, %v585_v37 }
  0x34   :  { %2311 = vmatprep.subr.bf16.mxu1 %v4382_v58  ;;  %v558_v58 = vunpack.c.l.s8.bf16 %v264_v54  ;;  %v559_v59 = vunpack.c.h.s8.bf16 %v264_v54 }
  0x35   :  { %v4434_v61 = vcombine.high %v592_v50, %v593_v51 }
  0x36   :  { %2271 = vmatpush2.bf16.msra.mxu0 %v4349_v2  ;;  %v55_v2 = vld [vmem:[%s6136_s0 + $0x8] sm:$0xff]  ;;  %v4400_v7 = vcombine.high %v558_v58, %v559_v59  ;;  %v4399_v15 = vcombine.low %v558_v58, %v559_v59 }
  0x37   :  { %2312 = vmatpush2.bf16.msra.mxu1 %v4381_v3  ;;  %2272 = vmatprep.subr.bf16.mxu0 %v4348_v4  ;;  %v167_v3 = vpack.c.bf16 %v4892_v52, %v4892_v52  ;;  %v169_v4 = vpack.c.bf16 %v4895_v53, %v4895_v53  ;;  %v4954_v52 = vrot.slane %v55_v2, %v4889_v49  ;;  %v292_v53 = vld [vmem:[%s6154_s23 + $0x1a0] sm:$0xff]  }
  0x38   :  { %2313 = vmatprep.subr.bf16.mxu1 %v4380_v6  ;;  %v4433_v6 = vcombine.low %v592_v50, %v593_v51  ;;  %v81_v14 = vcombine.high %v55_v2, %v55_v2  ;;  %v254_v50 = vld [vmem:[%s6154_s23 + $0x108] sm:$0xff]  }
  0x39   :  { %v286_v51 = vld [vmem:[%s6154_s23 + $0x188] sm:$0xff]  }
  0x3a   :  { %2273 = vmatpush2.bf16.msra.mxu0 %v4347_v12  ;;  %v589_v12 = vunpack.c.h.s8.bf16 %v294_v1  ;;  %v4962_v21 = vrot.slane %v81_v14, %v4889_v49 }
  0x3b   :  { %2314 = vmatpush2.bf16.msra.mxu1 %v4379_v13  ;;  %2274 = vmatprep.subr.bf16.mxu0 %v4346_v16  ;;  %v260_v13 = vld [vmem:[%s6154_s23 + $0x120] sm:$0xff]   ;;  %v4431_v16 = vcombine.low %v590_v62, %v591_v63 }
  0x3c   :  { %2315 = vmatprep.subr.bf16.mxu1 %v4378_v17  ;;  %v96_v17 = vcombine.high %v4954_v52, %v4954_v52  ;;  %v554_v19 = vunpack.c.l.s8.bf16 %v260_v13  ;;  %v555_v20 = vunpack.c.h.s8.bf16 %v260_v13  ;;  %v97_v28 = vcombine.high %v4962_v21, %v4962_v21  ;;  %v252_v62 = vld [vmem:[%s6154_s23 + $0x100] sm:$0xff]  }
  0x3d   :  { %v4429_v30 = vcombine.low %v588_v11, %v589_v12  ;;  %v284_v63 = vld [vmem:[%s6154_s23 + $0x180] sm:$0xff]   ;;  %v577_v13 = vunpack.c.h.s8.bf16 %v282_v8 }
  0x3e   :  { %2275 = vmatpush2.bf16.msra.mxu0 %v4345_v22  ;;  %v4430_v22 = vcombine.high %v588_v11, %v589_v12  ;;  %v4396_v34 = vcombine.high %v554_v19, %v555_v20  ;;  %v4395_v41 = vcombine.low %v554_v19, %v555_v20  ;;  %v576_v12 = vunpack.c.l.s8.bf16 %v282_v8  ;;  %v270_v8 = vld [vmem:[%s6154_s23 + $0x148] sm:$0xff]  }
  0x3f   :  { %2316 = vmatpush2.bf16.msra.mxu1 %v4377_v23  ;;  %2276 = vmatprep.subr.bf16.mxu0 %v4344_v24  ;;  %v586_v23 = vunpack.c.l.s8.bf16 %v292_v53  ;;  %v587_v24 = vunpack.c.h.s8.bf16 %v292_v53 }
  0x40   :  { %2317 = vmatprep.subr.bf16.mxu1 %v4376_v26  ;;  %v172_v26 = vpack.c.bf16 %v96_v17, %v96_v17  ;;  %v280_v17 = vld [vmem:[%s6154_s23 + $0x170] sm:$0xff]  }
  0x41   :  { %v4428_v35 = vcombine.high %v586_v23, %v587_v24  ;;  %v4427_v42 = vcombine.low %v586_v23, %v587_v24  ;;  %v574_v23 = vunpack.c.l.s8.bf16 %v280_v17 }
  0x42   :  { %2277 = vmatpush2.bf16.msra.mxu0 %v4343_v32  ;;  %v553_v32 = vunpack.c.h.s8.bf16 %v258_v25  ;;  %v575_v25 = vunpack.c.h.s8.bf16 %v280_v17  ;;  %v268_v17 = vld [vmem:[%s6154_s23 + $0x140] sm:$0xff]  }
  0x43   :  { %2318 = vmatpush2.bf16.msra.mxu1 %v4375_v33  ;;  %2278 = vmatprep.subr.bf16.mxu0 %v4342_v39  ;;  %v174_v33 = vpack.c.bf16 %v97_v28, %v97_v28  ;;  %v256_v39 = vld [vmem:[%s6154_s23 + $0x110] sm:$0xff]   ;;  %v278_v28 = vld [vmem:[%s6154_s23 + $0x168] sm:$0xff]  }
  0x44   :  { %2319 = vmatprep.subr.bf16.mxu1 %v4374_v40  ;;  %v288_v40 = vld [vmem:[%s6154_s23 + $0x190] sm:$0xff]   ;;  %v4393_v54 = vcombine.low %v552_v31, %v553_v32 }
  0x45   :  { %v582_v47 = vunpack.c.l.s8.bf16 %v288_v40  ;;  %v583_v48 = vunpack.c.h.s8.bf16 %v288_v40  ;;  %v308_v40 = vld [vmem:[%s6154_s23 + $0x1e0] sm:$0xff]  }
  0x46   :  { %2279 = vmatpush2.bf16.msra.mxu0 %v4341_v43  ;;  %v4394_v43 = vcombine.high %v552_v31, %v553_v32  ;;  %v572_v32 = vunpack.c.l.s8.bf16 %v278_v28 }
  0x47   :  { %2320 = vmatpush2.bf16.msra.mxu1 %v4373_v44  ;;  %2280 = vmatprep.subr.bf16.mxu0 %v4340_v45  ;;  %v550_v44 = vunpack.c.l.s8.bf16 %v256_v39  ;;  %v4426_v45 = vcombine.high %v584_v36, %v585_v37  ;;  %v4424_v59 = vcombine.high %v582_v47, %v583_v48  ;;  %v4423_v1 = vcombine.low %v582_v47, %v583_v48 }
  0x48   :  { %2321 = vmatprep.subr.bf16.mxu1 %v4372_v46  ;;  %v551_v46 = vunpack.c.h.s8.bf16 %v256_v39  ;;  %v276_v39 = vld [vmem:[%s6154_s23 + $0x160] sm:$0xff]   ;;  %v602_v47 = vunpack.c.l.s8.bf16 %v308_v40  ;;  %v603_v48 = vunpack.c.h.s8.bf16 %v308_v40 }
  0x4a   :  { %2281 = vmatpush2.bf16.msra.mxu0 %v4339_v56  ;;  %v548_v56 = vunpack.c.l.s8.bf16 %v254_v50  ;;  %v4392_v58 = vcombine.high %v550_v44, %v551_v46  ;;  %v4391_v0 = vcombine.low %v550_v44, %v551_v46  ;;  %v570_v44 = vunpack.c.l.s8.bf16 %v276_v39 }
  0x4b   :  { %2322 = vmatpush2.bf16.msra.mxu1 %v4371_v57  ;;  %2332 = vmatprep.subr.bf16.mxu0 %v4402_v60  ;;  %v549_v57 = vunpack.c.h.s8.bf16 %v254_v50  ;;  %v580_v60 = vunpack.c.l.s8.bf16 %v286_v51  ;;  %v571_v46 = vunpack.c.h.s8.bf16 %v276_v39  ;;  %v274_v50 = vld [vmem:[%s6154_s23 + $0x158] sm:$0xff]  }
  0x4c   :  { %2373 = vmatprep.subr.bf16.mxu1 %v4434_v61  ;;  %v581_v61 = vunpack.c.h.s8.bf16 %v286_v51  ;;  %v306_v51 = vld [vmem:[%s6154_s23 + $0x1d8] sm:$0xff]  }
  0x4d   :  { %2283 = vmatmul.mubr.bf16.vlgmr.msra.gmra.mxu0 %v167_v3  ;;  %v4390_v2 = vcombine.high %v548_v56, %v549_v57  ;;  %v546_v3 = vunpack.c.l.s8.bf16 %v252_v62 }
  0x4e   :  { %2324 = vmatmul.mubr.bf16.vlgmr.msra.gmra.mxu1 %v169_v4  ;;  %2333 = vmatpush1.bf16.msra.mxu0 %v4401_v5  ;;  %v4422_v4 = vcombine.high %v580_v60, %v581_v61  ;;  %v547_v5 = vunpack.c.h.s8.bf16 %v252_v62  ;;  %v4421_v11 = vcombine.low %v580_v60, %v581_v61  ;;  %v600_v60 = vunpack.c.l.s8.bf16 %v306_v51  ;;  %v272_v62 = vld [vmem:[%s6154_s23 + $0x150] sm:$0xff]  }
  0x4f   :  { %2374 = vmatpush1.bf16.msra.mxu1 %v4433_v6  ;;  %2334 = vmatprep.subr.bf16.mxu0 %v4400_v7  ;;  %v578_v6 = vunpack.c.l.s8.bf16 %v284_v63  ;;  %v579_v7 = vunpack.c.h.s8.bf16 %v284_v63  ;;  %v601_v61 = vunpack.c.h.s8.bf16 %v306_v51  ;;  %v304_v63 = vld [vmem:[%s6154_s23 + $0x1d0] sm:$0xff]  }
  0x50   :  { %2375 = vmatprep.subr.bf16.mxu1 %v4432_v10  ;;  %2364 = vmatprep.mubr.bf16.mxu0 %v172_v26  ;;  %v4389_v10 = vcombine.low %v548_v56, %v549_v57  ;;  %v4388_v53 = vcombine.high %v546_v3, %v547_v5  ;;  %v4387_v19 = vcombine.low %v546_v3, %v547_v5  ;;  %v568_v56 = vunpack.c.l.s8.bf16 %v274_v50 }
  0x51   :  { %2405 = vmatprep.mubr.bf16.mxu1 %v174_v33  ;;  %v4420_v14 = vcombine.high %v578_v6, %v579_v7  ;;  %v4419_v20 = vcombine.low %v578_v6, %v579_v7  ;;  %v573_v33 = vunpack.c.h.s8.bf16 %v278_v28  ;;  %v569_v57 = vunpack.c.h.s8.bf16 %v274_v50 }
  0x52   :  { %2335 = vmatpush1.bf16.msra.mxu0 %v4399_v15  ;;  %v608_v15 = vunpack.c.l.s8.bf16 %v314_v9  ;;  %v566_v3 = vunpack.c.l.s8.bf16 %v272_v62  ;;  %v567_v5 = vunpack.c.h.s8.bf16 %v272_v62  ;;  %v598_v6 = vunpack.c.l.s8.bf16 %v304_v63 }
  0x53   :  { %2376 = vmatpush1.bf16.msra.mxu1 %v4431_v16  ;;  %2336 = vmatprep.subr.bf16.mxu0 %v4398_v18  ;;  %v609_v16 = vunpack.c.h.s8.bf16 %v314_v9  ;;  %v312_v18 = vld [vmem:[%s6154_s23 + $0x1f0] sm:$0xff]   ;;  %v599_v7 = vunpack.c.h.s8.bf16 %v304_v63  ;;  %v302_v9 = vld [vmem:[%s6154_s23 + $0x1c8] sm:$0xff]  }
  0x54   :  { %2377 = vmatprep.subr.bf16.mxu1 %v4430_v22  ;;  %v4418_v22 = vcombine.high %v576_v12, %v577_v13  ;;  %v606_v26 = vunpack.c.l.s8.bf16 %v312_v18  ;;  %v607_v27 = vunpack.c.h.s8.bf16 %v312_v18  ;;  %v300_v18 = vld [vmem:[%s6154_s23 + $0x1c0] sm:$0xff]  }
  0x55   :  { %v4450_v24 = vcombine.high %v608_v15, %v609_v16  ;;  %v4449_v31 = vcombine.low %v608_v15, %v609_v16  ;;  %v596_v15 = vunpack.c.l.s8.bf16 %v302_v9  ;;  %v597_v16 = vunpack.c.h.s8.bf16 %v302_v9 }
  0x56   :  { %2337 = vmatpush1.bf16.msra.mxu0 %v4397_v29  ;;  %v310_v29 = vld [vmem:[%s6154_s23 + $0x1e8] sm:$0xff]   ;;  %v595_v28 = vunpack.c.h.s8.bf16 %v300_v18 }
  0x57   :  { %2378 = vmatpush1.bf16.msra.mxu1 %v4429_v30  ;;  %2338 = vmatprep.subr.bf16.mxu0 %v4396_v34  ;;  %v4417_v30 = vcombine.low %v576_v12, %v577_v13  ;;  %v4416_v34 = vcombine.high %v574_v23, %v575_v25  ;;  %v604_v36 = vunpack.c.l.s8.bf16 %v310_v29  ;;  %v605_v37 = vunpack.c.h.s8.bf16 %v310_v29  ;;  %v330_v29 = vld [vmem:[%s6154_s23 + $0x238] sm:$0xff]  }
  0x58   :  { %2379 = vmatprep.subr.bf16.mxu1 %v4428_v35  ;;  %v4448_v35 = vcombine.high %v606_v26, %v607_v27  ;;  %v564_v12 = vunpack.c.l.s8.bf16 %v270_v8  ;;  %v565_v13 = vunpack.c.h.s8.bf16 %v270_v8 }
  0x5a   :  { %2339 = vmatpush1.bf16.msra.mxu0 %v4395_v41  ;;  %v4415_v41 = vcombine.low %v574_v23, %v575_v25  ;;  %v4406_v23 = vcombine.high %v564_v12, %v565_v13  ;;  %v4438_v25 = vcombine.high %v596_v15, %v597_v16 }
  0x5b   :  { %2380 = vmatpush1.bf16.msra.mxu1 %v4427_v42  ;;  %2340 = vmatprep.subr.bf16.mxu0 %v4394_v43  ;;  %v4447_v42 = vcombine.low %v606_v26, %v607_v27  ;;  %v4414_v43 = vcombine.high %v572_v32, %v573_v33  ;;  %v563_v26 = vunpack.c.h.s8.bf16 %v268_v17  ;;  %v594_v27 = vunpack.c.l.s8.bf16 %v300_v18 }
  0x5c   :  { %2381 = vmatprep.subr.bf16.mxu1 %v4426_v45  ;;  %v4446_v45 = vcombine.high %v604_v36, %v605_v37 }
  0x5e   :  { %2341 = vmatpush1.bf16.msra.mxu0 %v4393_v54  ;;  %v4413_v54 = vcombine.low %v572_v32, %v573_v33  ;;  %v4405_v32 = vcombine.low %v564_v12, %v565_v13  ;;  %v4437_v33 = vcombine.low %v596_v15, %v597_v16  ;;  %v322_v15 = vld [vmem:[%s6154_s23 + $0x218] sm:$0xff]  }
  0x5f   :  { %2382 = vmatpush1.bf16.msra.mxu1 %v4425_v55  ;;  %2342 = vmatprep.subr.bf16.mxu0 %v4392_v58  ;;  %v4445_v55 = vcombine.low %v604_v36, %v605_v37  ;;  %v4412_v58 = vcombine.high %v570_v44, %v571_v46  ;;  %v4436_v37 = vcombine.high %v594_v27, %v595_v28  ;;  %v354_v16 = vld [vmem:[%s6154_s23 + $0x298] sm:$0xff]  }
  0x60   :  { %2383 = vmatprep.subr.bf16.mxu1 %v4424_v59  ;;  %v4444_v59 = vcombine.high %v602_v47, %v603_v48 }
  0x62   :  { %2343 = vmatpush1.bf16.msra.mxu0 %v4391_v0  ;;  %v4411_v0 = vcombine.low %v570_v44, %v571_v46  ;;  %v4435_v46 = vcombine.low %v594_v27, %v595_v28  ;;  %v352_v27 = vld [vmem:[%s6154_s23 + $0x290] sm:$0xff]  }
  0x63   :  { %2384 = vmatpush1.bf16.msra.mxu1 %v4423_v1  ;;  %2344 = vmatprep.subr.bf16.mxu0 %v4390_v2  ;;  %v4443_v1 = vcombine.low %v602_v47, %v603_v48  ;;  %v4410_v2 = vcombine.high %v568_v56, %v569_v57 }
  0x64   :  { %2385 = vmatprep.subr.bf16.mxu1 %v4422_v4  ;;  %v4442_v4 = vcombine.high %v600_v60, %v601_v61 }
  0x66   :  { %2345 = vmatpush1.bf16.msra.mxu0 %v4389_v10  ;;  %v4409_v10 = vcombine.low %v568_v56, %v569_v57  ;;  %v326_v56 = vld [vmem:[%s6154_s23 + $0x228] sm:$0xff]  }
  0x67   :  { %2386 = vmatpush1.bf16.msra.mxu1 %v4421_v11  ;;  %2346 = vmatprep.subr.bf16.mxu0 %v4388_v53  ;;  %v4441_v11 = vcombine.low %v600_v60, %v601_v61  ;;  %v4408_v53 = vcombine.high %v566_v3, %v567_v5  ;;  %v358_v57 = vld [vmem:[%s6154_s23 + $0x2a8] sm:$0xff]   ;;  %v171_v60 = vpack.c.bf16 %v4954_v52, %v4954_v52  ;;  %v356_v52 = vld [vmem:[%s6154_s23 + $0x2a0] sm:$0xff]  }
  0x68   :  { %2387 = vmatprep.subr.bf16.mxu1 %v4420_v14  ;;  %v4440_v14 = vcombine.high %v598_v6, %v599_v7  ;;  %v173_v61 = vpack.c.bf16 %v4962_v21, %v4962_v21 }
  0x6a   :  { %2347 = vmatpush1.bf16.msra.mxu0 %v4387_v19  ;;  %v56_v19 = vld [vmem:[%s6136_s0 + $0x10] sm:$0xff] }
  0x6b   :  { %2388 = vmatpush1.bf16.msra.mxu1 %v4419_v20  ;;  %2348 = vmatprep.subr.bf16.mxu0 %v4418_v22  ;;  %v4407_v20 = vcombine.low %v566_v3, %v567_v5  ;;  %v4439_v22 = vcombine.low %v598_v6, %v599_v7  ;;  %v653_v5 = vunpack.c.h.s8.bf16 %v358_v57  ;;  %v324_v6 = vld [vmem:[%s6154_s23 + $0x220] sm:$0xff]  }
  0x6c   :  { %2389 = vmatprep.subr.bf16.mxu1 %v4450_v24  ;;  %v562_v24 = vunpack.c.l.s8.bf16 %v268_v17  ;;  %v619_v13 = vunpack.c.h.s8.bf16 %v324_v6 }
  0x6e   :  { %2349 = vmatpush2.bf16.msra.mxu0 %v4417_v30  ;;  %v362_v30 = vld [vmem:[%s6154_s23 + $0x2b8] sm:$0xff]   ;;  %v4404_v36 = vcombine.high %v562_v24, %v563_v26 }
  0x6f   :  { %2390 = vmatpush2.bf16.msra.mxu1 %v4449_v31  ;;  %2350 = vmatprep.subr.bf16.mxu0 %v4416_v34  ;;  %v98_v31 = vcombine.high %v56_v19, %v56_v19  ;;  %v624_v34 = vunpack.c.l.s8.bf16 %v330_v29  ;;  %v656_v39 = vunpack.c.l.s8.bf16 %v362_v30  ;;  %v657_v40 = vunpack.c.h.s8.bf16 %v362_v30 }
  0x70   :  { %2391 = vmatprep.subr.bf16.mxu1 %v4448_v35  ;;  %v625_v35 = vunpack.c.h.s8.bf16 %v330_v29 }
  0x71   :  { %v5057_v44 = vrot.slane %v98_v31, %v4889_v49  ;;  %v4498_v50 = vcombine.high %v656_v39, %v657_v40  ;;  %v4497_v63 = vcombine.low %v656_v39, %v657_v40 }
  0x72   :  { %2351 = vmatpush2.bf16.msra.mxu0 %v4415_v41  ;;  %v328_v41 = vld [vmem:[%s6154_s23 + $0x230] sm:$0xff]   ;;  %v4466_v47 = vcombine.high %v624_v34, %v625_v35  ;;  %v4465_v62 = vcombine.low %v624_v34, %v625_v35  ;;  %v646_v34 = vunpack.c.l.s8.bf16 %v352_v27  ;;  %v647_v35 = vunpack.c.h.s8.bf16 %v352_v27  ;;  %v372_v27 = vld [vmem:[%s6154_s23 + $0x2e0] sm:$0xff]  }
  0x73   :  { %2392 = vmatpush2.bf16.msra.mxu1 %v4447_v42  ;;  %2352 = vmatprep.subr.bf16.mxu0 %v4414_v43  ;;  %v360_v42 = vld [vmem:[%s6154_s23 + $0x2b0] sm:$0xff]   ;;  %v5054_v43 = vrot.slane %v56_v19, %v4889_v49  ;;  %v622_v48 = vunpack.c.l.s8.bf16 %v328_v41  ;;  %v623_v51 = vunpack.c.h.s8.bf16 %v328_v41  ;;  %v616_v19 = vunpack.c.l.s8.bf16 %v322_v15 }
  0x74   :  { %2393 = vmatprep.subr.bf16.mxu1 %v4446_v45  ;;  %v4403_v45 = vcombine.low %v562_v24, %v563_v26  ;;  %v648_v24 = vunpack.c.l.s8.bf16 %v354_v16  ;;  %v320_v26 = vld [vmem:[%s6154_s23 + $0x210] sm:$0xff]  }
  0x75   :  { %v4463_v8 = vcombine.low %v622_v48, %v623_v51  ;;  %v614_v31 = vunpack.c.l.s8.bf16 %v320_v26 }
  0x76   :  { %2353 = vmatpush2.bf16.msra.mxu0 %v4413_v54  ;;  %v654_v54 = vunpack.c.l.s8.bf16 %v360_v42 }
  0x77   :  { %2394 = vmatpush2.bf16.msra.mxu1 %v4445_v55  ;;  %2354 = vmatprep.subr.bf16.mxu0 %v4412_v58  ;;  %v655_v55 = vunpack.c.h.s8.bf16 %v360_v42  ;;  %v113_v58 = vcombine.high %v5054_v43, %v5054_v43 }
  0x78   :  { %2395 = vmatprep.subr.bf16.mxu1 %v4444_v59  ;;  %v114_v59 = vcombine.high %v5057_v44, %v5057_v44 }
  0x79   :  { %v4496_v3 = vcombine.high %v654_v54, %v655_v55  ;;  %v176_v21 = vpack.c.bf16 %v113_v58, %v113_v58  ;;  %v4495_v9 = vcombine.low %v654_v54, %v655_v55  ;;  %v4487_v55 = vcombine.low %v646_v34, %v647_v35 }
  0x7a   :  { %2355 = vmatpush2.bf16.msra.mxu0 %v4411_v0  ;;  %v620_v0 = vunpack.c.l.s8.bf16 %v326_v56  ;;  %v178_v7 = vpack.c.bf16 %v114_v59, %v114_v59 }
  0x7b   :  { %2396 = vmatpush2.bf16.msra.mxu1 %v4443_v1  ;;  %2356 = vmatprep.subr.bf16.mxu0 %v4410_v2  ;;  %v621_v1 = vunpack.c.h.s8.bf16 %v326_v56  ;;  %v4464_v2 = vcombine.high %v622_v48, %v623_v51  ;;  %v348_v51 = vld [vmem:[%s6154_s23 + $0x280] sm:$0xff]  }
  0x7c   :  { %2397 = vmatprep.subr.bf16.mxu1 %v4442_v4  ;;  %v652_v4 = vunpack.c.l.s8.bf16 %v358_v57 }
  0x7d   :  { %v4461_v17 = vcombine.low %v620_v0, %v621_v1 }
  0x7e   :  { %2357 = vmatpush2.bf16.msra.mxu0 %v4409_v10  ;;  %v4462_v10 = vcombine.high %v620_v0, %v621_v1  ;;  %v4494_v12 = vcombine.high %v652_v4, %v653_v5  ;;  %v4493_v18 = vcombine.low %v652_v4, %v653_v5 }
  0x7f   :  { %2398 = vmatpush2.bf16.msra.mxu1 %v4441_v11  ;;  %2358 = vmatprep.subr.bf16.mxu0 %v4408_v53  ;;  %v618_v11 = vunpack.c.l.s8.bf16 %v324_v6  ;;  %v650_v53 = vunpack.c.l.s8.bf16 %v356_v52 }
  0x80   :  { %2399 = vmatprep.subr.bf16.mxu1 %v4440_v14  ;;  %v651_v14 = vunpack.c.h.s8.bf16 %v356_v52 }
  0x81   :  { %v4459_v28 = vcombine.low %v618_v11, %v619_v13 }
  0x82   :  { %2359 = vmatpush2.bf16.msra.mxu0 %v4407_v20  ;;  %v617_v20 = vunpack.c.h.s8.bf16 %v322_v15  ;;  %v4491_v29 = vcombine.low %v650_v53, %v651_v14  ;;  %v342_v15 = vld [vmem:[%s6154_s23 + $0x268] sm:$0xff]  }
  0x83   :  { %2400 = vmatpush2.bf16.msra.mxu1 %v4439_v22  ;;  %2360 = vmatprep.subr.bf16.mxu0 %v4406_v23  ;;  %v4460_v22 = vcombine.high %v618_v11, %v619_v13  ;;  %v4492_v23 = vcombine.high %v650_v53, %v651_v14 }
  0x84   :  { %2401 = vmatprep.subr.bf16.mxu1 %v4438_v25  ;;  %v649_v25 = vunpack.c.h.s8.bf16 %v354_v16  ;;  %v4458_v30 = vcombine.high %v616_v19, %v617_v20  ;;  %v4457_v39 = vcombine.low %v616_v19, %v617_v20  ;;  %v374_v16 = vld [vmem:[%s6154_s23 + $0x2e8] sm:$0xff]   ;;  %v636_v20 = vunpack.c.l.s8.bf16 %v342_v15 }
  0x86   :  { %2361 = vmatpush2.bf16.msra.mxu0 %v4405_v32  ;;  %v4490_v32 = vcombine.high %v648_v24, %v649_v25  ;;  %v4489_v40 = vcombine.low %v648_v24, %v649_v25  ;;  %v668_v24 = vunpack.c.l.s8.bf16 %v374_v16  ;;  %v669_v25 = vunpack.c.h.s8.bf16 %v374_v16  ;;  %v394_v16 = vld [vmem:[%s6154_s23 + $0x338] sm:$0xff]  }
  0x87   :  { %2402 = vmatpush2.bf16.msra.mxu1 %v4437_v33  ;;  %2362 = vmatprep.subr.bf16.mxu0 %v4404_v36  ;;  %v615_v33 = vunpack.c.h.s8.bf16 %v320_v26  ;;  %v318_v36 = vld [vmem:[%s6154_s23 + $0x208] sm:$0xff]   ;;  %v340_v26 = vld [vmem:[%s6154_s23 + $0x260] sm:$0xff]  }
  0x88   :  { %2403 = vmatprep.subr.bf16.mxu1 %v4436_v37  ;;  %v350_v37 = vld [vmem:[%s6154_s23 + $0x288] sm:$0xff]   ;;  %v612_v41 = vunpack.c.l.s8.bf16 %v318_v36  ;;  %v613_v42 = vunpack.c.h.s8.bf16 %v318_v36  ;;  %v338_v36 = vld [vmem:[%s6154_s23 + $0x258] sm:$0xff]  }
  0x89   :  { %v645_v48 = vunpack.c.h.s8.bf16 %v350_v37  ;;  %v4455_v54 = vcombine.low %v614_v31, %v615_v33 }
  0x8a   :  { %2363 = vmatpush2.bf16.msra.mxu0 %v4403_v45  ;;  %v4456_v45 = vcombine.high %v614_v31, %v615_v33  ;;  %v4454_v58 = vcombine.high %v612_v41, %v613_v42  ;;  %v4453_v0 = vcombine.low %v612_v41, %v613_v42  ;;  %v635_v31 = vunpack.c.h.s8.bf16 %v340_v26 }
  0x8b   :  { %2404 = vmatpush2.bf16.msra.mxu1 %v4435_v46  ;;  %2414 = vmatprep.subr.bf16.mxu0 %v4466_v47  ;;  %v4488_v46 = vcombine.high %v646_v34, %v647_v35  ;;  %v644_v47 = vunpack.c.l.s8.bf16 %v350_v37  ;;  %v4510_v33 = vcombine.high %v668_v24, %v669_v25  ;;  %v666_v34 = vunpack.c.l.s8.bf16 %v372_v27  ;;  %v370_v37 = vld [vmem:[%s6154_s23 + $0x2d8] sm:$0xff]  }
  0x8c   :  { %2455 = vmatprep.subr.bf16.mxu1 %v4498_v50  ;;  %v316_v50 = vld [vmem:[%s6154_s23 + $0x200] sm:$0xff]   ;;  %v667_v35 = vunpack.c.h.s8.bf16 %v372_v27  ;;  %v632_v42 = vunpack.c.l.s8.bf16 %v338_v36 }
  0x8d   :  { %2365 = vmatmul.mubr.bf16.vlgmr.msra.gmra.mxu0 %v171_v60  ;;  %v610_v56 = vunpack.c.l.s8.bf16 %v316_v50  ;;  %v611_v57 = vunpack.c.h.s8.bf16 %v316_v50  ;;  %v4486_v59 = vcombine.high %v644_v47, %v645_v48  ;;  %v642_v60 = vunpack.c.l.s8.bf16 %v348_v51  ;;  %v336_v50 = vld [vmem:[%s6154_s23 + $0x250] sm:$0xff]  }
  0x8e   :  { %2406 = vmatmul.mubr.bf16.vlgmr.msra.gmra.mxu1 %v173_v61  ;;  %2415 = vmatpush1.bf16.msra.mxu0 %v4465_v62  ;;  %v643_v61 = vunpack.c.h.s8.bf16 %v348_v51  ;;  %v346_v62 = vld [vmem:[%s6154_s23 + $0x278] sm:$0xff]   ;;  %v4485_v1 = vcombine.low %v644_v47, %v645_v48  ;;  %v664_v47 = vunpack.c.l.s8.bf16 %v370_v37  ;;  %v665_v48 = vunpack.c.h.s8.bf16 %v370_v37  ;;  %v368_v51 = vld [vmem:[%s6154_s23 + $0x2d0] sm:$0xff]  }
  0x8f   :  { %2456 = vmatpush1.bf16.msra.mxu1 %v4497_v63  ;;  %2416 = vmatprep.subr.bf16.mxu0 %v4464_v2  ;;  %v378_v63 = vld [vmem:[%s6154_s23 + $0x2f8] sm:$0xff]   ;;  %v4452_v2 = vcombine.high %v610_v56, %v611_v57  ;;  %v641_v5 = vunpack.c.h.s8.bf16 %v346_v62 }
  0x90   :  { %2457 = vmatprep.subr.bf16.mxu1 %v4496_v3  ;;  %2446 = vmatprep.mubr.bf16.mxu0 %v176_v21  ;;  %v640_v3 = vunpack.c.l.s8.bf16 %v346_v62  ;;  %v4484_v4 = vcombine.high %v642_v60, %v643_v61  ;;  %v672_v6 = vunpack.c.l.s8.bf16 %v378_v63  ;;  %v673_v52 = vunpack.c.h.s8.bf16 %v378_v63  ;;  %v344_v21 = vld [vmem:[%s6154_s23 + $0x270] sm:$0xff]   ;;  %v334_v62 = vld [vmem:[%s6154_s23 + $0x248] sm:$0xff]  }
  0x91   :  { %2487 = vmatprep.mubr.bf16.mxu1 %v178_v7  ;;  %v376_v7 = vld [vmem:[%s6154_s23 + $0x2f0] sm:$0xff]   ;;  %v639_v11 = vunpack.c.h.s8.bf16 %v344_v21  ;;  %v366_v63 = vld [vmem:[%s6154_s23 + $0x2c8] sm:$0xff]  }
  0x92   :  { %2417 = vmatpush1.bf16.msra.mxu0 %v4463_v8  ;;  %v4451_v8 = vcombine.low %v610_v56, %v611_v57  ;;  %v4514_v13 = vcombine.high %v672_v6, %v673_v52  ;;  %v670_v53 = vunpack.c.l.s8.bf16 %v376_v7  ;;  %v671_v14 = vunpack.c.h.s8.bf16 %v376_v7  ;;  %v364_v7 = vld [vmem:[%s6154_s23 + $0x2c0] sm:$0xff]  }
  0x93   :  { %2458 = vmatpush1.bf16.msra.mxu1 %v4495_v9  ;;  %2418 = vmatprep.subr.bf16.mxu0 %v4462_v10  ;;  %v4483_v9 = vcombine.low %v642_v60, %v643_v61  ;;  %v638_v10 = vunpack.c.l.s8.bf16 %v344_v21  ;;  %v630_v56 = vunpack.c.l.s8.bf16 %v336_v50  ;;  %v631_v57 = vunpack.c.h.s8.bf16 %v336_v50  ;;  %v332_v21 = vld [vmem:[%s6154_s23 + $0x240] sm:$0xff]  }
  0x94   :  { %2459 = vmatprep.subr.bf16.mxu1 %v4494_v12  ;;  %v4482_v12 = vcombine.high %v640_v3, %v641_v5  ;;  %v662_v60 = vunpack.c.l.s8.bf16 %v368_v51  ;;  %v663_v61 = vunpack.c.h.s8.bf16 %v368_v51  ;;  %v177_v50 = vpack.c.bf16 %v5057_v44, %v5057_v44 }
  0x95   :  { %v4480_v19 = vcombine.high %v638_v10, %v639_v11 }
  0x96   :  { %2419 = vmatpush1.bf16.msra.mxu0 %v4461_v17  ;;  %v4481_v17 = vcombine.low %v640_v3, %v641_v5  ;;  %v628_v3 = vunpack.c.l.s8.bf16 %v334_v62  ;;  %v629_v5 = vunpack.c.h.s8.bf16 %v334_v62 }
  0x97   :  { %2460 = vmatpush1.bf16.msra.mxu1 %v4493_v18  ;;  %2420 = vmatprep.subr.bf16.mxu0 %v4460_v22  ;;  %v4513_v18 = vcombine.low %v672_v6, %v673_v52  ;;  %v4512_v22 = vcombine.high %v670_v53, %v671_v14  ;;  %v660_v6 = vunpack.c.l.s8.bf16 %v366_v63  ;;  %v661_v52 = vunpack.c.h.s8.bf16 %v366_v63 }
  0x98   :  { %2461 = vmatprep.subr.bf16.mxu1 %v4492_v23  ;;  %v637_v23 = vunpack.c.h.s8.bf16 %v342_v15  ;;  %v659_v15 = vunpack.c.h.s8.bf16 %v364_v7 }
  0x9a   :  { %2421 = vmatpush1.bf16.msra.mxu0 %v4459_v28  ;;  %v4479_v28 = vcombine.low %v638_v10, %v639_v11  ;;  %v4503_v10 = vcombine.low %v662_v60, %v663_v61  ;;  %v626_v11 = vunpack.c.l.s8.bf16 %v332_v21 }
  0x9b   :  { %2462 = vmatpush1.bf16.msra.mxu1 %v4491_v29  ;;  %2422 = vmatprep.subr.bf16.mxu0 %v4458_v30  ;;  %v4511_v29 = vcombine.low %v670_v53, %v671_v14  ;;  %v634_v30 = vunpack.c.l.s8.bf16 %v340_v26  ;;  %v4502_v53 = vcombine.high %v660_v6, %v661_v52  ;;  %v658_v14 = vunpack.c.l.s8.bf16 %v364_v7 }
  0x9c   :  { %2463 = vmatprep.subr.bf16.mxu1 %v4490_v32  ;;  %v4478_v32 = vcombine.high %v636_v20, %v637_v23 }
  0x9d   :  { %v4476_v41 = vcombine.high %v634_v30, %v635_v31  ;;  %v4500_v27 = vcombine.high %v658_v14, %v659_v15 }
  0x9e   :  { %2423 = vmatpush1.bf16.msra.mxu0 %v4457_v39  ;;  %v4477_v39 = vcombine.low %v636_v20, %v637_v23  ;;  %v4501_v20 = vcombine.low %v660_v6, %v661_v52  ;;  %v689_v23 = vunpack.c.h.s8.bf16 %v394_v16  ;;  %v386_v6 = vld [vmem:[%s6154_s23 + $0x318] sm:$0xff]  }
  0x9f   :  { %2464 = vmatpush1.bf16.msra.mxu1 %v4489_v40  ;;  %2424 = vmatprep.subr.bf16.mxu0 %v4456_v45  ;;  %v4509_v40 = vcombine.low %v668_v24, %v669_v25  ;;  %v4508_v45 = vcombine.high %v666_v34, %v667_v35  ;;  %v418_v52 = vld [vmem:[%s6154_s23 + $0x398] sm:$0xff]  }
  0xa0   :  { %2465 = vmatprep.subr.bf16.mxu1 %v4488_v46  ;;  %v633_v46 = vunpack.c.h.s8.bf16 %v338_v36 }
  0xa2   :  { %2425 = vmatpush1.bf16.msra.mxu0 %v4455_v54  ;;  %v4475_v54 = vcombine.low %v634_v30, %v635_v31 }
  0xa3   :  { %2466 = vmatpush1.bf16.msra.mxu1 %v4487_v55  ;;  %2426 = vmatprep.subr.bf16.mxu0 %v4454_v58  ;;  %v4507_v55 = vcombine.low %v666_v34, %v667_v35  ;;  %v4474_v58 = vcombine.high %v632_v42, %v633_v46 }
  0xa4   :  { %2467 = vmatprep.subr.bf16.mxu1 %v4486_v59  ;;  %v4506_v59 = vcombine.high %v664_v47, %v665_v48 }
  0xa6   :  { %2427 = vmatpush1.bf16.msra.mxu0 %v4453_v0  ;;  %v4473_v0 = vcombine.low %v632_v42, %v633_v46  ;;  %v422_v42 = vld [vmem:[%s6154_s23 + $0x3a8] sm:$0xff]  }
  0xa7   :  { %2468 = vmatpush1.bf16.msra.mxu1 %v4485_v1  ;;  %2428 = vmatprep.subr.bf16.mxu0 %v4452_v2  ;;  %v4505_v1 = vcombine.low %v664_v47, %v665_v48  ;;  %v4472_v2 = vcombine.high %v630_v56, %v631_v57  ;;  %v175_v47 = vpack.c.bf16 %v5054_v43, %v5054_v43  ;;  %v420_v43 = vld [vmem:[%s6154_s23 + $0x3a0] sm:$0xff]  }
  0xa8   :  { %2469 = vmatprep.subr.bf16.mxu1 %v4484_v4  ;;  %v4504_v4 = vcombine.high %v662_v60, %v663_v61  ;;  %v388_v60 = vld [vmem:[%s6154_s23 + $0x320] sm:$0xff]  }
  0xaa   :  { %2429 = vmatpush1.bf16.msra.mxu0 %v4451_v8  ;;  %v57_v8 = vld [vmem:[%s6136_s0 + $0x18] sm:$0xff] }
  0xab   :  { %2470 = vmatpush1.bf16.msra.mxu1 %v4483_v9  ;;  %2430 = vmatprep.subr.bf16.mxu0 %v4482_v12  ;;  %v4471_v9 = vcombine.low %v630_v56, %v631_v57  ;;  %v627_v12 = vunpack.c.h.s8.bf16 %v332_v21  ;;  %v5167_v30 = vrot.slane %v57_v8, %v4889_v49  ;;  %v716_v56 = vunpack.c.l.s8.bf16 %v422_v42 }
  0xac   :  { %2471 = vmatprep.subr.bf16.mxu1 %v4514_v13  ;;  %v4470_v13 = vcombine.high %v628_v3, %v629_v5  ;;  %v717_v57 = vunpack.c.h.s8.bf16 %v422_v42 }
  0xad   :  { %v4468_v26 = vcombine.high %v626_v11, %v627_v12 }
  0xae   :  { %2431 = vmatpush2.bf16.msra.mxu0 %v4481_v17  ;;  %v426_v17 = vld [vmem:[%s6154_s23 + $0x3b8] sm:$0xff]   ;;  %v4557_v7 = vcombine.low %v716_v56, %v717_v57 }
  0xaf   :  { %2472 = vmatpush2.bf16.msra.mxu1 %v4513_v18  ;;  %2432 = vmatprep.subr.bf16.mxu0 %v4480_v19  ;;  %v115_v18 = vcombine.high %v57_v8, %v57_v8  ;;  %v4469_v19 = vcombine.low %v628_v3, %v629_v5  ;;  %v720_v24 = vunpack.c.l.s8.bf16 %v426_v17  ;;  %v721_v25 = vunpack.c.h.s8.bf16 %v426_v17 }
  0xb0   :  { %2473 = vmatprep.subr.bf16.mxu1 %v4512_v22  ;;  %v688_v22 = vunpack.c.l.s8.bf16 %v394_v16  ;;  %v683_v3 = vunpack.c.h.s8.bf16 %v388_v60  ;;  %v715_v5 = vunpack.c.h.s8.bf16 %v420_v43  ;;  %v680_v8 = vunpack.c.l.s8.bf16 %v386_v6 }
  0xb1   :  { %v5170_v31 = vrot.slane %v115_v18, %v4889_v49  ;;  %v4562_v35 = vcombine.high %v720_v24, %v721_v25  ;;  %v4561_v51 = vcombine.low %v720_v24, %v721_v25  ;;  %v382_v24 = vld [vmem:[%s6154_s23 + $0x308] sm:$0xff]  }
  0xb2   :  { %2433 = vmatpush2.bf16.msra.mxu0 %v4479_v28  ;;  %v392_v28 = vld [vmem:[%s6154_s23 + $0x330] sm:$0xff]   ;;  %v4530_v34 = vcombine.high %v688_v22, %v689_v23  ;;  %v4529_v48 = vcombine.low %v688_v22, %v689_v23  ;;  %v414_v25 = vld [vmem:[%s6154_s23 + $0x388] sm:$0xff]  }
  0xb3   :  { %2474 = vmatpush2.bf16.msra.mxu1 %v4511_v29  ;;  %2434 = vmatprep.subr.bf16.mxu0 %v4478_v32  ;;  %v424_v29 = vld [vmem:[%s6154_s23 + $0x3b0] sm:$0xff]   ;;  %v4467_v32 = vcombine.low %v626_v11, %v627_v12  ;;  %v686_v36 = vunpack.c.l.s8.bf16 %v392_v28  ;;  %v687_v37 = vunpack.c.h.s8.bf16 %v392_v28  ;;  %v131_v46 = vcombine.high %v5170_v31, %v5170_v31 }
  0xb4   :  { %2475 = vmatprep.subr.bf16.mxu1 %v4510_v33  ;;  %v4499_v33 = vcombine.low %v658_v14, %v659_v15  ;;  %v713_v11 = vunpack.c.h.s8.bf16 %v418_v52  ;;  %v416_v14 = vld [vmem:[%s6154_s23 + $0x390] sm:$0xff]   ;;  %v676_v28 = vunpack.c.l.s8.bf16 %v382_v24 }
  0xb5   :  { %v182_v61 = vpack.c.bf16 %v131_v46, %v131_v46  ;;  %v4527_v62 = vcombine.low %v686_v36, %v687_v37  ;;  %v710_v22 = vunpack.c.l.s8.bf16 %v416_v14  ;;  %v711_v23 = vunpack.c.h.s8.bf16 %v416_v14  ;;  %v436_v14 = vld [vmem:[%s6154_s23 + $0x3e0] sm:$0xff]  }
  0xb6   :  { %2435 = vmatpush2.bf16.msra.mxu0 %v4477_v39  ;;  %v718_v39 = vunpack.c.l.s8.bf16 %v424_v29 }
  0xb7   :  { %2476 = vmatpush2.bf16.msra.mxu1 %v4509_v40  ;;  %2436 = vmatprep.subr.bf16.mxu0 %v4476_v41  ;;  %v719_v40 = vunpack.c.h.s8.bf16 %v424_v29  ;;  %v390_v41 = vld [vmem:[%s6154_s23 + $0x328] sm:$0xff]   ;;  %v677_v29 = vunpack.c.h.s8.bf16 %v382_v24  ;;  %v402_v24 = vld [vmem:[%s6154_s23 + $0x358] sm:$0xff]  }
  0xb8   :  { %2477 = vmatprep.subr.bf16.mxu1 %v4508_v45  ;;  %v130_v45 = vcombine.high %v5167_v30, %v5167_v30 }
  0xb9   :  { %v4559_v63 = vcombine.low %v718_v39, %v719_v40 }
  0xba   :  { %2437 = vmatpush2.bf16.msra.mxu0 %v4475_v54  ;;  %v684_v54 = vunpack.c.l.s8.bf16 %v390_v41  ;;  %v180_v44 = vpack.c.bf16 %v130_v45, %v130_v45 }
  0xbb   :  { %2478 = vmatpush2.bf16.msra.mxu1 %v4507_v55  ;;  %2438 = vmatprep.subr.bf16.mxu0 %v4474_v58  ;;  %v685_v55 = vunpack.c.h.s8.bf16 %v390_v41  ;;  %v4528_v58 = vcombine.high %v686_v36, %v687_v37  ;;  %v380_v36 = vld [vmem:[%s6154_s23 + $0x300] sm:$0xff]   ;;  %v4518_v41 = vcombine.high %v676_v28, %v677_v29 }
  0xbc   :  { %2479 = vmatprep.subr.bf16.mxu1 %v4506_v59  ;;  %v4560_v59 = vcombine.high %v718_v39, %v719_v40  ;;  %v412_v37 = vld [vmem:[%s6154_s23 + $0x380] sm:$0xff]   ;;  %v4551_v40 = vcombine.low %v710_v22, %v711_v23  ;;  %v674_v45 = vunpack.c.l.s8.bf16 %v380_v36  ;;  %v675_v46 = vunpack.c.h.s8.bf16 %v380_v36  ;;  %v400_v36 = vld [vmem:[%s6154_s23 + $0x350] sm:$0xff]  }
  0xbd   :  { %v4525_v21 = vcombine.low %v684_v54, %v685_v55 }
  0xbe   :  { %2439 = vmatpush2.bf16.msra.mxu0 %v4473_v0  ;;  %v4526_v0 = vcombine.high %v684_v54, %v685_v55  ;;  %v4517_v54 = vcombine.low %v676_v28, %v677_v29  ;;  %v696_v28 = vunpack.c.l.s8.bf16 %v402_v24  ;;  %v697_v29 = vunpack.c.h.s8.bf16 %v402_v24 }
  0xbf   :  { %2480 = vmatpush2.bf16.msra.mxu1 %v4505_v1  ;;  %2440 = vmatprep.subr.bf16.mxu0 %v4472_v2  ;;  %v4558_v1 = vcombine.high %v716_v56, %v717_v57  ;;  %v682_v2 = vunpack.c.l.s8.bf16 %v388_v60  ;;  %v4516_v60 = vcombine.high %v674_v45, %v675_v46 }
  0xc0   :  { %2481 = vmatprep.subr.bf16.mxu1 %v4504_v4  ;;  %v714_v4 = vunpack.c.l.s8.bf16 %v420_v43 }
  0xc1   :  { %v4524_v12 = vcombine.high %v682_v2, %v683_v3  ;;  %v4523_v15 = vcombine.low %v682_v2, %v683_v3 }
  0xc2   :  { %2441 = vmatpush2.bf16.msra.mxu0 %v4471_v9  ;;  %v681_v9 = vunpack.c.h.s8.bf16 %v386_v6  ;;  %v4555_v16 = vcombine.low %v714_v4, %v715_v5  ;;  %v406_v6 = vld [vmem:[%s6154_s23 + $0x368] sm:$0xff]  }
  0xc3   :  { %2482 = vmatpush2.bf16.msra.mxu1 %v4503_v10  ;;  %2442 = vmatprep.subr.bf16.mxu0 %v4470_v13  ;;  %v712_v10 = vunpack.c.l.s8.bf16 %v418_v52  ;;  %v4556_v13 = vcombine.high %v714_v4, %v715_v5  ;;  %v438_v52 = vld [vmem:[%s6154_s23 + $0x3e8] sm:$0xff]  }
  0xc4   :  { %2483 = vmatprep.subr.bf16.mxu1 %v4502_v53  ;;  %v384_v53 = vld [vmem:[%s6154_s23 + $0x310] sm:$0xff]   ;;  %v4522_v17 = vcombine.high %v680_v8, %v681_v9 }
  0xc5   :  { %v4554_v18 = vcombine.high %v712_v10, %v713_v11 }
  0xc6   :  { %2443 = vmatpush2.bf16.msra.mxu0 %v4469_v19  ;;  %v678_v19 = vunpack.c.l.s8.bf16 %v384_v53 }
  0xc7   :  { %2484 = vmatpush2.bf16.msra.mxu1 %v4501_v20  ;;  %2444 = vmatprep.subr.bf16.mxu0 %v4468_v26  ;;  %v679_v20 = vunpack.c.h.s8.bf16 %v384_v53  ;;  %v4521_v26 = vcombine.low %v680_v8, %v681_v9  ;;  %v700_v8 = vunpack.c.l.s8.bf16 %v406_v6  ;;  %v701_v9 = vunpack.c.h.s8.bf16 %v406_v6  ;;  %v404_v53 = vld [vmem:[%s6154_s23 + $0x360] sm:$0xff]   ;;  %v458_v6 = vld [vmem:[%s6154_s23 + $0x438] sm:$0xff]  }
  0xc8   :  { %2485 = vmatprep.subr.bf16.mxu1 %v4500_v27  ;;  %v4553_v27 = vcombine.low %v712_v10, %v713_v11  ;;  %v732_v10 = vunpack.c.l.s8.bf16 %v438_v52  ;;  %v733_v11 = vunpack.c.h.s8.bf16 %v438_v52  ;;  %v480_v52 = vld [vmem:[%s6154_s23 + $0x490] sm:$0xff]  }
  0xc9   :  { %v4519_v39 = vcombine.low %v678_v19, %v679_v20 }
  0xca   :  { %2445 = vmatpush2.bf16.msra.mxu0 %v4467_v32  ;;  %v708_v32 = vunpack.c.l.s8.bf16 %v414_v25 }
  0xcb   :  { %2486 = vmatpush2.bf16.msra.mxu1 %v4499_v33  ;;  %2496 = vmatprep.subr.bf16.mxu0 %v4530_v34  ;;  %v709_v33 = vunpack.c.h.s8.bf16 %v414_v25  ;;  %v4520_v34 = vcombine.high %v678_v19, %v679_v20  ;;  %v698_v19 = vunpack.c.l.s8.bf16 %v404_v53  ;;  %v699_v20 = vunpack.c.h.s8.bf16 %v404_v53  ;;  %v434_v25 = vld [vmem:[%s6154_s23 + $0x3d8] sm:$0xff]  }
  0xcc   :  { %2537 = vmatprep.subr.bf16.mxu1 %v4562_v35  ;;  %v4552_v35 = vcombine.high %v710_v22, %v711_v23  ;;  %v730_v22 = vunpack.c.l.s8.bf16 %v436_v14  ;;  %v731_v23 = vunpack.c.h.s8.bf16 %v436_v14  ;;  %v775_v53 = vunpack.c.h.s8.bf16 %v480_v52  ;;  %v58_v14 = vld [vmem:[%s6136_s0 + $0x20] sm:$0x3f] }
  0xcd   :  { %2447 = vmatmul.mubr.bf16.vlgmr.msra.gmra.mxu0 %v175_v47  ;;  %v4550_v42 = vcombine.high %v708_v32, %v709_v33  ;;  %v706_v47 = vunpack.c.l.s8.bf16 %v412_v37  ;;  %v4549_v55 = vcombine.low %v708_v32, %v709_v33  ;;  %v728_v32 = vunpack.c.l.s8.bf16 %v434_v25 }
  0xce   :  { %2488 = vmatmul.mubr.bf16.vlgmr.msra.gmra.mxu1 %v177_v50  ;;  %2497 = vmatpush1.bf16.msra.mxu0 %v4529_v48  ;;  %v707_v48 = vunpack.c.h.s8.bf16 %v412_v37  ;;  %v410_v50 = vld [vmem:[%s6154_s23 + $0x378] sm:$0xff]   ;;  %v729_v33 = vunpack.c.h.s8.bf16 %v434_v25  ;;  %v432_v37 = vld [vmem:[%s6154_s23 + $0x3d0] sm:$0xff]  }
  0xcf   :  { %2538 = vmatpush1.bf16.msra.mxu1 %v4561_v51  ;;  %2498 = vmatprep.subr.bf16.mxu0 %v4528_v58  ;;  %v442_v51 = vld [vmem:[%s6154_s23 + $0x3f8] sm:$0xff]   ;;  %v704_v56 = vunpack.c.l.s8.bf16 %v410_v50  ;;  %v705_v57 = vunpack.c.h.s8.bf16 %v410_v50  ;;  %v398_v50 = vld [vmem:[%s6154_s23 + $0x348] sm:$0xff]  }
  0xd0   :  { %2539 = vmatprep.subr.bf16.mxu1 %v4560_v59  ;;  %2528 = vmatprep.mubr.bf16.mxu0 %v180_v44  ;;  %v736_v58 = vunpack.c.l.s8.bf16 %v442_v51  ;;  %v737_v59 = vunpack.c.h.s8.bf16 %v442_v51  ;;  %v4548_v43 = vcombine.high %v706_v47, %v707_v48  ;;  %v408_v44 = vld [vmem:[%s6154_s23 + $0x370] sm:$0xff]   ;;  %v430_v51 = vld [vmem:[%s6154_s23 + $0x3c8] sm:$0xff]  }
  0xd1   :  { %2569 = vmatprep.mubr.bf16.mxu1 %v182_v61  ;;  %v440_v61 = vld [vmem:[%s6154_s23 + $0x3f0] sm:$0xff]   ;;  %v702_v2 = vunpack.c.l.s8.bf16 %v408_v44  ;;  %v703_v3 = vunpack.c.h.s8.bf16 %v408_v44  ;;  %v396_v44 = vld [vmem:[%s6154_s23 + $0x340] sm:$0xff]  }
  0xd2   :  { %2499 = vmatpush1.bf16.msra.mxu0 %v4527_v62  ;;  %v4515_v62 = vcombine.low %v674_v45, %v675_v46  ;;  %v734_v4 = vunpack.c.l.s8.bf16 %v440_v61  ;;  %v735_v5 = vunpack.c.h.s8.bf16 %v440_v61  ;;  %v694_v45 = vunpack.c.l.s8.bf16 %v400_v36  ;;  %v428_v61 = vld [vmem:[%s6154_s23 + $0x3c0] sm:$0xff]  }
  0xd3   :  { %2540 = vmatpush1.bf16.msra.mxu1 %v4559_v63  ;;  %2500 = vmatprep.subr.bf16.mxu0 %v4526_v0  ;;  %v4547_v63 = vcombine.low %v706_v47, %v707_v48  ;;  %v4546_v0 = vcombine.high %v704_v56, %v705_v57  ;;  %v695_v46 = vunpack.c.h.s8.bf16 %v400_v36  ;;  %v726_v47 = vunpack.c.l.s8.bf16 %v432_v37 }
  0xd4   :  { %2541 = vmatprep.subr.bf16.mxu1 %v4558_v1  ;;  %v4578_v1 = vcombine.high %v736_v58, %v737_v59  ;;  %v727_v48 = vunpack.c.h.s8.bf16 %v432_v37 }
  0xd6   :  { %2501 = vmatpush1.bf16.msra.mxu0 %v4525_v21  ;;  %v4545_v21 = vcombine.low %v704_v56, %v705_v57  ;;  %v692_v56 = vunpack.c.l.s8.bf16 %v398_v50  ;;  %v693_v57 = vunpack.c.h.s8.bf16 %v398_v50 }
  0xd7   :  { %2542 = vmatpush1.bf16.msra.mxu1 %v4557_v7  ;;  %2502 = vmatprep.subr.bf16.mxu0 %v4524_v12  ;;  %v4577_v7 = vcombine.low %v736_v58, %v737_v59  ;;  %v4544_v12 = vcombine.high %v702_v2, %v703_v3  ;;  %v4536_v58 = vcombine.high %v694_v45, %v695_v46 }
  0xd8   :  { %2543 = vmatprep.subr.bf16.mxu1 %v4556_v13  ;;  %v4576_v13 = vcombine.high %v734_v4, %v735_v5  ;;  %v4568_v59 = vcombine.high %v726_v47, %v727_v48 }
  0xda   :  { %2503 = vmatpush1.bf16.msra.mxu0 %v4523_v15  ;;  %v4543_v15 = vcombine.low %v702_v2, %v703_v3  ;;  %v691_v3 = vunpack.c.h.s8.bf16 %v396_v44 }
  0xdb   :  { %2544 = vmatpush1.bf16.msra.mxu1 %v4555_v16  ;;  %2504 = vmatprep.subr.bf16.mxu0 %v4522_v17  ;;  %v4575_v16 = vcombine.low %v734_v4, %v735_v5  ;;  %v4542_v17 = vcombine.high %v700_v8, %v701_v9  ;;  %v722_v4 = vunpack.c.l.s8.bf16 %v428_v61  ;;  %v723_v5 = vunpack.c.h.s8.bf16 %v428_v61 }
  0xdc   :  { %2545 = vmatprep.subr.bf16.mxu1 %v4554_v18  ;;  %v4574_v18 = vcombine.high %v732_v10, %v733_v11 }
  0xde   :  { %2505 = vmatpush1.bf16.msra.mxu0 %v4521_v26  ;;  %v4541_v26 = vcombine.low %v700_v8, %v701_v9  ;;  %v752_v8 = vunpack.c.l.s8.bf16 %v458_v6  ;;  %v753_v9 = vunpack.c.h.s8.bf16 %v458_v6 }
  0xdf   :  { %2546 = vmatpush1.bf16.msra.mxu1 %v4553_v27  ;;  %2506 = vmatprep.subr.bf16.mxu0 %v4520_v34  ;;  %v4573_v27 = vcombine.low %v732_v10, %v733_v11  ;;  %v4540_v34 = vcombine.high %v698_v19, %v699_v20  ;;  %v4564_v11 = vcombine.high %v722_v4, %v723_v5 }
  0xe0   :  { %2547 = vmatprep.subr.bf16.mxu1 %v4552_v35  ;;  %v4572_v35 = vcombine.high %v730_v22, %v731_v23 }
  0xe2   :  { %2507 = vmatpush1.bf16.msra.mxu0 %v4519_v39  ;;  %v4539_v39 = vcombine.low %v698_v19, %v699_v20  ;;  %v4594_v19 = vcombine.high %v752_v8, %v753_v9 }
  0xe3   :  { %2548 = vmatpush1.bf16.msra.mxu1 %v4551_v40  ;;  %2508 = vmatprep.subr.bf16.mxu0 %v4518_v41  ;;  %v4571_v40 = vcombine.low %v730_v22, %v731_v23  ;;  %v4538_v41 = vcombine.high %v696_v28, %v697_v29  ;;  %v454_v23 = vld [vmem:[%s6154_s23 + $0x428] sm:$0xff]  }
  0xe4   :  { %2549 = vmatprep.subr.bf16.mxu1 %v4550_v42  ;;  %v4570_v42 = vcombine.high %v728_v32, %v729_v33 }
  0xe6   :  { %2509 = vmatpush1.bf16.msra.mxu0 %v4517_v54  ;;  %v4537_v54 = vcombine.low %v696_v28, %v697_v29  ;;  %v179_v29 = vpack.c.bf16 %v5167_v30, %v5167_v30 }
  0xe7   :  { %2550 = vmatpush1.bf16.msra.mxu1 %v4549_v55  ;;  %2510 = vmatprep.subr.bf16.mxu0 %v4516_v60  ;;  %v4569_v55 = vcombine.low %v728_v32, %v729_v33  ;;  %v724_v60 = vunpack.c.l.s8.bf16 %v430_v51  ;;  %v181_v32 = vpack.c.bf16 %v5170_v31, %v5170_v31  ;;  %v4593_v33 = vcombine.low %v752_v8, %v753_v9 }
  0xe8   :  { %2551 = vmatprep.subr.bf16.mxu1 %v4548_v43  ;;  %v725_v43 = vunpack.c.h.s8.bf16 %v430_v51  ;;  %v132_v31 = vcombine.high %v58_v14, %v58_v14 }
  0xea   :  { %2511 = vmatpush1.bf16.msra.mxu0 %v4515_v62  ;;  %v4535_v62 = vcombine.low %v694_v45, %v695_v46  ;;  %v4566_v2 = vcombine.high %v724_v60, %v725_v43 }
  0xeb   :  { %2552 = vmatpush1.bf16.msra.mxu1 %v4547_v63  ;;  %2512 = vmatprep.subr.bf16.mxu0 %v4546_v0  ;;  %v4567_v63 = vcombine.low %v726_v47, %v727_v48  ;;  %v4534_v0 = vcombine.high %v692_v56, %v693_v57 }
  0xec   :  { %2553 = vmatprep.subr.bf16.mxu1 %v4578_v1  ;;  %v690_v1 = vunpack.c.l.s8.bf16 %v396_v44  ;;  %v2675_v44 = vld [vmem:[%s6137_s4 + $0x8] sm:$0xff] }
  0xee   :  { %2513 = vmatpush2.bf16.msra.mxu0 %v4545_v21  ;;  %v4533_v21 = vcombine.low %v692_v56, %v693_v57  ;;  %v4532_v10 = vcombine.high %v690_v1, %v691_v3 }
  0xef   :  { %2554 = vmatpush2.bf16.msra.mxu1 %v4577_v7  ;;  %2514 = vmatprep.subr.bf16.mxu0 %v4544_v12  ;;  %v4565_v7 = vcombine.low %v724_v60, %v725_v43  ;;  %v456_v12 = vld [vmem:[%s6154_s23 + $0x430] sm:$0xff]   ;;  %v450_v60 = vld [vmem:[%s6154_s23 + $0x418] sm:$0xff]   ;;  %v4725_v43 = vmov 0  }
  0xf0   :  { %2555 = vmatprep.subr.bf16.mxu1 %v4576_v13  ;;  %v774_v13 = vunpack.c.l.s8.bf16 %v480_v52  ;;  %v750_v20 = vunpack.c.l.s8.bf16 %v456_v12  ;;  %v751_v22 = vunpack.c.h.s8.bf16 %v456_v12  ;;  %v2674_v52 = vld [vmem:[%s6137_s4] sm:$0xff] }
  0xf2   :  { %2515 = vmatpush2.bf16.msra.mxu0 %v4543_v15  ;;  %v478_v15 = vld [vmem:[%s6154_s23 + $0x488] sm:$0xff]   ;;  %v4616_v24 = vcombine.high %v774_v13, %v775_v53  ;;  %v4615_v36 = vcombine.low %v774_v13, %v775_v53  ;;  %v4592_v37 = vcombine.high %v750_v20, %v751_v22  ;;  %v4591_v48 = vcombine.low %v750_v20, %v751_v22 }
  0xf3   :  { %2556 = vmatpush2.bf16.msra.mxu1 %v4575_v16  ;;  %2516 = vmatprep.subr.bf16.mxu0 %v4542_v17  ;;  %v5280_v16 = vrot.slane %v58_v14, %v4889_v49  ;;  %v4531_v17 = vcombine.low %v690_v1, %v691_v3  ;;  %v772_v25 = vunpack.c.l.s8.bf16 %v478_v15  ;;  %v2677_v53 = vunpack.c.l.s8.bf16 %v2675_v44  ;;  %v446_v14 = vld [vmem:[%s6154_s23 + $0x408] sm:$0xff]  }
  0xf4   :  { %2557 = vmatprep.subr.bf16.mxu1 %v4574_v18  ;;  %v4563_v18 = vcombine.low %v722_v4, %v723_v5  ;;  %v744_v4 = vunpack.c.l.s8.bf16 %v450_v60  ;;  %v745_v5 = vunpack.c.h.s8.bf16 %v450_v60  ;;  %v740_v20 = vunpack.c.l.s8.bf16 %v446_v14 }
  0xf5   :  { %v147_v28 = vcombine.high %v5280_v16, %v5280_v16  ;;  %v741_v22 = vunpack.c.h.s8.bf16 %v446_v14 }
  0xf6   :  { %2517 = vmatpush2.bf16.msra.mxu0 %v4541_v26  ;;  %v773_v26 = vunpack.c.h.s8.bf16 %v478_v15  ;;  %v4585_v15 = vcombine.low %v744_v4, %v745_v5 }
  0xf7   :  { %2558 = vmatpush2.bf16.msra.mxu1 %v4573_v27  ;;  %2518 = vmatprep.subr.bf16.mxu0 %v4540_v34  ;;  %v476_v27 = vld [vmem:[%s6154_s23 + $0x480] sm:$0xff]   ;;  %v748_v34 = vunpack.c.l.s8.bf16 %v454_v23  ;;  %v184_v30 = vpack.c.bf16 %v147_v28, %v147_v28 }
  0xf8   :  { %2559 = vmatprep.subr.bf16.mxu1 %v4572_v35  ;;  %v749_v35 = vunpack.c.h.s8.bf16 %v454_v23  ;;  %v4613_v50 = vcombine.low %v772_v25, %v773_v26  ;;  %v444_v23 = vld [vmem:[%s6154_s23 + $0x400] sm:$0xff]  }
  0xf9   :  { %v739_v28 = vunpack.c.h.s8.bf16 %v444_v23 }
  0xfa   :  { %2519 = vmatpush2.bf16.msra.mxu0 %v4539_v39  ;;  %v4614_v39 = vcombine.high %v772_v25, %v773_v26  ;;  %v4582_v26 = vcombine.high %v740_v20, %v741_v22 }
  0xfb   :  { %2560 = vmatpush2.bf16.msra.mxu1 %v4571_v40  ;;  %2520 = vmatprep.subr.bf16.mxu0 %v4538_v41  ;;  %v770_v40 = vunpack.c.l.s8.bf16 %v476_v27  ;;  %v771_v41 = vunpack.c.h.s8.bf16 %v476_v27  ;;  %v738_v27 = vunpack.c.l.s8.bf16 %v444_v23 }
  0xfc   :  { %2561 = vmatprep.subr.bf16.mxu1 %v4570_v42  ;;  %v452_v42 = vld [vmem:[%s6154_s23 + $0x420] sm:$0xff]  }
  0xfd   :  { %v746_v56 = vunpack.c.l.s8.bf16 %v452_v42  ;;  %v747_v57 = vunpack.c.h.s8.bf16 %v452_v42  ;;  %v4611_v1 = vcombine.low %v770_v40, %v771_v41  ;;  %v470_v42 = vld [vmem:[%s6154_s23 + $0x468] sm:$0xff]  }
  0xfe   :  { %2521 = vmatpush2.bf16.msra.mxu0 %v4537_v54 }
  0xff   :  { %2562 = vmatpush2.bf16.msra.mxu1 %v4569_v55  ;;  %2522 = vmatprep.subr.bf16.mxu0 %v4536_v58  ;;  %v4590_v55 = vcombine.high %v748_v34, %v749_v35  ;;  %v4612_v58 = vcombine.high %v770_v40, %v771_v41  ;;  %v4588_v3 = vcombine.high %v746_v56, %v747_v57 }
 0x100   :  { %2563 = vmatprep.subr.bf16.mxu1 %v4568_v59  ;;  %v4587_v9 = vcombine.low %v746_v56, %v747_v57  ;;  %v466_v56 = vld [vmem:[%s6154_s23 + $0x458] sm:$0xff]  }
 0x101   :  { %v760_v60 = vunpack.c.l.s8.bf16 %v466_v56 }
 0x102   :  { %2523 = vmatpush2.bf16.msra.mxu0 %v4535_v62 }
 0x103   :  { %2564 = vmatpush2.bf16.msra.mxu1 %v4567_v63  ;;  %2524 = vmatprep.subr.bf16.mxu0 %v4534_v0  ;;  %v146_v63 = vrot.slane %v132_v31, %v4889_v49  ;;  %v4589_v0 = vcombine.low %v748_v34, %v749_v35  ;;  %v765_v31 = vunpack.c.h.s8.bf16 %v470_v42 }
 0x104   :  { %2565 = vmatprep.subr.bf16.mxu1 %v4566_v2 }
 0x105   :  { %v185_v8 = vpack.c.bf16 %v146_v63, %v146_v63 }
 0x106   :  { %2525 = vmatpush2.bf16.msra.mxu0 %v4533_v21  ;;  %v2679_v21 = vunpack.c.h.s8.bf16 %v2675_v44  ;;  %v464_v44 = vld [vmem:[%s6154_s23 + $0x450] sm:$0xff]  }
 0x107   :  { %2566 = vmatpush2.bf16.msra.mxu1 %v4565_v7  ;;  %2526 = vmatprep.subr.bf16.mxu0 %v4532_v10  ;;  %v448_v7 = vld [vmem:[%s6154_s23 + $0x410] sm:$0xff]   ;;  %v2678_v10 = vunpack.c.h.s8.bf16 %v2674_v52  ;;  %v758_v63 = vunpack.c.l.s8.bf16 %v464_v44 }
 0x108   :  { %2567 = vmatprep.subr.bf16.mxu1 %v4564_v11  ;;  %v4586_v11 = vcombine.high %v744_v4, %v745_v5  ;;  %v742_v12 = vunpack.c.l.s8.bf16 %v448_v7  ;;  %v743_v13 = vunpack.c.h.s8.bf16 %v448_v7 }
 0x10a   :  { %2527 = vmatpush2.bf16.msra.mxu0 %v4531_v17  ;;  %v2676_v17 = vunpack.c.l.s8.bf16 %v2674_v52  ;;  %v4583_v25 = vcombine.low %v742_v12, %v743_v13 }
 0x10b   :  { %2568 = vmatpush2.bf16.msra.mxu1 %v4563_v18  ;;  %2578 = vmatprep.subr.bf16.mxu0 %v4594_v19  ;;  %v186_v18 = vld [vmem:[%s6138_s1] sm:$0x3]  ;;  %v4584_v19 = vcombine.high %v742_v12, %v743_v13  ;;  %v183_v12 = vpack.c.bf16 %v5280_v16, %v5280_v16  ;;  %v2766_v16 = vld [vmem:[%s6139_s7 + $0x38] sm:$0xff] }
 0x10c   :  { %2629 = vmatprep.subr.bf16.mxu1 %v4616_v24  ;;  %v187_v24 = vpack.c.bf16 %v186_v18, %v186_v18 }
 0x10d   :  { %v2284_v45 = vpop.f32.mrf.mxu0  ;;  %2529 = vmatmul.mubr.bf16.vlgmr.msra.gmra.mxu0 %v179_v29  ;;  %v474_v29 = vld [vmem:[%s6154_s23 + $0x478] sm:$0xff]  }
 0x10e   :  { %v2325_v46 = vpop.f32.mrf.mxu1  ;;  %2570 = vmatmul.mubr.bf16.vlgmr.msra.gmra.mxu1 %v181_v32  ;;  %2579 = vmatpush1.bf16.msra.mxu0 %v4593_v33  ;;  %v4581_v32 = vcombine.low %v740_v20, %v741_v22  ;;  %v4580_v33 = vcombine.high %v738_v27, %v739_v28  ;;  %v768_v34 = vunpack.c.l.s8.bf16 %v474_v29  ;;  %v769_v35 = vunpack.c.h.s8.bf16 %v474_v29 }
 0x10f   :  { %v5297_v47 = vadd.f32 %v2325_v46, %v2284_v45  ;;  %2630 = vmatpush1.bf16.msra.mxu1 %v4615_v36  ;;  %v2286_v51 = vpop.f32.mrf.mxu0  ;;  %2580 = vmatprep.subr.bf16.mxu0 %v4592_v37  ;;  %v472_v36 = vld [vmem:[%s6154_s23 + $0x470] sm:$0xff]   ;;  %v4579_v37 = vcombine.low %v738_v27, %v739_v28  ;;  %v764_v46 = vunpack.c.l.s8.bf16 %v470_v42  ;;  %v2788_v28 = vunpack.c.l.s8.bf16 %v2766_v16 }
 0x110   :  { %v2327_v54 = vpop.f32.mrf.mxu1  ;;  %2631 = vmatprep.subr.bf16.mxu1 %v4614_v39  ;;  %2651 = vmatprep.mubr.bf16.mxu1 %v4725_v43  ;;  %v4610_v39 = vcombine.high %v768_v34, %v769_v35  ;;  %v766_v40 = vunpack.c.l.s8.bf16 %v472_v36  ;;  %v767_v41 = vunpack.c.h.s8.bf16 %v472_v36  ;;  %v2762_v36 = vld [vmem:[%s6139_s7 + $0x18] sm:$0xff] }
 0x111   :  { %v5299_v59 = vadd.f32 %v2327_v54, %v2286_v51  ;;  %2610 = vmatprep.mubr.bf16.mxu0 %v184_v30  ;;  %v2288_v61 = vpop.f32.mrf.mxu0  ;;  %v4609_v30 = vcombine.low %v768_v34, %v769_v35  ;;  %v4606_v51 = vcombine.high %v764_v46, %v765_v31  ;;  %v4605_v57 = vcombine.low %v764_v46, %v765_v31  ;;  %v2759_v31 = vld [vmem:[%s6139_s7] sm:$0xff] }
 0x112   :  { %v2329_v62 = vpop.f32.mrf.mxu1  ;;  %2581 = vmatpush1.bf16.msra.mxu0 %v4591_v48  ;;  %v4608_v45 = vcombine.high %v766_v40, %v767_v41  ;;  %v468_v48 = vld [vmem:[%s6154_s23 + $0x460] sm:$0xff]   ;;  %v2780_v42 = vunpack.c.l.s8.bf16 %v2762_v36 }
 0x113   :  { %2632 = vmatpush1.bf16.msra.mxu1 %v4613_v50  ;;  %v2289_v2 = vpop.f32.mrf.mxu0  ;;  %2582 = vmatprep.subr.bf16.mxu0 %v4590_v55  ;;  %v4607_v50 = vcombine.low %v766_v40, %v767_v41  ;;  %v762_v54 = vunpack.c.l.s8.bf16 %v468_v48  ;;  %v763_v55 = vunpack.c.h.s8.bf16 %v468_v48  ;;  %v2761_v40 = vld [vmem:[%s6139_s7 + $0x10] sm:$0xff]  ;;  %v2777_v48 = vunpack.c.h.s8.bf16 %v2759_v31 }
 0x114   :  { %v2330_v6 = vpop.f32.mrf.mxu1  ;;  %2633 = vmatprep.subr.bf16.mxu1 %v4612_v58  ;;  %v2781_v41 = vunpack.c.h.s8.bf16 %v2761_v40 }
 0x115   :  { %v4604_v58 = vcombine.high %v762_v54, %v763_v55  ;;  %v4603_v61 = vcombine.low %v762_v54, %v763_v55  ;;  %v460_v6 = vld [vmem:[%s6154_s23 + $0x440] sm:$0xff]   ;;  %v2775_v54 = vunpack.c.l.s8.bf16 %v2759_v31 }
 0x116   :  { %2583 = vmatpush1.bf16.msra.mxu0 %v4589_v0  ;;  %v759_v0 = vunpack.c.h.s8.bf16 %v464_v44  ;;  %v754_v7 = vunpack.c.l.s8.bf16 %v460_v6 }
 0x117   :  { %2634 = vmatpush1.bf16.msra.mxu1 %v4611_v1  ;;  %2584 = vmatprep.subr.bf16.mxu0 %v4588_v3  ;;  %v462_v1 = vld [vmem:[%s6154_s23 + $0x448] sm:$0xff]  }
 0x118   :  { %2696 = vmatprep.subr.bf16.mxu1 %v2679_v21  ;;  %v4600_v3 = vcombine.high %v758_v63, %v759_v0  ;;  %v756_v4 = vunpack.c.l.s8.bf16 %v462_v1  ;;  %v757_v5 = vunpack.c.h.s8.bf16 %v462_v1  ;;  %v4599_v52 = vcombine.low %v758_v63, %v759_v0  ;;  %v2770_v1 = vld [vmem:[%s6139_s7 + $0x58] sm:$0xff] }
 0x11a   :  { %4617 = vmatmul.mubr.msk.bf16.vlgmr.msra.gmra.mxu1 %vm2246_vm0, %v185_v8  ;;  %2585 = vmatpush1.bf16.msra.mxu0 %v4587_v9  ;;  %v4598_v21 = vcombine.high %v756_v4, %v757_v5  ;;  %v755_v8 = vunpack.c.h.s8.bf16 %v460_v6  ;;  %v4597_v9 = vcombine.low %v756_v4, %v757_v5  ;;  %v2798_v4 = vunpack.c.h.s8.bf16 %v2770_v1  ;;  %v2769_v5 = vld [vmem:[%s6139_s7 + $0x50] sm:$0xff] }
 0x11b   :  { %2697 = vmatpush1.bf16.msra.mxu1 %v2678_v10  ;;  %2586 = vmatprep.subr.bf16.mxu0 %v4586_v11 }
 0x11c   :  { %2698 = vmatprep.subr.bf16.mxu1 %v2677_v53  ;;  %2716 = vmatprep.mubr.bf16.mxu1 %v4725_v43  ;;  %v761_v43 = vunpack.c.h.s8.bf16 %v466_v56  ;;  %v4596_v10 = vcombine.high %v754_v7, %v755_v8  ;;  %v4595_v11 = vcombine.low %v754_v7, %v755_v8  ;;  %v2773_v56 = vld [vmem:[%s6139_s7 + $0x70] sm:$0xff] }
 0x11e   :  { %2587 = vmatpush1.bf16.msra.mxu0 %v4585_v15  ;;  %v4602_v62 = vcombine.high %v760_v60, %v761_v43  ;;  %v4601_v2 = vcombine.low %v760_v60, %v761_v43  ;;  %v2772_v60 = vld [vmem:[%s6139_s7 + $0x68] sm:$0xff]  ;;  %v2803_v43 = vunpack.c.l.s8.bf16 %v2773_v56 }
 0x11f   :  { %2699 = vmatpush1.bf16.msra.mxu1 %v2676_v17  ;;  %2588 = vmatprep.subr.bf16.mxu0 %v4584_v19  ;;  %v2802_v44 = vunpack.c.h.s8.bf16 %v2772_v60  ;;  %v2800_v63 = vunpack.c.l.s8.bf16 %v2772_v60 }
 0x122   :  { %4618 = vmatmul.mubr.msk.bf16.vlgmr.msra.gmra.mxu1 %vm2680_vm1, %v187_v24  ;;  %2589 = vmatpush1.bf16.msra.mxu0 %v4583_v25 }
 0x123   :  { %2590 = vmatprep.subr.bf16.mxu0 %v4582_v26  ;;  %v2790_v26 = vunpack.c.h.s8.bf16 %v2766_v16 }
 0x125   :  { %2807 = vmatprep.subr.bf16.mxu1 %v2790_v26 }
 0x126   :  { %2591 = vmatpush1.bf16.msra.mxu0 %v4581_v32 }
 0x127   :  { %2592 = vmatprep.subr.bf16.mxu0 %v4580_v33  ;;  %v2763_v33 = vld [vmem:[%s6139_s7 + $0x20] sm:$0xff] }
 0x128   :  { %v2785_v34 = vunpack.c.h.s8.bf16 %v2763_v33 }
 0x12a   :  { %2593 = vmatpush1.bf16.msra.mxu0 %v4579_v37  ;;  %v2783_v37 = vunpack.c.l.s8.bf16 %v2763_v33 }
 0x12b   :  { %2594 = vmatprep.subr.bf16.mxu0 %v4610_v39  ;;  %v2782_v39 = vunpack.c.h.s8.bf16 %v2762_v36 }
 0x12e   :  { %2595 = vmatpush2.bf16.msra.mxu0 %v4609_v30  ;;  %v2760_v30 = vld [vmem:[%s6139_s7 + $0x8] sm:$0xff] }
 0x12f   :  { %2596 = vmatprep.subr.bf16.mxu0 %v4608_v45  ;;  %v2779_v45 = vunpack.c.l.s8.bf16 %v2761_v40  ;;  %v2778_v46 = vunpack.c.h.s8.bf16 %v2760_v30 }
 0x132   :  { %2597 = vmatpush2.bf16.msra.mxu0 %v4607_v50  ;;  %v2776_v50 = vunpack.c.l.s8.bf16 %v2760_v30 }
 0x133   :  { %2598 = vmatprep.subr.bf16.mxu0 %v4606_v51  ;;  %v2774_v51 = vld [vmem:[%s6139_s7 + $0x78] sm:$0xff] }
 0x134   :  { %v2806_v55 = vunpack.c.h.s8.bf16 %v2774_v51 }
 0x136   :  { %2599 = vmatpush2.bf16.msra.mxu0 %v4605_v57  ;;  %v2805_v57 = vunpack.c.h.s8.bf16 %v2773_v56 }
 0x137   :  { %2600 = vmatprep.subr.bf16.mxu0 %v4604_v58  ;;  %v2804_v58 = vunpack.c.l.s8.bf16 %v2774_v51 }
 0x13a   :  { %2601 = vmatpush2.bf16.msra.mxu0 %v4603_v61  ;;  %v2771_v61 = vld [vmem:[%s6139_s7 + $0x60] sm:$0xff] }
 0x13b   :  { %2602 = vmatprep.subr.bf16.mxu0 %v4602_v62  ;;  %v2801_v62 = vunpack.c.h.s8.bf16 %v2771_v61  ;;  %v2799_v0 = vunpack.c.l.s8.bf16 %v2771_v61 }
 0x13e   :  { %2603 = vmatpush2.bf16.msra.mxu0 %v4601_v2 }
 0x13f   :  { %2604 = vmatprep.subr.bf16.mxu0 %v4600_v3 }
 0x142   :  { %2605 = vmatpush2.bf16.msra.mxu0 %v4599_v52  ;;  %v2797_v52 = vunpack.c.h.s8.bf16 %v2769_v5 }
 0x143   :  { %2606 = vmatprep.subr.bf16.mxu0 %v4598_v21 }
 0x146   :  { %2607 = vmatpush2.bf16.msra.mxu0 %v4597_v9 }
 0x147   :  { %2608 = vmatprep.subr.bf16.mxu0 %v4596_v10 }
 0x14a   :  { %2609 = vmatpush2.bf16.msra.mxu0 %v4595_v11 }
 0x14d   :  { %v2366_v13 = vpop.f32.mrf.mxu0  ;;  %2611 = vmatmul.mubr.bf16.vlgmr.msra.gmra.mxu0 %v183_v12  ;;  %v2796_v12 = vunpack.c.l.s8.bf16 %v2770_v1 }
 0x14e   :  { %v2407_v53 = vpop.f32.mrf.mxu1  ;;  %v2367_v14 = vadd.f32 %v2366_v13, %v5297_v47  ;;  %v2765_v47 = vld [vmem:[%s6139_s7 + $0x30] sm:$0xff] }
 0x14f   :  { %v2368_v15 = vpop.f32.mrf.mxu0  ;;  %v2789_v27 = vunpack.c.h.s8.bf16 %v2765_v47  ;;  %v2787_v29 = vunpack.c.l.s8.bf16 %v2765_v47 }
 0x150   :  { %v2409_v17 = vpop.f32.mrf.mxu1  ;;  %v2369_v18 = vadd.f32 %v2368_v15, %v5299_v59  ;;  %v5351_v19 = vadd.f32 %v2407_v53, %v2367_v14  ;;  %v2764_v59 = vld [vmem:[%s6139_s7 + $0x28] sm:$0xff]  ;;  %v2795_v53 = vunpack.c.l.s8.bf16 %v2769_v5 }
 0x151   :  { %v2370_v20 = vpop.f32.mrf.mxu0  ;;  %2808 = vmatpush1.bf16.msra.mxu1 %v2789_v27  ;;  %v2786_v32 = vunpack.c.h.s8.bf16 %v2764_v59  ;;  %v2784_v35 = vunpack.c.l.s8.bf16 %v2764_v59  ;;  %v2885_v27 = vld [vmem:[%s6140_s10 + $0x28] sm:$0xff] }
 0x152   :  { %v2411_v22 = vpop.f32.mrf.mxu1  ;;  %v5353_v23 = vadd.f32 %v2409_v17, %v2369_v18  ;;  %2809 = vmatprep.subr.bf16.mxu1 %v2788_v28  ;;  %v2768_v17 = vld [vmem:[%s6139_s7 + $0x48] sm:$0xff]  ;;  %v2907_v59 = vunpack.c.h.s8.bf16 %v2885_v27  ;;  %v2905_v33 = vunpack.c.l.s8.bf16 %v2885_v27 }
 0x153   :  { %v2371_v24 = vpop.f32.mrf.mxu0  ;;  %v2794_v18 = vunpack.c.h.s8.bf16 %v2768_v17  ;;  %v2792_v22 = vunpack.c.l.s8.bf16 %v2768_v17 }
 0x154   :  { %v2412_v25 = vpop.f32.mrf.mxu1  ;;  %v2887_v24 = vld [vmem:[%s6140_s10 + $0x38] sm:$0xff] }
 0x155   :  { %2810 = vmatpush1.bf16.msra.mxu1 %v2787_v29  ;;  %v2886_v25 = vld [vmem:[%s6140_s10 + $0x30] sm:$0xff]  ;;  %v2911_v16 = vunpack.c.h.s8.bf16 %v2887_v24  ;;  %v2909_v26 = vunpack.c.l.s8.bf16 %v2887_v24  ;;  %v2884_v29 = vld [vmem:[%s6140_s10 + $0x20] sm:$0xff] }
 0x156   :  { %2811 = vmatprep.subr.bf16.mxu1 %v2786_v32  ;;  %v2910_v47 = vunpack.c.h.s8.bf16 %v2886_v25  ;;  %v2908_v28 = vunpack.c.l.s8.bf16 %v2886_v25  ;;  %v2906_v32 = vunpack.c.h.s8.bf16 %v2884_v29  ;;  %v2660_v24 = vld [vmem:[%s6142_s3] sm:$0x3]  ;;  %v5466_v25 = vsub.s32 1, %v4880_v38 }
 0x157   :  { %2928 = vmatprep.subr.bf16.mxu0 %v2911_v16 }
 0x158   :  { %2929 = vmatpush1.bf16.msra.mxu0 %v2910_v47 }
 0x159   :  { %2812 = vmatpush1.bf16.msra.mxu1 %v2785_v34  ;;  %2930 = vmatprep.subr.bf16.mxu0 %v2909_v26  ;;  %v2883_v34 = vld [vmem:[%s6140_s10 + $0x18] sm:$0xff] }
 0x15a   :  { %2813 = vmatprep.subr.bf16.mxu1 %v2784_v35  ;;  %v2904_v35 = vunpack.c.l.s8.bf16 %v2884_v29  ;;  %v2903_v36 = vunpack.c.h.s8.bf16 %v2883_v34  ;;  %v2901_v40 = vunpack.c.l.s8.bf16 %v2883_v34 }
 0x15c   :  { %2931 = vmatpush1.bf16.msra.mxu0 %v2908_v28 }
 0x15d   :  { %2814 = vmatpush1.bf16.msra.mxu1 %v2783_v37  ;;  %2932 = vmatprep.subr.bf16.mxu0 %v2907_v59  ;;  %v2882_v37 = vld [vmem:[%s6140_s10 + $0x10] sm:$0xff] }
 0x15e   :  { %2815 = vmatprep.subr.bf16.mxu1 %v2782_v39  ;;  %v2902_v39 = vunpack.c.h.s8.bf16 %v2882_v37 }
 0x160   :  { %2933 = vmatpush1.bf16.msra.mxu0 %v2906_v32 }
 0x161   :  { %2816 = vmatpush1.bf16.msra.mxu1 %v2781_v41  ;;  %2934 = vmatprep.subr.bf16.mxu0 %v2905_v33  ;;  %v2881_v41 = vld [vmem:[%s6140_s10 + $0x8] sm:$0xff] }
 0x162   :  { %2817 = vmatprep.subr.bf16.mxu1 %v2780_v42  ;;  %v2900_v42 = vunpack.c.l.s8.bf16 %v2882_v37  ;;  %v2899_v30 = vunpack.c.h.s8.bf16 %v2881_v41  ;;  %v2897_v31 = vunpack.c.l.s8.bf16 %v2881_v41 }
 0x164   :  { %2935 = vmatpush1.bf16.msra.mxu0 %v2904_v35  ;;  %v2669_v35 = vrot.slane %v2660_v24, %v5466_v25 }
 0x165   :  { %2818 = vmatpush1.bf16.msra.mxu1 %v2779_v45  ;;  %2936 = vmatprep.subr.bf16.mxu0 %v2903_v36  ;;  %v2880_v45 = vld [vmem:[%s6140_s10] sm:$0xff] }
 0x166   :  { %2819 = vmatprep.subr.bf16.mxu1 %v2778_v46  ;;  %v2898_v46 = vunpack.c.h.s8.bf16 %v2880_v45 }
 0x168   :  { %2937 = vmatpush1.bf16.msra.mxu0 %v2902_v39 }
 0x169   :  { %2820 = vmatpush1.bf16.msra.mxu1 %v2777_v48  ;;  %2938 = vmatprep.subr.bf16.mxu0 %v2901_v40  ;;  %v2895_v48 = vld [vmem:[%s6140_s10 + $0x78] sm:$0xff] }
 0x16a   :  { %2821 = vmatprep.subr.bf16.mxu1 %v2776_v50  ;;  %v2896_v50 = vunpack.c.l.s8.bf16 %v2880_v45  ;;  %v2927_v51 = vunpack.c.h.s8.bf16 %v2895_v48  ;;  %v2925_v56 = vunpack.c.l.s8.bf16 %v2895_v48 }
 0x16c   :  { %2939 = vmatpush1.bf16.msra.mxu0 %v2900_v42 }
 0x16d   :  { %2822 = vmatpush1.bf16.msra.mxu1 %v2775_v54  ;;  %2940 = vmatprep.subr.bf16.mxu0 %v2899_v30  ;;  %v2894_v54 = vld [vmem:[%s6140_s10 + $0x70] sm:$0xff] }
 0x16e   :  { %2823 = vmatprep.subr.bf16.mxu1 %v2806_v55  ;;  %v2926_v55 = vunpack.c.h.s8.bf16 %v2894_v54 }
 0x170   :  { %2941 = vmatpush1.bf16.msra.mxu0 %v2898_v46 }
 0x171   :  { %2824 = vmatpush2.bf16.msra.mxu1 %v2805_v57  ;;  %2942 = vmatprep.subr.bf16.mxu0 %v2897_v31  ;;  %v2893_v57 = vld [vmem:[%s6140_s10 + $0x68] sm:$0xff] }
 0x172   :  { %2825 = vmatprep.subr.bf16.mxu1 %v2804_v58  ;;  %v2924_v58 = vunpack.c.l.s8.bf16 %v2894_v54  ;;  %v2923_v60 = vunpack.c.h.s8.bf16 %v2893_v57  ;;  %v2921_v61 = vunpack.c.l.s8.bf16 %v2893_v57 }
 0x174   :  { %2943 = vmatpush1.bf16.msra.mxu0 %v2896_v50 }
 0x175   :  { %2826 = vmatpush2.bf16.msra.mxu1 %v2803_v43  ;;  %2944 = vmatprep.subr.bf16.mxu0 %v2927_v51  ;;  %v2892_v43 = vld [vmem:[%s6140_s10 + $0x60] sm:$0xff] }
 0x176   :  { %2827 = vmatprep.subr.bf16.mxu1 %v2802_v44  ;;  %v2922_v44 = vunpack.c.h.s8.bf16 %v2892_v43 }
 0x178   :  { %2945 = vmatpush2.bf16.msra.mxu0 %v2926_v55 }
 0x179   :  { %2828 = vmatpush2.bf16.msra.mxu1 %v2801_v62  ;;  %2946 = vmatprep.subr.bf16.mxu0 %v2925_v56  ;;  %v5448_v62 = vld [vmem:[%s6140_s10 + $0x58] sm:$0xff] }
 0x17a   :  { %2829 = vmatprep.subr.bf16.mxu1 %v2800_v63  ;;  %v2920_v63 = vunpack.c.l.s8.bf16 %v2892_v43  ;;  %v2917_v57 = vunpack.c.l.s8.bf16 %v5448_v62 }
 0x17c   :  { %2947 = vmatpush2.bf16.msra.mxu0 %v2924_v58 }
 0x17d   :  { %2830 = vmatpush2.bf16.msra.mxu1 %v2799_v0  ;;  %2948 = vmatprep.subr.bf16.mxu0 %v2923_v60  ;;  %v2889_v60 = vld [vmem:[%s6140_s10 + $0x48] sm:$0xff] }
 0x17e   :  { %2831 = vmatprep.subr.bf16.mxu1 %v2798_v4  ;;  %v2915_v43 = vunpack.c.h.s8.bf16 %v2889_v60 }
 0x180   :  { %2949 = vmatpush2.bf16.msra.mxu0 %v2922_v44  ;;  %v2888_v44 = vld [vmem:[%s6140_s10 + $0x40] sm:$0xff] }
 0x181   :  { %2832 = vmatpush2.bf16.msra.mxu1 %v2797_v52  ;;  %2950 = vmatprep.subr.bf16.mxu0 %v2921_v61  ;;  %v2914_v61 = vunpack.c.h.s8.bf16 %v2888_v44 }
 0x182   :  { %2833 = vmatprep.subr.bf16.mxu1 %v2796_v12 }
 0x184   :  { %2951 = vmatpush2.bf16.msra.mxu0 %v2920_v63  ;;  %v2913_v63 = vunpack.c.l.s8.bf16 %v2889_v60 }
 0x185   :  { %2834 = vmatpush2.bf16.msra.mxu1 %v2795_v53 }
 0x186   :  { %2835 = vmatprep.subr.bf16.mxu1 %v2794_v18 }
 0x18d   :  { %v2448_v2 = vpop.f32.mrf.mxu0 }
 0x18e   :  { %v2489_v3 = vpop.f32.mrf.mxu1  ;;  %v2449_v6 = vadd.f32 %v2448_v2, %v5351_v19  ;;  %v2767_v19 = vld [vmem:[%s6139_s7 + $0x40] sm:$0xff]  ;;  %v2919_v2 = vunpack.c.h.s8.bf16 %v5448_v62  ;;  %v3059_v62 = vld [vmem:[%s6144_s13 + $0x1d0] sm:$0xff] }
 0x18f   :  { %v2450_v21 = vpop.f32.mrf.mxu0  ;;  %v2793_v20 = vunpack.c.h.s8.bf16 %v2767_v19 }
 0x190   :  { %v2491_v7 = vpop.f32.mrf.mxu1  ;;  %v2451_v8 = vadd.f32 %v2450_v21, %v5353_v23  ;;  %v5399_v9 = vadd.f32 %v2489_v3, %v2449_v6  ;;  %v2791_v23 = vunpack.c.l.s8.bf16 %v2767_v19  ;;  %v2890_v3 = vld [vmem:[%s6140_s10 + $0x50] sm:$0xff]  ;;  %2952 = vmatprep.subr.bf16.mxu0 %v2919_v2  ;;  %v3058_v2 = vld [vmem:[%s6144_s13 + $0x1c8] sm:$0xff] }
 0x191   :  { %v2452_v10 = vpop.f32.mrf.mxu0  ;;  %2836 = vmatpush2.bf16.msra.mxu1 %v2793_v20  ;;  %v2918_v21 = vunpack.c.h.s8.bf16 %v2890_v3  ;;  %v2916_v58 = vunpack.c.l.s8.bf16 %v2890_v3  ;;  %v3287_v3 = vunpack.c.h.s8.bf16 %v3059_v62 }
 0x192   :  { %v2493_v11 = vpop.f32.mrf.mxu1  ;;  %v5401_v13 = vadd.f32 %v2491_v7, %v2451_v8  ;;  %2837 = vmatprep.subr.bf16.mxu1 %v2792_v22  ;;  %v2725_v22 = vld [vmem:[%s6141_s5] sm:$0x3] }
 0x193   :  { %v2453_v14 = vpop.f32.mrf.mxu0  ;;  %2953 = vmatpush2.bf16.msra.mxu0 %v2918_v21  ;;  %v2734_v59 = vrot.slane %v2725_v22, %v5466_v25  ;;  %v3040_v21 = vld [vmem:[%s6144_s13 + $0x138] sm:$0xff] }
 0x194   :  { %v2494_v15 = vpop.f32.mrf.mxu1  ;;  %2954 = vmatprep.subr.bf16.mxu0 %v2917_v57 }
 0x195   :  { %2838 = vmatpush2.bf16.msra.mxu1 %v2791_v23 }
 0x196   :  { %3457 = vmatprep.subr.bf16.mxu1 %v3287_v3 }
 0x197   :  { %2955 = vmatpush2.bf16.msra.mxu0 %v2916_v58 }
 0x198   :  { %2956 = vmatprep.subr.bf16.mxu0 %v2915_v43 }
 0x19b   :  { %2957 = vmatpush2.bf16.msra.mxu0 %v2914_v61 }
 0x19c   :  { %2958 = vmatprep.subr.bf16.mxu0 %v2913_v63  ;;  %v3060_v63 = vld [vmem:[%s6144_s13 + $0x1d8] sm:$0xff] }
 0x1cd   :  { %v2530_v0 = vpop.f32.mrf.mxu0 }
 0x1ce   :  { %v2571_v1 = vpop.f32.mrf.mxu1  ;;  %v2531_v4 = vadd.f32 %v2530_v0, %v5399_v9  ;;  %v5456_v9 = vsub.s32 0, %v4880_v38  ;;  %v2912_v0 = vunpack.c.l.s8.bf16 %v2888_v44 }
 0x1cf   :  { %v2532_v5 = vpop.f32.mrf.mxu0 }
 0x1d0   :  { %v2573_v6 = vpop.f32.mrf.mxu1  ;;  %v2572_v52 = vadd.f32 %v2571_v1, %v2531_v4  ;;  %v2533_v23 = vadd.f32 %v2532_v5, %v5401_v13  ;;  %v2730_v16 = vrot.slane %v2725_v22, %v5456_v9  ;;  %v2665_v28 = vrot.slane %v2660_v24, %v5456_v9  ;;  %v2741_v13 = vld [vmem:[%s6143_s6] sm:$0x3]  ;;  %2959 = vmatpush2.bf16.msra.mxu0 %v2912_v0 }
 0x1d1   :  { %v2534_v7 = vpop.f32.mrf.mxu0  ;;  %v2746_v40 = vrot.slane %v2741_v13, %v5456_v9  ;;  %v2750_v46 = vrot.slane %v2741_v13, %v5466_v25  ;;  %v5490_v1 = vld [vmem:[%s6144_s13 + $0x1e0] sm:$0xff]  ;;  %v3286_v5 = vunpack.c.h.s8.bf16 %v3058_v2 }
 0x1d2   :  { %v2575_v8 = vpop.f32.mrf.mxu1  ;;  %v2574_v26 = vadd.f32 %v2573_v6, %v2533_v23  ;;  %v3289_v4 = vunpack.c.h.s8.bf16 %v5490_v1  ;;  %v3268_v6 = vunpack.c.l.s8.bf16 %v3059_v62  ;;  %v3249_v7 = vunpack.c.h.s8.bf16 %v3040_v21  ;;  %v3001_v23 = vld [vmem:[%s6144_s13] sm:$0xff] }
 0x1d3   :  { %v2535_v10 = vpop.f32.mrf.mxu0  ;;  %v3039_v8 = vld [vmem:[%s6144_s13 + $0x130] sm:$0xff]  ;;  %v3172_v24 = vunpack.c.h.s8.bf16 %v3001_v23 }
 0x1d4   :  { %v2576_v11 = vpop.f32.mrf.mxu1  ;;  %3498 = vmatprep.subr.bf16.mxu0 %v3289_v4  ;;  %v3248_v10 = vunpack.c.h.s8.bf16 %v3039_v8  ;;  %v3270_v4 = vunpack.c.l.s8.bf16 %v5490_v1  ;;  %v3023_v1 = vld [vmem:[%s6144_s13 + $0xb0] sm:$0xff] }
 0x1d5   :  { %v3230_v11 = vunpack.c.l.s8.bf16 %v3040_v21  ;;  %v3041_v21 = vld [vmem:[%s6144_s13 + $0x140] sm:$0xff] }
 0x1da   :  { %v2653_v12 = vpop.f32.mrf.mxu1 }
 0x1dc   :  { %v2655_v53 = vpop.f32.mrf.mxu1 }
 0x1de   :  { %v2657_v14 = vpop.f32.mrf.mxu1 }
 0x1e0   :  { %v2658_v15 = vpop.f32.mrf.mxu1 }
 0x1e1   :  { %v3020_v15 = vld [vmem:[%s6144_s13 + $0x98] sm:$0xff] }
 0x1e2   :  { %v2718_v17 = vpop.f32.mrf.mxu1 }
 0x1e3   :  { %v2737_v32 = vmul.f32 %v2730_v16, %v2718_v17  ;;  %v3210_v17 = vunpack.c.h.s8.bf16 %v3020_v15 }
 0x1e4   :  { %v2720_v18 = vpop.f32.mrf.mxu1 }
 0x1e5   :  { %v2738_v30 = vmul.f32 %v2734_v59, %v2720_v18 }
 0x1e6   :  { %v2722_v19 = vpop.f32.mrf.mxu1 }
 0x1e7   :  { %v3191_v19 = vunpack.c.l.s8.bf16 %v3020_v15  ;;  %v3004_v15 = vld [vmem:[%s6144_s13 + $0x18] sm:$0xff] }
 0x1e8   :  { %v2723_v20 = vpop.f32.mrf.mxu1 }
 0x1e9   :  { %v3002_v20 = vld [vmem:[%s6144_s13 + $0x8] sm:$0xff] }
 0x1ea   :  { %v3173_v22 = vunpack.c.h.s8.bf16 %v3002_v20  ;;  %v3154_v16 = vunpack.c.l.s8.bf16 %v3002_v20 }
 0x20d   :  { %v2612_v47 = vpop.f32.mrf.mxu0 }
 0x20e   :  { %v2613_v27 = vadd.f32 %v2612_v47, %v2572_v52  ;;  %v3267_v52 = vunpack.c.l.s8.bf16 %v3058_v2  ;;  %v3153_v47 = vunpack.c.l.s8.bf16 %v3001_v23  ;;  %v3288_v2 = vunpack.c.h.s8.bf16 %v3060_v63  ;;  %v3137_v23 = vld [vmem:[%s6144_s13 + $0x440] sm:$0xff] }
 0x20f   :  { %v2614_v29 = vpop.f32.mrf.mxu0 }
 0x210   :  { %v2654_v33 = vadd.f32 %v2653_v12, %v2613_v27  ;;  %v2615_v34 = vadd.f32 %v2614_v29, %v2574_v26  ;;  %v3229_v12 = vunpack.c.l.s8.bf16 %v3039_v8  ;;  %v3135_v26 = vld [vmem:[%s6144_s13 + $0x430] sm:$0xff] }
 0x211   :  { %v2616_v36 = vpop.f32.mrf.mxu0  ;;  %v3439_v27 = vunpack.c.h.s8.bf16 %v3135_v26  ;;  %v3420_v29 = vunpack.c.l.s8.bf16 %v3135_v26 }
 0x212   :  { %v2672_v37 = vmul.f32 %v2665_v28, %v2654_v33  ;;  %v2656_v39 = vadd.f32 %v2655_v53, %v2615_v34  ;;  %v3021_v53 = vld [vmem:[%s6144_s13 + $0xa0] sm:$0xff]  ;;  %v3134_v28 = vld [vmem:[%s6144_s13 + $0x428] sm:$0xff]  ;;  %v3115_v34 = vld [vmem:[%s6144_s13 + $0x390] sm:$0xff] }
 0x213   :  { %v2617_v41 = vpop.f32.mrf.mxu0  ;;  %v3211_v14 = vunpack.c.h.s8.bf16 %v3021_v53  ;;  %v3192_v18 = vunpack.c.l.s8.bf16 %v3021_v53  ;;  %v3438_v59 = vunpack.c.h.s8.bf16 %v3134_v28  ;;  %v3419_v13 = vunpack.c.l.s8.bf16 %v3134_v28  ;;  %v3118_v28 = vld [vmem:[%s6144_s13 + $0x3a8] sm:$0xff] }
 0x214   :  { %v2739_v42 = vadd.f32 %v2737_v32, %v2672_v37  ;;  %v2673_v45 = vmul.f32 %v2669_v35, %v2656_v39  ;;  %v3116_v32 = vld [vmem:[%s6144_s13 + $0x398] sm:$0xff]  ;;  %v3400_v35 = vunpack.c.h.s8.bf16 %v3115_v34  ;;  %v3381_v37 = vunpack.c.l.s8.bf16 %v3115_v34  ;;  %v3097_v39 = vld [vmem:[%s6144_s13 + $0x300] sm:$0xff]  ;;  %v3099_v34 = vld [vmem:[%s6144_s13 + $0x310] sm:$0xff] }
 0x215   :  { %v3401_v33 = vunpack.c.h.s8.bf16 %v3116_v32  ;;  %v3382_v36 = vunpack.c.l.s8.bf16 %v3116_v32  ;;  %v5532_v41 = vld [vmem:[%s6144_s13 + $0x2f8] sm:$0xff] }
 0x216   :  { %v2740_v31 = vadd.f32 %v2738_v30, %v2673_v45  ;;  %v2753_v48 = vadd.f32 %v2746_v40, %v2739_v42  ;;  %v3363_v40 = vunpack.c.h.s8.bf16 %v3097_v39  ;;  %v3362_v42 = vunpack.c.h.s8.bf16 %v5532_v41  ;;  %v2848_v45 = vld [vmem:[%s6145_s8] sm:$0x3] }
 0x217   :  { %v3344_v30 = vunpack.c.l.s8.bf16 %v3097_v39 }
 0x218   :  { %v2754_v50 = vadd.f32 %v2750_v46, %v2740_v31  ;;  %v2755_v51 = vmax.f32 %v2753_v48, 0.0  ;;  %v2862_v46 = vld [vmem:[%s6146_s9] sm:$0x3]  ;;  %v2853_v31 = vrot.slane %v2848_v45, %v5456_v9 }
 0x219   :  { %v2867_v48 = vrot.slane %v2862_v46, %v5456_v9 }
 0x21a   :  { %v2756_v54 = vmax.f32 %v2754_v50, 0.0  ;;  %v2757_v56 = vpack.c.bf16 %v2755_v51, %v2755_v51  ;;  %v2857_v50 = vrot.slane %v2848_v45, %v5466_v25  ;;  %v3078_v45 = vld [vmem:[%s6144_s13 + $0x268] sm:$0xff] }
 0x21c   :  { %v2758_v55 = vpack.c.bf16 %v2756_v54, %v2756_v54 }
 0x21e   :  { %2839 = vmatprep.mubr.bf16.mxu1 %v2758_v55  ;;  %v2871_v55 = vrot.slane %v2862_v46, %v5466_v25  ;;  %v3080_v46 = vld [vmem:[%s6144_s13 + $0x278] sm:$0xff] }
 0x21f   :  { %2840 = vmatmul.mubr.bf16.vlgmr.msra.gmra.mxu1 %v2757_v56 }
 0x220   :  { %3458 = vmatpush1.bf16.msra.mxu1 %v3286_v5  ;;  %v3042_v5 = vld [vmem:[%s6144_s13 + $0x148] sm:$0xff] }
 0x221   :  { %3459 = vmatprep.subr.bf16.mxu1 %v3268_v6  ;;  %v3269_v6 = vunpack.c.l.s8.bf16 %v3060_v63  ;;  %v3232_v8 = vunpack.c.l.s8.bf16 %v3042_v5  ;;  %v2969_v63 = vld [vmem:[%s6147_s11] sm:$0x3] }
 0x224   :  { %3460 = vmatpush1.bf16.msra.mxu1 %v3267_v52  ;;  %v3251_v52 = vunpack.c.h.s8.bf16 %v3042_v5 }
 0x225   :  { %3461 = vmatprep.subr.bf16.mxu1 %v3249_v7  ;;  %v3250_v7 = vunpack.c.h.s8.bf16 %v3041_v21 }
 0x228   :  { %3462 = vmatpush1.bf16.msra.mxu1 %v3248_v10  ;;  %v3231_v10 = vunpack.c.l.s8.bf16 %v3041_v21 }
 0x229   :  { %3463 = vmatprep.subr.bf16.mxu1 %v3230_v11  ;;  %v3213_v11 = vunpack.c.h.s8.bf16 %v3023_v1 }
 0x22c   :  { %3464 = vmatpush1.bf16.msra.mxu1 %v3229_v12  ;;  %v3022_v12 = vld [vmem:[%s6144_s13 + $0xa8] sm:$0xff] }
 0x22d   :  { %3465 = vmatprep.subr.bf16.mxu1 %v3211_v14  ;;  %v3212_v53 = vunpack.c.h.s8.bf16 %v3022_v12  ;;  %v3194_v14 = vunpack.c.l.s8.bf16 %v3023_v1 }
 0x230   :  { %3466 = vmatpush1.bf16.msra.mxu1 %v3210_v17  ;;  %v3193_v17 = vunpack.c.l.s8.bf16 %v3022_v12  ;;  %v3062_v12 = vld [vmem:[%s6144_s13 + $0x1e8] sm:$0xff] }
 0x231   :  { %3467 = vmatprep.subr.bf16.mxu1 %v3192_v18  ;;  %v3175_v18 = vunpack.c.h.s8.bf16 %v3004_v15 }
 0x234   :  { %3468 = vmatpush1.bf16.msra.mxu1 %v3191_v19  ;;  %v3003_v19 = vld [vmem:[%s6144_s13 + $0x10] sm:$0xff] }
 0x235   :  { %3469 = vmatprep.subr.bf16.mxu1 %v3173_v22  ;;  %v3174_v20 = vunpack.c.h.s8.bf16 %v3003_v19  ;;  %v3156_v22 = vunpack.c.l.s8.bf16 %v3004_v15 }
 0x238   :  { %3470 = vmatpush1.bf16.msra.mxu1 %v3172_v24  ;;  %v3155_v24 = vunpack.c.l.s8.bf16 %v3003_v19 }
 0x239   :  { %3471 = vmatprep.subr.bf16.mxu1 %v3154_v16  ;;  %v3441_v16 = vunpack.c.h.s8.bf16 %v3137_v23 }
 0x23c   :  { %3472 = vmatpush1.bf16.msra.mxu1 %v3153_v47  ;;  %v3136_v47 = vld [vmem:[%s6144_s13 + $0x438] sm:$0xff] }
 0x23d   :  { %3473 = vmatprep.subr.bf16.mxu1 %v3439_v27  ;;  %v3440_v26 = vunpack.c.h.s8.bf16 %v3136_v47  ;;  %v3422_v27 = vunpack.c.l.s8.bf16 %v3137_v23  ;;  %v3044_v23 = vld [vmem:[%s6144_s13 + $0x158] sm:$0xff] }
 0x240   :  { %3474 = vmatpush2.bf16.msra.mxu1 %v3438_v59  ;;  %v3421_v59 = vunpack.c.l.s8.bf16 %v3136_v47 }
 0x241   :  { %3475 = vmatprep.subr.bf16.mxu1 %v3420_v29  ;;  %v3403_v29 = vunpack.c.h.s8.bf16 %v3118_v28 }
 0x244   :  { %3476 = vmatpush2.bf16.msra.mxu1 %v3419_v13  ;;  %v3117_v13 = vld [vmem:[%s6144_s13 + $0x3a0] sm:$0xff] }
 0x245   :  { %3477 = vmatprep.subr.bf16.mxu1 %v3401_v33  ;;  %v3402_v32 = vunpack.c.h.s8.bf16 %v3117_v13  ;;  %v3384_v33 = vunpack.c.l.s8.bf16 %v3118_v28  ;;  %v3043_v28 = vld [vmem:[%s6144_s13 + $0x150] sm:$0xff] }
 0x248   :  { %3478 = vmatpush2.bf16.msra.mxu1 %v3400_v35  ;;  %v3383_v35 = vunpack.c.l.s8.bf16 %v3117_v13 }
 0x249   :  { %3479 = vmatprep.subr.bf16.mxu1 %v3382_v36  ;;  %v3365_v36 = vunpack.c.h.s8.bf16 %v3099_v34 }
 0x24c   :  { %3480 = vmatpush2.bf16.msra.mxu1 %v3381_v37  ;;  %v3098_v37 = vld [vmem:[%s6144_s13 + $0x308] sm:$0xff] }
 0x24d   :  { %3481 = vmatprep.subr.bf16.mxu1 %v3363_v40  ;;  %v3364_v39 = vunpack.c.h.s8.bf16 %v3098_v37  ;;  %v3346_v40 = vunpack.c.l.s8.bf16 %v3099_v34  ;;  %v3025_v34 = vld [vmem:[%s6144_s13 + $0xc0] sm:$0xff] }
 0x250   :  { %3482 = vmatpush2.bf16.msra.mxu1 %v3362_v42  ;;  %v3343_v42 = vunpack.c.l.s8.bf16 %v5532_v41  ;;  %v3079_v41 = vld [vmem:[%s6144_s13 + $0x270] sm:$0xff] }
 0x251   :  { %3483 = vmatprep.subr.bf16.mxu1 %v3344_v30  ;;  %v3345_v30 = vunpack.c.l.s8.bf16 %v3098_v37 }
 0x254   :  { %3484 = vmatpush2.bf16.msra.mxu1 %v3343_v42  ;;  %v3024_v42 = vld [vmem:[%s6144_s13 + $0xb8] sm:$0xff] }
 0x2df   :  { %v2841_v51 = vpop.f32.mrf.mxu1 }
 0x2e0   :  { %v2860_v54 = vmul.f32 %v2853_v31, %v2841_v51  ;;  %v3325_v31 = vunpack.c.h.s8.bf16 %v3078_v45 }
 0x2e1   :  { %v2843_v56 = vpop.f32.mrf.mxu1 }
 0x2e2   :  { %v2874_v57 = vadd.f32 %v2867_v48, %v2860_v54  ;;  %v2861_v58 = vmul.f32 %v2857_v50, %v2843_v56  ;;  %v3327_v48 = vunpack.c.h.s8.bf16 %v3080_v46  ;;  %v3077_v50 = vld [vmem:[%s6144_s13 + $0x260] sm:$0xff]  ;;  %v3326_v54 = vunpack.c.h.s8.bf16 %v3079_v41  ;;  %3485 = vmatprep.subr.bf16.mxu1 %v3325_v31 }
 0x2e3   :  { %v2845_v60 = vpop.f32.mrf.mxu1  ;;  %v3324_v51 = vunpack.c.h.s8.bf16 %v3077_v50  ;;  %v3308_v56 = vunpack.c.l.s8.bf16 %v3080_v46  ;;  %v3196_v31 = vunpack.c.l.s8.bf16 %v3025_v34 }
 0x2e4   :  { %v2875_v43 = vadd.f32 %v2871_v55, %v2861_v58  ;;  %v2876_v44 = vmax.f32 %v2874_v57, 0.0  ;;  %v3306_v55 = vunpack.c.l.s8.bf16 %v3078_v45  ;;  %v3305_v57 = vunpack.c.l.s8.bf16 %v3077_v50  ;;  %v3063_v60 = vld [vmem:[%s6144_s13 + $0x1f0] sm:$0xff]  ;;  %v3006_v50 = vld [vmem:[%s6144_s13 + $0x28] sm:$0xff] }
 0x2e5   :  { %v2846_v61 = vpop.f32.mrf.mxu1  ;;  %3486 = vmatpush2.bf16.msra.mxu1 %v3324_v51  ;;  %v3307_v58 = vunpack.c.l.s8.bf16 %v3079_v41  ;;  %v3214_v45 = vunpack.c.h.s8.bf16 %v3024_v42  ;;  %v3008_v41 = vld [vmem:[%s6144_s13 + $0x38] sm:$0xff]  ;;  %v3195_v51 = vunpack.c.l.s8.bf16 %v3024_v42 }
 0x2e6   :  { %v2877_v0 = vmax.f32 %v2875_v43, 0.0  ;;  %v2878_v3 = vpack.c.bf16 %v2876_v44, %v2876_v44  ;;  %3487 = vmatprep.subr.bf16.mxu1 %v3306_v55  ;;  %v3065_v43 = vld [vmem:[%s6144_s13 + $0x200] sm:$0xff]  ;;  %v3291_v44 = vunpack.c.h.s8.bf16 %v3063_v60  ;;  %v3177_v55 = vunpack.c.h.s8.bf16 %v3006_v50 }
 0x2e7   :  { %v3293_v61 = vunpack.c.h.s8.bf16 %v3065_v43 }
 0x2e8   :  { %v2879_v62 = vpack.c.bf16 %v2877_v0, %v2877_v0  ;;  %v2983_v0 = vld [vmem:[%s6148_s12] sm:$0x3] }
 0x2e9   :  { %3488 = vmatpush2.bf16.msra.mxu1 %v3305_v57  ;;  %v3005_v57 = vld [vmem:[%s6144_s13 + $0x20] sm:$0xff] }
 0x2ea   :  { %2960 = vmatprep.mubr.bf16.mxu0 %v2879_v62  ;;  %3539 = vmatprep.subr.bf16.mxu1 %v3291_v44  ;;  %v2974_v62 = vrot.slane %v2969_v63, %v5456_v9  ;;  %v3158_v44 = vunpack.c.l.s8.bf16 %v3006_v50 }
 0x2eb   :  { %2961 = vmatmul.mubr.bf16.vlgmr.msra.gmra.mxu0 %v2878_v3  ;;  %v2978_v3 = vrot.slane %v2969_v63, %v5466_v25  ;;  %v3139_v63 = vld [vmem:[%s6144_s13 + $0x450] sm:$0xff] }
 0x2ec   :  { %3499 = vmatpush1.bf16.msra.mxu0 %v3288_v2  ;;  %v2988_v2 = vrot.slane %v2983_v0, %v5456_v9 }
 0x2ed   :  { %3500 = vmatprep.subr.bf16.mxu0 %v3270_v4 }
 0x2f0   :  { %3501 = vmatpush1.bf16.msra.mxu0 %v3269_v6  ;;  %v2992_v6 = vrot.slane %v2983_v0, %v5466_v25  ;;  %v3141_v0 = vld [vmem:[%s6144_s13 + $0x460] sm:$0xff] }
 0x2f1   :  { %3502 = vmatprep.subr.bf16.mxu0 %v3251_v52 }
 0x2f4   :  { %3503 = vmatpush1.bf16.msra.mxu0 %v3250_v7 }
 0x2f5   :  { %3504 = vmatprep.subr.bf16.mxu0 %v3232_v8 }
 0x2f8   :  { %3505 = vmatpush1.bf16.msra.mxu0 %v3231_v10 }
 0x2f9   :  { %3506 = vmatprep.subr.bf16.mxu0 %v3213_v11 }
 0x2fc   :  { %3507 = vmatpush1.bf16.msra.mxu0 %v3212_v53  ;;  %v3064_v53 = vld [vmem:[%s6144_s13 + $0x1f8] sm:$0xff] }
 0x2fd   :  { %3508 = vmatprep.subr.bf16.mxu0 %v3194_v14  ;;  %v3273_v47 = vunpack.c.l.s8.bf16 %v3064_v53 }
 0x300   :  { %3509 = vmatpush1.bf16.msra.mxu0 %v3193_v17  ;;  %v3290_v17 = vunpack.c.h.s8.bf16 %v3062_v12 }
 0x301   :  { %3510 = vmatprep.subr.bf16.mxu0 %v3175_v18  ;;  %v3292_v18 = vunpack.c.h.s8.bf16 %v3064_v53 }
 0x304   :  { %3511 = vmatpush1.bf16.msra.mxu0 %v3174_v20  ;;  %v3272_v20 = vunpack.c.l.s8.bf16 %v3063_v60  ;;  %v3176_v60 = vunpack.c.h.s8.bf16 %v3005_v57 }
 0x305   :  { %3512 = vmatprep.subr.bf16.mxu0 %v3156_v22  ;;  %v3274_v22 = vunpack.c.l.s8.bf16 %v3065_v43 }
 0x308   :  { %3513 = vmatpush1.bf16.msra.mxu0 %v3155_v24  ;;  %v3046_v24 = vld [vmem:[%s6144_s13 + $0x168] sm:$0xff] }
 0x309   :  { %3514 = vmatprep.subr.bf16.mxu0 %v3441_v16  ;;  %v3271_v16 = vunpack.c.l.s8.bf16 %v3062_v12 }
 0x30c   :  { %3515 = vmatpush2.bf16.msra.mxu0 %v3440_v26  ;;  %v3253_v26 = vunpack.c.h.s8.bf16 %v3044_v23 }
 0x30d   :  { %3516 = vmatprep.subr.bf16.mxu0 %v3422_v27  ;;  %v3255_v27 = vunpack.c.h.s8.bf16 %v3046_v24 }
 0x310   :  { %3517 = vmatpush2.bf16.msra.mxu0 %v3421_v59  ;;  %v3045_v59 = vld [vmem:[%s6144_s13 + $0x160] sm:$0xff] }
 0x311   :  { %3518 = vmatprep.subr.bf16.mxu0 %v3403_v29  ;;  %v3252_v29 = vunpack.c.h.s8.bf16 %v3043_v28  ;;  %v3254_v13 = vunpack.c.h.s8.bf16 %v3045_v59  ;;  %v3235_v37 = vunpack.c.l.s8.bf16 %v3045_v59 }
 0x314   :  { %3519 = vmatpush2.bf16.msra.mxu0 %v3402_v32  ;;  %v3234_v32 = vunpack.c.l.s8.bf16 %v3044_v23 }
 0x315   :  { %3520 = vmatprep.subr.bf16.mxu0 %v3384_v33  ;;  %v3236_v33 = vunpack.c.l.s8.bf16 %v3046_v24 }
 0x318   :  { %3521 = vmatpush2.bf16.msra.mxu0 %v3383_v35  ;;  %v3027_v35 = vld [vmem:[%s6144_s13 + $0xd0] sm:$0xff] }
 0x319   :  { %3522 = vmatprep.subr.bf16.mxu0 %v3365_v36  ;;  %v3233_v36 = vunpack.c.l.s8.bf16 %v3043_v28 }
 0x31c   :  { %3523 = vmatpush2.bf16.msra.mxu0 %v3364_v39  ;;  %v3215_v39 = vunpack.c.h.s8.bf16 %v3025_v34 }
 0x31d   :  { %3524 = vmatprep.subr.bf16.mxu0 %v3346_v40  ;;  %v3217_v40 = vunpack.c.h.s8.bf16 %v3027_v35 }
 0x320   :  { %3525 = vmatpush2.bf16.msra.mxu0 %v3345_v30  ;;  %v3026_v30 = vld [vmem:[%s6144_s13 + $0xc8] sm:$0xff] }
 0x321   :  { %3526 = vmatprep.subr.bf16.mxu0 %v3327_v48  ;;  %v3216_v46 = vunpack.c.h.s8.bf16 %v3026_v30  ;;  %v3198_v48 = vunpack.c.l.s8.bf16 %v3027_v35 }
 0x324   :  { %3527 = vmatpush2.bf16.msra.mxu0 %v3326_v54  ;;  %v3197_v54 = vunpack.c.l.s8.bf16 %v3026_v30 }
 0x325   :  { %3528 = vmatprep.subr.bf16.mxu0 %v3308_v56  ;;  %v3179_v56 = vunpack.c.h.s8.bf16 %v3008_v41 }
 0x328   :  { %3529 = vmatpush2.bf16.msra.mxu0 %v3307_v58  ;;  %v3007_v58 = vld [vmem:[%s6144_s13 + $0x30] sm:$0xff] }
 0x329   :  { %3580 = vmatprep.subr.bf16.mxu0 %v3293_v61  ;;  %v3178_v43 = vunpack.c.h.s8.bf16 %v3007_v58  ;;  %v3160_v61 = vunpack.c.l.s8.bf16 %v3008_v41 }
 0x3ab   :  { %v2962_v4 = vpop.f32.mrf.mxu0 }
 0x3ac   :  { %v2981_v5 = vmul.f32 %v2974_v62, %v2962_v4  ;;  %v3157_v62 = vunpack.c.l.s8.bf16 %v3005_v57  ;;  %v3445_v4 = vunpack.c.h.s8.bf16 %v3141_v0 }
 0x3ad   :  { %v2964_v52 = vpop.f32.mrf.mxu0 }
 0x3ae   :  { %v2995_v21 = vadd.f32 %v2988_v2, %v2981_v5  ;;  %v2982_v7 = vmul.f32 %v2978_v3, %v2964_v52  ;;  %v3159_v2 = vunpack.c.l.s8.bf16 %v3007_v58  ;;  %v3443_v3 = vunpack.c.h.s8.bf16 %v3139_v63  ;;  %v3138_v5 = vld [vmem:[%s6144_s13 + $0x448] sm:$0xff] }
 0x3af   :  { %v2966_v8 = vpop.f32.mrf.mxu0  ;;  %v3442_v52 = vunpack.c.h.s8.bf16 %v3138_v5 }
 0x3b0   :  { %v2996_v1 = vadd.f32 %v2992_v6, %v2982_v7  ;;  %v2997_v10 = vmax.f32 %v2995_v21, 0.0  ;;  %v3140_v6 = vld [vmem:[%s6144_s13 + $0x458] sm:$0xff]  ;;  %v3424_v7 = vunpack.c.l.s8.bf16 %v3139_v63  ;;  %v3426_v8 = vunpack.c.l.s8.bf16 %v3141_v0 }
 0x3b1   :  { %v2967_v11 = vpop.f32.mrf.mxu0  ;;  %v3444_v21 = vunpack.c.h.s8.bf16 %v3140_v6  ;;  %v3425_v12 = vunpack.c.l.s8.bf16 %v3140_v6  ;;  %v3047_v6 = vld [vmem:[%s6144_s13 + $0x170] sm:$0xff] }
 0x3b2   :  { %v2998_v14 = vmax.f32 %v2996_v1, 0.0  ;;  %v5622_v19 = vpack.c.bf16 %v2997_v10, %v2997_v10  ;;  %v3120_v1 = vld [vmem:[%s6144_s13 + $0x3b8] sm:$0xff]  ;;  %v3122_v10 = vld [vmem:[%s6144_s13 + $0x3c8] sm:$0xff]  ;;  %v3423_v11 = vunpack.c.l.s8.bf16 %v3138_v5 }
 0x3b3   :  { %v3405_v53 = vunpack.c.h.s8.bf16 %v3120_v1  ;;  %v3386_v23 = vunpack.c.l.s8.bf16 %v3120_v1  ;;  %v3388_v24 = vunpack.c.l.s8.bf16 %v3122_v10 }
 0x3b4   :  { %v5620_v15 = vpack.c.bf16 %v2998_v14, %v2998_v14  ;;  %v3407_v14 = vunpack.c.h.s8.bf16 %v3122_v10 }
 0x3b6   :  { %3489 = vmatprep.mubr.bf16.mxu1 %v5620_v15  ;;  %3530 = vmatprep.mubr.bf16.mxu0 %v5620_v15 }
 0x3b7   :  { %3490 = vmatmul.mubr.bf16.vlgmr.msra.gmra.mxu1 %v5622_v19  ;;  %3531 = vmatmul.mubr.bf16.vlgmr.msra.gmra.mxu0 %v5622_v19 }
 0x3b8   :  { %3540 = vmatpush1.bf16.msra.mxu1 %v3290_v17  ;;  %3581 = vmatpush1.bf16.msra.mxu0 %v3292_v18  ;;  %v3119_v17 = vld [vmem:[%s6144_s13 + $0x3b0] sm:$0xff]  ;;  %v3121_v18 = vld [vmem:[%s6144_s13 + $0x3c0] sm:$0xff] }
 0x3b9   :  { %3571 = vmatprep.mubr.bf16.mxu1 %v5620_v15  ;;  %3612 = vmatprep.mubr.bf16.mxu0 %v5620_v15 }
 0x3ba   :  { %3541 = vmatprep.subr.bf16.mxu1 %v3272_v20  ;;  %3582 = vmatprep.subr.bf16.mxu0 %v3274_v22  ;;  %v3404_v20 = vunpack.c.h.s8.bf16 %v3119_v17  ;;  %v3406_v22 = vunpack.c.h.s8.bf16 %v3121_v18 }
 0x3bc   :  { %3542 = vmatpush1.bf16.msra.mxu1 %v3271_v16  ;;  %3583 = vmatpush1.bf16.msra.mxu0 %v3273_v47  ;;  %v3101_v16 = vld [vmem:[%s6144_s13 + $0x320] sm:$0xff]  ;;  %v3103_v47 = vld [vmem:[%s6144_s13 + $0x330] sm:$0xff] }
 0x3bd   :  { %3543 = vmatprep.subr.bf16.mxu1 %v3253_v26  ;;  %3584 = vmatprep.subr.bf16.mxu0 %v3255_v27  ;;  %v3385_v26 = vunpack.c.l.s8.bf16 %v3119_v17  ;;  %v3387_v27 = vunpack.c.l.s8.bf16 %v3121_v18  ;;  %v3367_v28 = vunpack.c.h.s8.bf16 %v3101_v16  ;;  %v3369_v59 = vunpack.c.h.s8.bf16 %v3103_v47  ;;  %v3028_v18 = vld [vmem:[%s6144_s13 + $0xd8] sm:$0xff] }
 0x3be   :  { %v3348_v34 = vunpack.c.l.s8.bf16 %v3101_v16  ;;  %v3350_v35 = vunpack.c.l.s8.bf16 %v3103_v47 }
 0x3c0   :  { %3544 = vmatpush1.bf16.msra.mxu1 %v3252_v29  ;;  %3585 = vmatpush1.bf16.msra.mxu0 %v3254_v13  ;;  %v3100_v29 = vld [vmem:[%s6144_s13 + $0x318] sm:$0xff]  ;;  %v3102_v13 = vld [vmem:[%s6144_s13 + $0x328] sm:$0xff] }
 0x3c1   :  { %3545 = vmatprep.subr.bf16.mxu1 %v3234_v32  ;;  %3586 = vmatprep.subr.bf16.mxu0 %v3236_v33  ;;  %v3366_v32 = vunpack.c.h.s8.bf16 %v3100_v29  ;;  %v3368_v33 = vunpack.c.h.s8.bf16 %v3102_v13 }
 0x3c4   :  { %3546 = vmatpush1.bf16.msra.mxu1 %v3233_v36  ;;  %3587 = vmatpush1.bf16.msra.mxu0 %v3235_v37  ;;  %v3082_v36 = vld [vmem:[%s6144_s13 + $0x288] sm:$0xff]  ;;  %v3084_v37 = vld [vmem:[%s6144_s13 + $0x298] sm:$0xff] }
 0x3c5   :  { %3547 = vmatprep.subr.bf16.mxu1 %v3215_v39  ;;  %3588 = vmatprep.subr.bf16.mxu0 %v3217_v40  ;;  %v3347_v39 = vunpack.c.l.s8.bf16 %v3100_v29  ;;  %v3349_v40 = vunpack.c.l.s8.bf16 %v3102_v13  ;;  %v3329_v42 = vunpack.c.h.s8.bf16 %v3082_v36  ;;  %v3331_v30 = vunpack.c.h.s8.bf16 %v3084_v37  ;;  %v3009_v13 = vld [vmem:[%s6144_s13 + $0x40] sm:$0xff] }
 0x3c6   :  { %v3310_v50 = vunpack.c.l.s8.bf16 %v3082_v36  ;;  %v3312_v41 = vunpack.c.l.s8.bf16 %v3084_v37 }
 0x3c8   :  { %3548 = vmatpush1.bf16.msra.mxu1 %v3214_v45  ;;  %3589 = vmatpush1.bf16.msra.mxu0 %v3216_v46  ;;  %v3081_v45 = vld [vmem:[%s6144_s13 + $0x280] sm:$0xff]  ;;  %v3083_v46 = vld [vmem:[%s6144_s13 + $0x290] sm:$0xff] }
 0x3c9   :  { %3549 = vmatprep.subr.bf16.mxu1 %v3196_v31  ;;  %3590 = vmatprep.subr.bf16.mxu0 %v3198_v48  ;;  %v3328_v31 = vunpack.c.h.s8.bf16 %v3081_v45  ;;  %v3330_v48 = vunpack.c.h.s8.bf16 %v3083_v46 }
 0x3cc   :  { %3550 = vmatpush1.bf16.msra.mxu1 %v3195_v51  ;;  %3591 = vmatpush1.bf16.msra.mxu0 %v3197_v54  ;;  %v3067_v51 = vld [vmem:[%s6144_s13 + $0x210] sm:$0xff]  ;;  %v3069_v54 = vld [vmem:[%s6144_s13 + $0x220] sm:$0xff] }
 0x3cd   :  { %3551 = vmatprep.subr.bf16.mxu1 %v3177_v55  ;;  %3592 = vmatprep.subr.bf16.mxu0 %v3179_v56  ;;  %v3309_v55 = vunpack.c.l.s8.bf16 %v3081_v45  ;;  %v3311_v56 = vunpack.c.l.s8.bf16 %v3083_v46  ;;  %v3295_v57 = vunpack.c.h.s8.bf16 %v3067_v51  ;;  %v3297_v58 = vunpack.c.h.s8.bf16 %v3069_v54  ;;  %v3142_v46 = vld [vmem:[%s6144_s13 + $0x468] sm:$0xff] }
 0x3ce   :  { %v3276_v63 = vunpack.c.l.s8.bf16 %v3067_v51  ;;  %v3278_v0 = vunpack.c.l.s8.bf16 %v3069_v54 }
 0x3d0   :  { %3552 = vmatpush1.bf16.msra.mxu1 %v3176_v60  ;;  %3593 = vmatpush1.bf16.msra.mxu0 %v3178_v43  ;;  %v3066_v60 = vld [vmem:[%s6144_s13 + $0x208] sm:$0xff]  ;;  %v3068_v43 = vld [vmem:[%s6144_s13 + $0x218] sm:$0xff] }
 0x3d1   :  { %3553 = vmatprep.subr.bf16.mxu1 %v3158_v44  ;;  %3594 = vmatprep.subr.bf16.mxu0 %v3160_v61  ;;  %v3294_v44 = vunpack.c.h.s8.bf16 %v3066_v60  ;;  %v3296_v61 = vunpack.c.h.s8.bf16 %v3068_v43 }
 0x3d4   :  { %3554 = vmatpush1.bf16.msra.mxu1 %v3157_v62  ;;  %3595 = vmatpush1.bf16.msra.mxu0 %v3159_v2  ;;  %v3048_v62 = vld [vmem:[%s6144_s13 + $0x178] sm:$0xff]  ;;  %v3050_v2 = vld [vmem:[%s6144_s13 + $0x188] sm:$0xff] }
 0x3d5   :  { %3555 = vmatprep.subr.bf16.mxu1 %v3443_v3  ;;  %3596 = vmatprep.subr.bf16.mxu0 %v3445_v4  ;;  %v3275_v3 = vunpack.c.l.s8.bf16 %v3066_v60  ;;  %v3277_v4 = vunpack.c.l.s8.bf16 %v3068_v43  ;;  %v3257_v5 = vunpack.c.h.s8.bf16 %v3048_v62  ;;  %v3238_v1 = vunpack.c.l.s8.bf16 %v3048_v62  ;;  %v3123_v43 = vld [vmem:[%s6144_s13 + $0x3d0] sm:$0xff] }
 0x3d6   :  { %v3240_v10 = vunpack.c.l.s8.bf16 %v3050_v2 }
 0x3d8   :  { %3556 = vmatpush2.bf16.msra.mxu1 %v3442_v52  ;;  %3597 = vmatpush2.bf16.msra.mxu0 %v3444_v21  ;;  %v3259_v52 = vunpack.c.h.s8.bf16 %v3050_v2  ;;  %v3049_v21 = vld [vmem:[%s6144_s13 + $0x180] sm:$0xff] }
 0x3d9   :  { %3557 = vmatprep.subr.bf16.mxu1 %v3424_v7  ;;  %3598 = vmatprep.subr.bf16.mxu0 %v3426_v8  ;;  %v3256_v7 = vunpack.c.h.s8.bf16 %v3047_v6  ;;  %v3258_v8 = vunpack.c.h.s8.bf16 %v3049_v21 }
 0x3dc   :  { %3558 = vmatpush2.bf16.msra.mxu1 %v3423_v11  ;;  %3599 = vmatpush2.bf16.msra.mxu0 %v3425_v12  ;;  %v3029_v11 = vld [vmem:[%s6144_s13 + $0xe0] sm:$0xff]  ;;  %v3031_v12 = vld [vmem:[%s6144_s13 + $0xf0] sm:$0xff] }
 0x3dd   :  { %3559 = vmatprep.subr.bf16.mxu1 %v3405_v53  ;;  %3600 = vmatprep.subr.bf16.mxu0 %v3407_v14  ;;  %v3237_v53 = vunpack.c.l.s8.bf16 %v3047_v6  ;;  %v3239_v14 = vunpack.c.l.s8.bf16 %v3049_v21  ;;  %v3219_v17 = vunpack.c.h.s8.bf16 %v3029_v11  ;;  %v3200_v16 = vunpack.c.l.s8.bf16 %v3029_v11  ;;  %v3104_v21 = vld [vmem:[%s6144_s13 + $0x338] sm:$0xff] }
 0x3de   :  { %v3202_v47 = vunpack.c.l.s8.bf16 %v3031_v12 }
 0x3e0   :  { %3560 = vmatpush2.bf16.msra.mxu1 %v3404_v20  ;;  %3601 = vmatpush2.bf16.msra.mxu0 %v3406_v22  ;;  %v3221_v20 = vunpack.c.h.s8.bf16 %v3031_v12  ;;  %v3030_v22 = vld [vmem:[%s6144_s13 + $0xe8] sm:$0xff] }
 0x3e1   :  { %3561 = vmatprep.subr.bf16.mxu1 %v3386_v23  ;;  %3602 = vmatprep.subr.bf16.mxu0 %v3388_v24  ;;  %v3218_v23 = vunpack.c.h.s8.bf16 %v3028_v18  ;;  %v3220_v24 = vunpack.c.h.s8.bf16 %v3030_v22 }
 0x3e4   :  { %3562 = vmatpush2.bf16.msra.mxu1 %v3385_v26  ;;  %3603 = vmatpush2.bf16.msra.mxu0 %v3387_v27  ;;  %v3010_v26 = vld [vmem:[%s6144_s13 + $0x48] sm:$0xff]  ;;  %v3012_v27 = vld [vmem:[%s6144_s13 + $0x58] sm:$0xff] }
 0x3e5   :  { %3563 = vmatprep.subr.bf16.mxu1 %v3367_v28  ;;  %3604 = vmatprep.subr.bf16.mxu0 %v3369_v59  ;;  %v3199_v28 = vunpack.c.l.s8.bf16 %v3028_v18  ;;  %v3201_v59 = vunpack.c.l.s8.bf16 %v3030_v22  ;;  %v3181_v29 = vunpack.c.h.s8.bf16 %v3010_v26  ;;  %v3162_v36 = vunpack.c.l.s8.bf16 %v3010_v26  ;;  %v3085_v22 = vld [vmem:[%s6144_s13 + $0x2a0] sm:$0xff] }
 0x3e6   :  { %v3164_v37 = vunpack.c.l.s8.bf16 %v3012_v27 }
 0x3e8   :  { %3564 = vmatpush2.bf16.msra.mxu1 %v3366_v32  ;;  %3605 = vmatpush2.bf16.msra.mxu0 %v3368_v33  ;;  %v3183_v32 = vunpack.c.h.s8.bf16 %v3012_v27  ;;  %v3011_v33 = vld [vmem:[%s6144_s13 + $0x50] sm:$0xff] }
 0x3e9   :  { %3565 = vmatprep.subr.bf16.mxu1 %v3348_v34  ;;  %3606 = vmatprep.subr.bf16.mxu0 %v3350_v35  ;;  %v3180_v34 = vunpack.c.h.s8.bf16 %v3009_v13  ;;  %v3182_v35 = vunpack.c.h.s8.bf16 %v3011_v33 }
 0x3ec   :  { %3566 = vmatpush2.bf16.msra.mxu1 %v3347_v39  ;;  %3607 = vmatpush2.bf16.msra.mxu0 %v3349_v40  ;;  %v3143_v39 = vld [vmem:[%s6144_s13 + $0x470] sm:$0xff]  ;;  %v3145_v40 = vld [vmem:[%s6144_s13 + $0x480] sm:$0xff] }
 0x3ed   :  { %3567 = vmatprep.subr.bf16.mxu1 %v3329_v42  ;;  %3608 = vmatprep.subr.bf16.mxu0 %v3331_v30  ;;  %v3161_v42 = vunpack.c.l.s8.bf16 %v3009_v13  ;;  %v3163_v30 = vunpack.c.l.s8.bf16 %v3011_v33  ;;  %v3447_v45 = vunpack.c.h.s8.bf16 %v3143_v39  ;;  %v3428_v51 = vunpack.c.l.s8.bf16 %v3143_v39  ;;  %v3070_v33 = vld [vmem:[%s6144_s13 + $0x228] sm:$0xff] }
 0x3ee   :  { %v3430_v54 = vunpack.c.l.s8.bf16 %v3145_v40 }
 0x3f0   :  { %3568 = vmatpush2.bf16.msra.mxu1 %v3328_v31  ;;  %3609 = vmatpush2.bf16.msra.mxu0 %v3330_v48  ;;  %v3449_v31 = vunpack.c.h.s8.bf16 %v3145_v40  ;;  %v3144_v48 = vld [vmem:[%s6144_s13 + $0x478] sm:$0xff] }
 0x3f1   :  { %3569 = vmatprep.subr.bf16.mxu1 %v3310_v50  ;;  %3610 = vmatprep.subr.bf16.mxu0 %v3312_v41  ;;  %v3446_v50 = vunpack.c.h.s8.bf16 %v3142_v46  ;;  %v3448_v41 = vunpack.c.h.s8.bf16 %v3144_v48  ;;  %v3052_v40 = vld [vmem:[%s6144_s13 + $0x198] sm:$0xff] }
 0x3f4   :  { %3570 = vmatpush2.bf16.msra.mxu1 %v3309_v55  ;;  %3611 = vmatpush2.bf16.msra.mxu0 %v3311_v56  ;;  %v3124_v55 = vld [vmem:[%s6144_s13 + $0x3d8] sm:$0xff]  ;;  %v3126_v56 = vld [vmem:[%s6144_s13 + $0x3e8] sm:$0xff] }
 0x3f5   :  { %3621 = vmatprep.subr.bf16.mxu1 %v3295_v57  ;;  %3662 = vmatprep.subr.bf16.mxu0 %v3297_v58  ;;  %v3427_v57 = vunpack.c.l.s8.bf16 %v3142_v46  ;;  %v3429_v58 = vunpack.c.l.s8.bf16 %v3144_v48  ;;  %v3409_v60 = vunpack.c.h.s8.bf16 %v3124_v55  ;;  %v3390_v62 = vunpack.c.l.s8.bf16 %v3124_v55  ;;  %v3051_v48 = vld [vmem:[%s6144_s13 + $0x190] sm:$0xff] }
 0x3f6   :  { %v3392_v2 = vunpack.c.l.s8.bf16 %v3126_v56  ;;  %v3242_v55 = vunpack.c.l.s8.bf16 %v3052_v40 }
 0x3f7   :  { %3572 = vmatmul.mubr.bf16.vlgmr.msra.gmra.mxu1 %v5622_v19  ;;  %3613 = vmatmul.mubr.bf16.vlgmr.msra.gmra.mxu0 %v5622_v19 }
 0x3f8   :  { %3622 = vmatpush1.bf16.msra.mxu1 %v3294_v44  ;;  %3653 = vmatprep.mubr.bf16.mxu1 %v5620_v15  ;;  %v3411_v44 = vunpack.c.h.s8.bf16 %v3126_v56 }
 0x3f9   :  { %3663 = vmatpush1.bf16.msra.mxu0 %v3296_v61  ;;  %3694 = vmatprep.mubr.bf16.mxu0 %v5620_v15  ;;  %v3125_v61 = vld [vmem:[%s6144_s13 + $0x3e0] sm:$0xff] }
 0x3fa   :  { %3623 = vmatprep.subr.bf16.mxu1 %v3276_v63  ;;  %3664 = vmatprep.subr.bf16.mxu0 %v3278_v0  ;;  %v3408_v63 = vunpack.c.h.s8.bf16 %v3123_v43  ;;  %v3410_v0 = vunpack.c.h.s8.bf16 %v3125_v61  ;;  %v3391_v6 = vunpack.c.l.s8.bf16 %v3125_v61  ;;  %v3032_v61 = vld [vmem:[%s6144_s13 + $0xf8] sm:$0xff] }
 0x3fc   :  { %3624 = vmatpush1.bf16.msra.mxu1 %v3275_v3  ;;  %v3105_v3 = vld [vmem:[%s6144_s13 + $0x340] sm:$0xff] }
 0x3fd   :  { %3665 = vmatpush1.bf16.msra.mxu0 %v3277_v4  ;;  %3625 = vmatprep.subr.bf16.mxu1 %v3257_v5  ;;  %v3107_v4 = vld [vmem:[%s6144_s13 + $0x350] sm:$0xff]  ;;  %v3389_v5 = vunpack.c.l.s8.bf16 %v3123_v43  ;;  %v3352_v11 = vunpack.c.l.s8.bf16 %v3105_v3 }
 0x3fe   :  { %3666 = vmatprep.subr.bf16.mxu0 %v3259_v52  ;;  %v3371_v52 = vunpack.c.h.s8.bf16 %v3105_v3  ;;  %v3354_v12 = vunpack.c.l.s8.bf16 %v3107_v4 }
 0x400   :  { %3626 = vmatpush1.bf16.msra.mxu1 %v3256_v7  ;;  %v3373_v7 = vunpack.c.h.s8.bf16 %v3107_v4 }
 0x401   :  { %3667 = vmatpush1.bf16.msra.mxu0 %v3258_v8  ;;  %3627 = vmatprep.subr.bf16.mxu1 %v3238_v1  ;;  %v3106_v8 = vld [vmem:[%s6144_s13 + $0x348] sm:$0xff]  ;;  %v3370_v1 = vunpack.c.h.s8.bf16 %v3104_v21 }
 0x402   :  { %3668 = vmatprep.subr.bf16.mxu0 %v3240_v10  ;;  %v3372_v10 = vunpack.c.h.s8.bf16 %v3106_v8  ;;  %v3353_v18 = vunpack.c.l.s8.bf16 %v3106_v8  ;;  %v3013_v8 = vld [vmem:[%s6144_s13 + $0x60] sm:$0xff] }
 0x404   :  { %3628 = vmatpush1.bf16.msra.mxu1 %v3237_v53  ;;  %v3086_v53 = vld [vmem:[%s6144_s13 + $0x2a8] sm:$0xff] }
 0x405   :  { %3669 = vmatpush1.bf16.msra.mxu0 %v3239_v14  ;;  %3629 = vmatprep.subr.bf16.mxu1 %v3219_v17  ;;  %v3088_v14 = vld [vmem:[%s6144_s13 + $0x2b8] sm:$0xff]  ;;  %v3351_v17 = vunpack.c.l.s8.bf16 %v3104_v21  ;;  %v3314_v26 = vunpack.c.l.s8.bf16 %v3086_v53 }
 0x406   :  { %3670 = vmatprep.subr.bf16.mxu0 %v3221_v20  ;;  %v3333_v20 = vunpack.c.h.s8.bf16 %v3086_v53  ;;  %v3316_v27 = vunpack.c.l.s8.bf16 %v3088_v14 }
 0x408   :  { %3630 = vmatpush1.bf16.msra.mxu1 %v3218_v23  ;;  %v3335_v23 = vunpack.c.h.s8.bf16 %v3088_v14 }
 0x409   :  { %3671 = vmatpush1.bf16.msra.mxu0 %v3220_v24  ;;  %3631 = vmatprep.subr.bf16.mxu1 %v3200_v16  ;;  %v3087_v24 = vld [vmem:[%s6144_s13 + $0x2b0] sm:$0xff]  ;;  %v3332_v16 = vunpack.c.h.s8.bf16 %v3085_v22 }
 0x40a   :  { %3672 = vmatprep.subr.bf16.mxu0 %v3202_v47  ;;  %v3334_v47 = vunpack.c.h.s8.bf16 %v3087_v24  ;;  %v3315_v13 = vunpack.c.l.s8.bf16 %v3087_v24  ;;  %v3146_v24 = vld [vmem:[%s6144_s13 + $0x488] sm:$0xff] }
 0x40c   :  { %3632 = vmatpush1.bf16.msra.mxu1 %v3199_v28  ;;  %v3071_v28 = vld [vmem:[%s6144_s13 + $0x230] sm:$0xff] }
 0x40d   :  { %3673 = vmatpush1.bf16.msra.mxu0 %v3201_v59  ;;  %3633 = vmatprep.subr.bf16.mxu1 %v3181_v29  ;;  %v3073_v59 = vld [vmem:[%s6144_s13 + $0x240] sm:$0xff]  ;;  %v3313_v29 = vunpack.c.l.s8.bf16 %v3085_v22  ;;  %v3280_v39 = vunpack.c.l.s8.bf16 %v3071_v28 }
 0x40e   :  { %3674 = vmatprep.subr.bf16.mxu0 %v3183_v32  ;;  %v3299_v32 = vunpack.c.h.s8.bf16 %v3071_v28 }
 0x410   :  { %3634 = vmatpush1.bf16.msra.mxu1 %v3180_v34  ;;  %v3301_v34 = vunpack.c.h.s8.bf16 %v3073_v59 }
 0x411   :  { %3675 = vmatpush1.bf16.msra.mxu0 %v3182_v35  ;;  %3635 = vmatprep.subr.bf16.mxu1 %v3162_v36  ;;  %v3072_v35 = vld [vmem:[%s6144_s13 + $0x238] sm:$0xff]  ;;  %v3298_v36 = vunpack.c.h.s8.bf16 %v3070_v33 }
 0x412   :  { %3676 = vmatprep.subr.bf16.mxu0 %v3164_v37  ;;  %v3300_v37 = vunpack.c.h.s8.bf16 %v3072_v35  ;;  %v3281_v46 = vunpack.c.l.s8.bf16 %v3072_v35  ;;  %v3127_v35 = vld [vmem:[%s6144_s13 + $0x3f0] sm:$0xff] }
 0x414   :  { %3636 = vmatpush1.bf16.msra.mxu1 %v3161_v42  ;;  %v3282_v42 = vunpack.c.l.s8.bf16 %v3073_v59 }
 0x415   :  { %3677 = vmatpush1.bf16.msra.mxu0 %v3163_v30  ;;  %3637 = vmatprep.subr.bf16.mxu1 %v3447_v45  ;;  %v3054_v30 = vld [vmem:[%s6144_s13 + $0x1a8] sm:$0xff]  ;;  %v3279_v45 = vunpack.c.l.s8.bf16 %v3070_v33 }
 0x416   :  { %3678 = vmatprep.subr.bf16.mxu0 %v3449_v31  ;;  %v3261_v31 = vunpack.c.h.s8.bf16 %v3052_v40  ;;  %v3244_v56 = vunpack.c.l.s8.bf16 %v3054_v30 }
 0x418   :  { %3638 = vmatpush2.bf16.msra.mxu1 %v3446_v50  ;;  %v3263_v50 = vunpack.c.h.s8.bf16 %v3054_v30 }
 0x419   :  { %3679 = vmatpush2.bf16.msra.mxu0 %v3448_v41  ;;  %3639 = vmatprep.subr.bf16.mxu1 %v3428_v51  ;;  %v3053_v41 = vld [vmem:[%s6144_s13 + $0x1a0] sm:$0xff]  ;;  %v3260_v51 = vunpack.c.h.s8.bf16 %v3051_v48 }
 0x41a   :  { %3680 = vmatprep.subr.bf16.mxu0 %v3430_v54  ;;  %v3262_v54 = vunpack.c.h.s8.bf16 %v3053_v41  ;;  %v3243_v43 = vunpack.c.l.s8.bf16 %v3053_v41  ;;  %v3108_v41 = vld [vmem:[%s6144_s13 + $0x358] sm:$0xff] }
 0x41c   :  { %3640 = vmatpush2.bf16.msra.mxu1 %v3427_v57  ;;  %v3033_v57 = vld [vmem:[%s6144_s13 + $0x100] sm:$0xff] }
 0x41d   :  { %3681 = vmatpush2.bf16.msra.mxu0 %v3429_v58  ;;  %3641 = vmatprep.subr.bf16.mxu1 %v3409_v60  ;;  %v3035_v58 = vld [vmem:[%s6144_s13 + $0x110] sm:$0xff]  ;;  %v3241_v60 = vunpack.c.l.s8.bf16 %v3051_v48  ;;  %v3204_v3 = vunpack.c.l.s8.bf16 %v3033_v57 }
 0x41e   :  { %3682 = vmatprep.subr.bf16.mxu0 %v3411_v44  ;;  %v3223_v44 = vunpack.c.h.s8.bf16 %v3033_v57  ;;  %v3206_v4 = vunpack.c.l.s8.bf16 %v3035_v58 }
 0x420   :  { %3642 = vmatpush2.bf16.msra.mxu1 %v3408_v63  ;;  %v3225_v63 = vunpack.c.h.s8.bf16 %v3035_v58 }
 0x421   :  { %3683 = vmatpush2.bf16.msra.mxu0 %v3410_v0  ;;  %3643 = vmatprep.subr.bf16.mxu1 %v3390_v62  ;;  %v3034_v0 = vld [vmem:[%s6144_s13 + $0x108] sm:$0xff]  ;;  %v3222_v62 = vunpack.c.h.s8.bf16 %v3032_v61 }
 0x422   :  { %3684 = vmatprep.subr.bf16.mxu0 %v3392_v2  ;;  %v3224_v2 = vunpack.c.h.s8.bf16 %v3034_v0  ;;  %v3205_v21 = vunpack.c.l.s8.bf16 %v3034_v0  ;;  %v3089_v0 = vld [vmem:[%s6144_s13 + $0x2c0] sm:$0xff] }
 0x424   :  { %3644 = vmatpush2.bf16.msra.mxu1 %v3389_v5  ;;  %v3014_v5 = vld [vmem:[%s6144_s13 + $0x68] sm:$0xff] }
 0x425   :  { %3685 = vmatpush2.bf16.msra.mxu0 %v3391_v6  ;;  %3645 = vmatprep.subr.bf16.mxu1 %v3371_v52  ;;  %v3016_v6 = vld [vmem:[%s6144_s13 + $0x78] sm:$0xff]  ;;  %v3203_v52 = vunpack.c.l.s8.bf16 %v3032_v61  ;;  %v3166_v53 = vunpack.c.l.s8.bf16 %v3014_v5 }
 0x426   :  { %3686 = vmatprep.subr.bf16.mxu0 %v3373_v7  ;;  %v3185_v7 = vunpack.c.h.s8.bf16 %v3014_v5  ;;  %v3168_v14 = vunpack.c.l.s8.bf16 %v3016_v6 }
 0x428   :  { %3646 = vmatpush2.bf16.msra.mxu1 %v3370_v1  ;;  %v3187_v1 = vunpack.c.h.s8.bf16 %v3016_v6 }
 0x429   :  { %3687 = vmatpush2.bf16.msra.mxu0 %v3372_v10  ;;  %3647 = vmatprep.subr.bf16.mxu1 %v3352_v11  ;;  %v3015_v10 = vld [vmem:[%s6144_s13 + $0x70] sm:$0xff]  ;;  %v3184_v11 = vunpack.c.h.s8.bf16 %v3013_v8 }
 0x42a   :  { %3688 = vmatprep.subr.bf16.mxu0 %v3354_v12  ;;  %v3186_v12 = vunpack.c.h.s8.bf16 %v3015_v10  ;;  %v3167_v22 = vunpack.c.l.s8.bf16 %v3015_v10 }
 0x42c   :  { %3648 = vmatpush2.bf16.msra.mxu1 %v3351_v17  ;;  %v3147_v17 = vld [vmem:[%s6144_s13 + $0x490] sm:$0xff] }
 0x42d   :  { %3689 = vmatpush2.bf16.msra.mxu0 %v3353_v18  ;;  %3649 = vmatprep.subr.bf16.mxu1 %v3333_v20  ;;  %v3149_v18 = vld [vmem:[%s6144_s13 + $0x4a0] sm:$0xff]  ;;  %v3165_v20 = vunpack.c.l.s8.bf16 %v3013_v8  ;;  %v3432_v28 = vunpack.c.l.s8.bf16 %v3147_v17  ;;  %v5921_v8 = vsub.s32 2, %v4880_v38 }
 0x42e   :  { %3690 = vmatprep.subr.bf16.mxu0 %v3335_v23  ;;  %v3451_v23 = vunpack.c.h.s8.bf16 %v3147_v17  ;;  %v3434_v59 = vunpack.c.l.s8.bf16 %v3149_v18  ;;  %v5935_v17 = vsub.s32 3, %v4880_v38 }
 0x430   :  { %3650 = vmatpush2.bf16.msra.mxu1 %v3332_v16  ;;  %v3453_v16 = vunpack.c.h.s8.bf16 %v3149_v18  ;;  %v5940_v18 = vld [vmem:[%s6150_s15] sm:$0xff] }
 0x431   :  { %3691 = vmatpush2.bf16.msra.mxu0 %v3334_v47  ;;  %3651 = vmatprep.subr.bf16.mxu1 %v3314_v26  ;;  %v3148_v47 = vld [vmem:[%s6144_s13 + $0x498] sm:$0xff]  ;;  %v3450_v26 = vunpack.c.h.s8.bf16 %v3146_v24 }
 0x432   :  { %3692 = vmatprep.subr.bf16.mxu0 %v3316_v27  ;;  %v3452_v27 = vunpack.c.h.s8.bf16 %v3148_v47  ;;  %v3433_v33 = vunpack.c.l.s8.bf16 %v3148_v47  ;;  %v4003_v47 = vrot.slane %v5940_v18, %v5921_v8 }
 0x434   :  { %3652 = vmatpush2.bf16.msra.mxu1 %v3313_v29  ;;  %v3128_v29 = vld [vmem:[%s6144_s13 + $0x3f8] sm:$0xff] }
 0x435   :  { %3693 = vmatpush2.bf16.msra.mxu0 %v3315_v13  ;;  %3703 = vmatprep.subr.bf16.mxu1 %v3299_v32  ;;  %v3130_v13 = vld [vmem:[%s6144_s13 + $0x408] sm:$0xff]  ;;  %v3431_v32 = vunpack.c.l.s8.bf16 %v3146_v24 }
 0x436   :  { %3744 = vmatprep.subr.bf16.mxu0 %v3301_v34  ;;  %v3413_v34 = vunpack.c.h.s8.bf16 %v3128_v29  ;;  %v3396_v30 = vunpack.c.l.s8.bf16 %v3130_v13 }
 0x437   :  { %3654 = vmatmul.mubr.bf16.vlgmr.msra.gmra.mxu1 %v5622_v19 }
 0x438   :  { %3695 = vmatmul.mubr.bf16.vlgmr.msra.gmra.mxu0 %v5622_v19  ;;  %3704 = vmatpush1.bf16.msra.mxu1 %v3298_v36  ;;  %v3415_v36 = vunpack.c.h.s8.bf16 %v3130_v13 }
 0x439   :  { %3735 = vmatprep.mubr.bf16.mxu1 %v5620_v15  ;;  %3745 = vmatpush1.bf16.msra.mxu0 %v3300_v37  ;;  %v3129_v37 = vld [vmem:[%s6144_s13 + $0x400] sm:$0xff] }
 0x43a   :  { %3776 = vmatprep.mubr.bf16.mxu0 %v5620_v15  ;;  %3705 = vmatprep.subr.bf16.mxu1 %v3280_v39  ;;  %v3412_v39 = vunpack.c.h.s8.bf16 %v3127_v35  ;;  %v3414_v40 = vunpack.c.h.s8.bf16 %v3129_v37  ;;  %v3395_v48 = vunpack.c.l.s8.bf16 %v3129_v37  ;;  %v4007_v37 = vrot.slane %v5940_v18, %v5935_v17 }
 0x43b   :  { %3746 = vmatprep.subr.bf16.mxu0 %v3282_v42  ;;  %v3394_v42 = vunpack.c.l.s8.bf16 %v3128_v29 }
 0x43c   :  { %3706 = vmatpush1.bf16.msra.mxu1 %v3279_v45  ;;  %v3109_v45 = vld [vmem:[%s6144_s13 + $0x360] sm:$0xff] }
 0x43d   :  { %3747 = vmatpush1.bf16.msra.mxu0 %v3281_v46  ;;  %3707 = vmatprep.subr.bf16.mxu1 %v3261_v31  ;;  %v3111_v46 = vld [vmem:[%s6144_s13 + $0x370] sm:$0xff]  ;;  %v3393_v31 = vunpack.c.l.s8.bf16 %v3127_v35  ;;  %v3356_v57 = vunpack.c.l.s8.bf16 %v3109_v45 }
 0x43e   :  { %3748 = vmatprep.subr.bf16.mxu0 %v3263_v50  ;;  %v3375_v50 = vunpack.c.h.s8.bf16 %v3109_v45  ;;  %v3358_v58 = vunpack.c.l.s8.bf16 %v3111_v46 }
 0x440   :  { %3708 = vmatpush1.bf16.msra.mxu1 %v3260_v51  ;;  %v3377_v51 = vunpack.c.h.s8.bf16 %v3111_v46 }
 0x441   :  { %3749 = vmatpush1.bf16.msra.mxu0 %v3262_v54  ;;  %3709 = vmatprep.subr.bf16.mxu1 %v3242_v55  ;;  %v3110_v54 = vld [vmem:[%s6144_s13 + $0x368] sm:$0xff]  ;;  %v3374_v55 = vunpack.c.h.s8.bf16 %v3108_v41 }
 0x442   :  { %3750 = vmatprep.subr.bf16.mxu0 %v3244_v56  ;;  %v3376_v56 = vunpack.c.h.s8.bf16 %v3110_v54  ;;  %v3357_v61 = vunpack.c.l.s8.bf16 %v3110_v54  ;;  %v3057_v54 = vld [vmem:[%s6144_s13 + $0x1c0] sm:$0xff] }
 0x444   :  { %3710 = vmatpush1.bf16.msra.mxu1 %v3241_v60  ;;  %v3090_v60 = vld [vmem:[%s6144_s13 + $0x2c8] sm:$0xff] }
 0x445   :  { %3751 = vmatpush1.bf16.msra.mxu0 %v3243_v43  ;;  %3711 = vmatprep.subr.bf16.mxu1 %v3223_v44  ;;  %v3092_v43 = vld [vmem:[%s6144_s13 + $0x2d8] sm:$0xff]  ;;  %v3355_v44 = vunpack.c.l.s8.bf16 %v3108_v41  ;;  %v3318_v5 = vunpack.c.l.s8.bf16 %v3090_v60 }
 0x446   :  { %3752 = vmatprep.subr.bf16.mxu0 %v3225_v63  ;;  %v3337_v63 = vunpack.c.h.s8.bf16 %v3090_v60  ;;  %v3320_v6 = vunpack.c.l.s8.bf16 %v3092_v43 }
 0x448   :  { %3712 = vmatpush1.bf16.msra.mxu1 %v3222_v62  ;;  %v3339_v62 = vunpack.c.h.s8.bf16 %v3092_v43 }
 0x449   :  { %3753 = vmatpush1.bf16.msra.mxu0 %v3224_v2  ;;  %3713 = vmatprep.subr.bf16.mxu1 %v3204_v3  ;;  %v3091_v2 = vld [vmem:[%s6144_s13 + $0x2d0] sm:$0xff]  ;;  %v3336_v3 = vunpack.c.h.s8.bf16 %v3089_v0 }
 0x44a   :  { %3754 = vmatprep.subr.bf16.mxu0 %v3206_v4  ;;  %v3338_v4 = vunpack.c.h.s8.bf16 %v3091_v2 }
 0x44c   :  { %3714 = vmatpush1.bf16.msra.mxu1 %v3203_v52  ;;  %v3075_v52 = vld [vmem:[%s6144_s13 + $0x250] sm:$0xff] }
 0x44d   :  { %3755 = vmatpush1.bf16.msra.mxu0 %v3205_v21  ;;  %3715 = vmatprep.subr.bf16.mxu1 %v3185_v7  ;;  %v3152_v21 = vld [vmem:[%s6144_s13 + $0x4b8] sm:$0xff]  ;;  %v3317_v7 = vunpack.c.l.s8.bf16 %v3089_v0  ;;  %v3303_v10 = vunpack.c.h.s8.bf16 %v3075_v52 }
 0x44e   :  { %3756 = vmatprep.subr.bf16.mxu0 %v3187_v1  ;;  %v3319_v1 = vunpack.c.l.s8.bf16 %v3091_v2  ;;  %v3037_v2 = vld [vmem:[%s6144_s13 + $0x120] sm:$0xff] }
 0x450   :  { %3716 = vmatpush1.bf16.msra.mxu1 %v3184_v11  ;;  %v5926_v11 = vld [vmem:[%s6149_s14] sm:$0xff] }
 0x451   :  { %3757 = vmatpush1.bf16.msra.mxu0 %v3186_v12  ;;  %3717 = vmatprep.subr.bf16.mxu1 %v3166_v53  ;;  %v3074_v12 = vld [vmem:[%s6144_s13 + $0x248] sm:$0xff]  ;;  %v3456_v53 = vunpack.c.h.s8.bf16 %v3152_v21 }
 0x452   :  { %3758 = vmatprep.subr.bf16.mxu0 %v3168_v14  ;;  %v3076_v14 = vld [vmem:[%s6144_s13 + $0x258] sm:$0xff] }
 0x453   :  { %v3304_v24 = vunpack.c.h.s8.bf16 %v3076_v14  ;;  %v3285_v45 = vunpack.c.l.s8.bf16 %v3076_v14 }
 0x454   :  { %3718 = vmatpush1.bf16.msra.mxu1 %v3165_v20  ;;  %v3875_v20 = vrot.slane %v5926_v11, %v5456_v9 }
 0x455   :  { %3759 = vmatpush1.bf16.msra.mxu0 %v3167_v22  ;;  %3719 = vmatprep.subr.bf16.mxu1 %v3451_v23  ;;  %v3883_v22 = vrot.slane %v5926_v11, %v5921_v8  ;;  %v3302_v23 = vunpack.c.h.s8.bf16 %v3074_v12 }
 0x456   :  { %3760 = vmatprep.subr.bf16.mxu0 %v3453_v16  ;;  %v3995_v16 = vrot.slane %v5940_v18, %v5456_v9 }
 0x458   :  { %3720 = vmatpush2.bf16.msra.mxu1 %v3450_v26  ;;  %v3879_v26 = vrot.slane %v5926_v11, %v5466_v25 }
 0x459   :  { %3761 = vmatpush2.bf16.msra.mxu0 %v3452_v27  ;;  %3721 = vmatprep.subr.bf16.mxu1 %v3432_v28  ;;  %v3887_v27 = vrot.slane %v5926_v11, %v5935_v17  ;;  %v3056_v28 = vld [vmem:[%s6144_s13 + $0x1b8] sm:$0xff] }
 0x45a   :  { %3762 = vmatprep.subr.bf16.mxu0 %v3434_v59  ;;  %v5960_v59 = vld [vmem:[%s6144_s13 + $0x420] sm:$0xff]  ;;  %v3265_v46 = vunpack.c.h.s8.bf16 %v3056_v28  ;;  %v3246_v0 = vunpack.c.l.s8.bf16 %v3056_v28 }
 0x45c   :  { %3722 = vmatpush2.bf16.msra.mxu1 %v3431_v32  ;;  %v3999_v32 = vrot.slane %v5940_v18, %v5466_v25 }
 0x45d   :  { %3763 = vmatpush2.bf16.msra.mxu0 %v3433_v33  ;;  %3723 = vmatprep.subr.bf16.mxu1 %v3413_v34  ;;  %v3284_v33 = vunpack.c.l.s8.bf16 %v3075_v52  ;;  %v3437_v34 = vunpack.c.l.s8.bf16 %v3152_v21  ;;  %v3114_v52 = vld [vmem:[%s6144_s13 + $0x388] sm:$0xff] }
 0x45e   :  { %3764 = vmatprep.subr.bf16.mxu0 %v3415_v36  ;;  %v3380_v14 = vunpack.c.h.s8.bf16 %v3114_v52 }
 0x460   :  { %3724 = vmatpush2.bf16.msra.mxu1 %v3412_v39  ;;  %v3283_v39 = vunpack.c.l.s8.bf16 %v3074_v12  ;;  %v3227_v12 = vunpack.c.h.s8.bf16 %v3037_v2 }
 0x461   :  { %3765 = vmatpush2.bf16.msra.mxu0 %v3414_v40  ;;  %3725 = vmatprep.subr.bf16.mxu1 %v3394_v42  ;;  %v3055_v40 = vld [vmem:[%s6144_s13 + $0x1b0] sm:$0xff] }
 0x462   :  { %3766 = vmatprep.subr.bf16.mxu0 %v3396_v30 }
 0x464   :  { %3726 = vmatpush2.bf16.msra.mxu1 %v3393_v31  ;;  %v3418_v31 = vunpack.c.h.s8.bf16 %v5960_v59 }
 0x465   :  { %3767 = vmatpush2.bf16.msra.mxu0 %v3395_v48  ;;  %3727 = vmatprep.subr.bf16.mxu1 %v3375_v50 }
 0x466   :  { %3768 = vmatprep.subr.bf16.mxu0 %v3377_v51 }
 0x468   :  { %3728 = vmatpush2.bf16.msra.mxu1 %v3374_v55 }
 0x469   :  { %3769 = vmatpush2.bf16.msra.mxu0 %v3376_v56  ;;  %3729 = vmatprep.subr.bf16.mxu1 %v3356_v57  ;;  %v3264_v57 = vunpack.c.h.s8.bf16 %v3055_v40 }
 0x46a   :  { %3770 = vmatprep.subr.bf16.mxu0 %v3358_v58 }
 0x46c   :  { %3730 = vmatpush2.bf16.msra.mxu1 %v3355_v44 }
 0x46d   :  { %3771 = vmatpush2.bf16.msra.mxu0 %v3357_v61  ;;  %3731 = vmatprep.subr.bf16.mxu1 %v3337_v63 }
 0x46e   :  { %3772 = vmatprep.subr.bf16.mxu0 %v3339_v62  ;;  %v3399_v62 = vunpack.c.l.s8.bf16 %v5960_v59 }
 0x470   :  { %3732 = vmatpush2.bf16.msra.mxu1 %v3336_v3 }
 0x471   :  { %3773 = vmatpush2.bf16.msra.mxu0 %v3338_v4  ;;  %3733 = vmatprep.subr.bf16.mxu1 %v3318_v5 }
 0x472   :  { %3774 = vmatprep.subr.bf16.mxu0 %v3320_v6 }
 0x474   :  { %3734 = vmatpush2.bf16.msra.mxu1 %v3317_v7 }
 0x475   :  { %3775 = vmatpush2.bf16.msra.mxu0 %v3319_v1  ;;  %3785 = vmatprep.subr.bf16.mxu1 %v3303_v10  ;;  %v3245_v1 = vunpack.c.l.s8.bf16 %v3055_v40  ;;  %v3247_v10 = vunpack.c.l.s8.bf16 %v3057_v54 }
 0x476   :  { %4619 = vmatprep.subr.bf16.mxu0 %v3456_v53  ;;  %v3036_v53 = vld [vmem:[%s6144_s13 + $0x118] sm:$0xff] }
 0x477   :  { %3736 = vmatmul.mubr.bf16.vlgmr.msra.gmra.mxu1 %v5622_v19  ;;  %v3491_v29 = vpop.f32.mrf.mxu1  ;;  %v3532_v13 = vpop.f32.mrf.mxu0 }
 0x478   :  { %3777 = vmatmul.mubr.bf16.vlgmr.msra.gmra.mxu0 %v5622_v19  ;;  %v3967_v35 = vmul.f32 %v3875_v20, %v3491_v29  ;;  %v3969_v36 = vmul.f32 %v3883_v22, %v3532_v13  ;;  %3786 = vmatpush1.bf16.msra.mxu1 %v3302_v23  ;;  %v3038_v20 = vld [vmem:[%s6144_s13 + $0x128] sm:$0xff]  ;;  %v3226_v22 = vunpack.c.h.s8.bf16 %v3036_v53  ;;  %v3017_v29 = vld [vmem:[%s6144_s13 + $0x80] sm:$0xff] }
 0x479   :  { %3817 = vmatprep.mubr.bf16.mxu1 %v5620_v15  ;;  %4620 = vmatpush3.bf16.msra.mxu0 %v3304_v24  ;;  %v3493_v42 = vpop.f32.mrf.mxu1  ;;  %v3534_v30 = vpop.f32.mrf.mxu0  ;;  %v3228_v23 = vunpack.c.h.s8.bf16 %v3038_v20  ;;  %v3208_v24 = vunpack.c.l.s8.bf16 %v3037_v2  ;;  %v3209_v28 = vunpack.c.l.s8.bf16 %v3038_v20 }
 0x47a   :  { %v4087_v48 = vadd.f32 %v3995_v16, %v3967_v35  ;;  %v4089_v50 = vadd.f32 %v4003_v47, %v3969_v36  ;;  %3858 = vmatprep.mubr.bf16.mxu0 %v5620_v15  ;;  %v3968_v41 = vmul.f32 %v3879_v26, %v3493_v42  ;;  %v3970_v51 = vmul.f32 %v3887_v27, %v3534_v30  ;;  %v3018_v47 = vld [vmem:[%s6144_s13 + $0x88] sm:$0xff]  ;;  %v3095_v26 = vld [vmem:[%s6144_s13 + $0x2f0] sm:$0xff] }
 0x47b   :  { %3787 = vmatprep.subr.bf16.mxu1 %v3284_v33  ;;  %4621 = vmatprep.subr.bf16.mxu0 %v3437_v34  ;;  %v3495_v55 = vpop.f32.mrf.mxu1  ;;  %v3536_v56 = vpop.f32.mrf.mxu0  ;;  %v3266_v15 = vunpack.c.h.s8.bf16 %v3057_v54  ;;  %v3361_v16 = vunpack.c.l.s8.bf16 %v3114_v52  ;;  %v3207_v27 = vunpack.c.l.s8.bf16 %v3036_v53  ;;  %v3189_v59 = vunpack.c.h.s8.bf16 %v3018_v47  ;;  %v3151_v42 = vld [vmem:[%s6144_s13 + $0x4b0] sm:$0xff]  ;;  %v3150_v54 = vld [vmem:[%s6144_s13 + $0x4a8] sm:$0xff]  ;;  %v3112_v52 = vld [vmem:[%s6144_s13 + $0x378] sm:$0xff] }
 0x47c   :  { %v4106_v58 = vsub.f32 0.0, %v4087_v48  ;;  %v4108_v60 = vsub.f32 0.0, %v4089_v50  ;;  %v4088_v43 = vadd.f32 %v3999_v32, %v3968_v41  ;;  %v4090_v44 = vadd.f32 %v4007_v37, %v3970_v51  ;;  %3788 = vmatpush1.bf16.msra.mxu1 %v3283_v39  ;;  %v3019_v32 = vld [vmem:[%s6144_s13 + $0x90] sm:$0xff]  ;;  %v3094_v53 = vld [vmem:[%s6144_s13 + $0x2e8] sm:$0xff] }
 0x47d   :  { %4622 = vmatpush3.bf16.msra.mxu0 %v3285_v45  ;;  %v3496_v61 = vpop.f32.mrf.mxu1  ;;  %v3537_v63 = vpop.f32.mrf.mxu0  ;;  %3789 = vmatprep.subr.bf16.mxu1 %v3265_v46  ;;  %v3342_v13 = vunpack.c.h.s8.bf16 %v3095_v26  ;;  %v3188_v33 = vunpack.c.h.s8.bf16 %v3017_v29  ;;  %v3190_v35 = vunpack.c.h.s8.bf16 %v3019_v32  ;;  %v3170_v36 = vunpack.c.l.s8.bf16 %v3018_v47 }
 0x47e   :  { %v4125_v3 = vmul.f32 1.442695, %v4106_v58  ;;  %v4129_v4 = vmul.f32 1.442695, %v4108_v60  ;;  %v4107_v5 = vsub.f32 0.0, %v4088_v43  ;;  %v4109_v6 = vsub.f32 0.0, %v4090_v44  ;;  %4623 = vmatprep.subr.bf16.mxu0 %v3418_v31 }
 0x47f   :  { %v3323_v40 = vunpack.c.l.s8.bf16 %v3095_v26  ;;  %v3169_v48 = vunpack.c.l.s8.bf16 %v3017_v29  ;;  %v3171_v41 = vunpack.c.l.s8.bf16 %v3019_v32  ;;  %v3455_v51 = vunpack.c.h.s8.bf16 %v3151_v42  ;;  %v3131_v43 = vld [vmem:[%s6144_s13 + $0x410] sm:$0xff] }
 0x480   :  { %4648 = vpow2.f32 %v4125_v3  ;;  %v4127_v21 = vmul.f32 1.442695, %v4107_v5  ;;  %v4131_v7 = vmul.f32 1.442695, %v4109_v6  ;;  %3790 = vmatpush1.bf16.msra.mxu1 %v3264_v57  ;;  %v3454_v55 = vunpack.c.h.s8.bf16 %v3150_v54  ;;  %v3132_v57 = vld [vmem:[%s6144_s13 + $0x418] sm:$0xff] }
 0x481   :  { %4650 = vpow2.f32 %v4129_v4  ;;  %4624 = vmatpush3.bf16.msra.mxu0 %v3266_v15  ;;  %3791 = vmatprep.subr.bf16.mxu1 %v3246_v0  ;;  %v3436_v56 = vunpack.c.l.s8.bf16 %v3151_v42  ;;  %v3435_v58 = vunpack.c.l.s8.bf16 %v3150_v54  ;;  %v3417_v60 = vunpack.c.h.s8.bf16 %v3132_v57  ;;  %v3113_v0 = vld [vmem:[%s6144_s13 + $0x380] sm:$0xff] }
 0x482   :  { %4652 = vpow2.f32 %v4127_v21  ;;  %4625 = vmatprep.subr.bf16.mxu0 %v3399_v62  ;;  %v3416_v44 = vunpack.c.h.s8.bf16 %v3131_v43  ;;  %v3398_v63 = vunpack.c.l.s8.bf16 %v3132_v57  ;;  %v3397_v4 = vunpack.c.l.s8.bf16 %v3131_v43 }
 0x483   :  { %4654 = vpow2.f32 %v4131_v7  ;;  %v3379_v6 = vunpack.c.h.s8.bf16 %v3113_v0  ;;  %v3341_v20 = vunpack.c.h.s8.bf16 %v3094_v53  ;;  %v6033_v47 = vsub.s32 4, %v4880_v38 }
 0x484   :  { %3792 = vmatpush1.bf16.msra.mxu1 %v3245_v1  ;;  %v3378_v1 = vunpack.c.h.s8.bf16 %v3112_v52  ;;  %v6036_v26 = vsub.s32 6, %v4880_v38 }
 0x485   :  { %4626 = vmatpush3.bf16.msra.mxu0 %v3247_v10  ;;  %3793 = vmatprep.subr.bf16.mxu1 %v3227_v12  ;;  %v3360_v12 = vunpack.c.l.s8.bf16 %v3113_v0 }
 0x486   :  { %4627 = vmatprep.subr.bf16.mxu0 %v3380_v14  ;;  %v3359_v14 = vunpack.c.l.s8.bf16 %v3112_v52  ;;  %v3899_v29 = vrot.slane %v5926_v11, %v6036_v26  ;;  %v4019_v32 = vrot.slane %v5940_v18, %v6036_v26 }
 0x488   :  { %3794 = vmatpush1.bf16.msra.mxu1 %v3226_v22  ;;  %v3093_v22 = vld [vmem:[%s6144_s13 + $0x2e0] sm:$0xff] }
 0x489   :  { %4628 = vmatpush3.bf16.msra.mxu0 %v3228_v23  ;;  %3795 = vmatprep.subr.bf16.mxu1 %v3208_v24  ;;  %v3340_v23 = vunpack.c.h.s8.bf16 %v3093_v22  ;;  %v3322_v24 = vunpack.c.l.s8.bf16 %v3094_v53 }
 0x48a   :  { %4629 = vmatprep.subr.bf16.mxu0 %v3361_v16  ;;  %v3321_v16 = vunpack.c.l.s8.bf16 %v3093_v22 }
 0x48c   :  { %3796 = vmatpush1.bf16.msra.mxu1 %v3207_v27  ;;  %v6039_v27 = vsub.s32 5, %v4880_v38 }
 0x48d   :  { %v4649_v34 = vpop.eup %4648  ;;  %4630 = vmatpush3.bf16.msra.mxu0 %v3209_v28  ;;  %3797 = vmatprep.subr.bf16.mxu1 %v3189_v59  ;;  %v6042_v28 = vsub.s32 7, %v4880_v38  ;;  %v3891_v59 = vrot.slane %v5926_v11, %v6033_v47 }
 0x48e   :  { %v4651_v37 = vpop.eup %4650  ;;  %v4163_v39 = vadd.f32 1.0, %v4649_v34  ;;  %4631 = vmatprep.subr.bf16.mxu0 %v3342_v13  ;;  %v4011_v13 = vrot.slane %v5940_v18, %v6033_v47 }
 0x48f   :  { %v4653_v30 = vpop.eup %4652  ;;  %v4165_v45 = vadd.f32 1.0, %v4651_v37  ;;  %v3903_v38 = vrot.slane %v5926_v11, %v6042_v28 }
 0x490   :  { %v4655_v46 = vpop.eup %4654  ;;  %4656 = vrcp.f32 %v4163_v39  ;;  %v4164_v31 = vadd.f32 1.0, %v4653_v30  ;;  %3798 = vmatpush1.bf16.msra.mxu1 %v3188_v33  ;;  %v3895_v33 = vrot.slane %v5926_v11, %v6039_v27  ;;  %v4015_v39 = vrot.slane %v5940_v18, %v6039_v27 }
 0x491   :  { %4658 = vrcp.f32 %v4165_v45  ;;  %v4166_v50 = vadd.f32 1.0, %v4655_v46  ;;  %4632 = vmatpush3.bf16.msra.mxu0 %v3190_v35  ;;  %3799 = vmatprep.subr.bf16.mxu1 %v3170_v36 }
 0x492   :  { %4660 = vrcp.f32 %v4164_v31  ;;  %4633 = vmatprep.subr.bf16.mxu0 %v3323_v40  ;;  %v4023_v40 = vrot.slane %v5940_v18, %v6042_v28 }
 0x493   :  { %4662 = vrcp.f32 %v4166_v50 }
 0x494   :  { %3800 = vmatpush1.bf16.msra.mxu1 %v3169_v48 }
 0x495   :  { %4634 = vmatpush3.bf16.msra.mxu0 %v3171_v41  ;;  %3801 = vmatprep.subr.bf16.mxu1 %v3455_v51 }
 0x498   :  { %3859 = vmatmul.mubr.bf16.vlgmr.msra.gmra.mxu0 %v5622_v19  ;;  %3802 = vmatpush2.bf16.msra.mxu1 %v3454_v55 }
 0x499   :  { %3803 = vmatprep.subr.bf16.mxu1 %v3436_v56 }
 0x49c   :  { %3804 = vmatpush2.bf16.msra.mxu1 %v3435_v58 }
 0x49d   :  { %v4657_v61 = vpop.eup %4656  ;;  %3805 = vmatprep.subr.bf16.mxu1 %v3417_v60 }
 0x49e   :  { %v4659_v15 = vpop.eup %4658 }
 0x49f   :  { %v4661_v62 = vpop.eup %4660 }
 0x4a0   :  { %v4663_v2 = vpop.eup %4662  ;;  %v4220_v3 = vcombine.low %v4657_v61, %v4661_v62  ;;  %3806 = vmatpush2.bf16.msra.mxu1 %v3416_v44 }
 0x4a1   :  { %v4221_v5 = vcombine.low %v4659_v15, %v4663_v2  ;;  %3807 = vmatprep.subr.bf16.mxu1 %v3398_v63 }
 0x4a2   :  { %v4228_v21 = vrot.slane %v4220_v3, %v4889_v49 }
 0x4a3   :  { %v4235_v7 = vrot.slane %v4221_v5, %v4889_v49 }
 0x4a4   :  { %3808 = vmatpush2.bf16.msra.mxu1 %v3397_v4 }
 0x4a5   :  { %v4236_v10 = vcombine.low %v4228_v21, %v4235_v7  ;;  %3809 = vmatprep.subr.bf16.mxu1 %v3379_v6 }
 0x4a7   :  { %4309 = vst [vmem:[%s6151_s16] sm:$0xff] %v4236_v10 }
 0x4a8   :  { %3810 = vmatpush2.bf16.msra.mxu1 %v3378_v1 }
 0x4a9   :  { %3811 = vmatprep.subr.bf16.mxu1 %v3360_v12 }
 0x4ac   :  { %3812 = vmatpush2.bf16.msra.mxu1 %v3359_v14  ;;  %v6069_v14 = vld [vmem:[%s6149_s14 + $0x8] sm:$0xff] }
 0x4ad   :  { %3813 = vmatprep.subr.bf16.mxu1 %v3341_v20  ;;  %v6074_v20 = vld [vmem:[%s6150_s15 + $0x8] sm:$0xff]  ;;  %v3907_v22 = vrot.slane %v6069_v14, %v5456_v9 }
 0x4b0   :  { %3814 = vmatpush2.bf16.msra.mxu1 %v3340_v23  ;;  %v3915_v23 = vrot.slane %v6069_v14, %v5921_v8 }
 0x4b1   :  { %3815 = vmatprep.subr.bf16.mxu1 %v3322_v24  ;;  %v4027_v24 = vrot.slane %v6074_v20, %v5456_v9 }
 0x4b4   :  { %3816 = vmatpush2.bf16.msra.mxu1 %v3321_v16  ;;  %v3911_v16 = vrot.slane %v6069_v14, %v5466_v25 }
 0x4b7   :  { %v3573_v34 = vpop.f32.mrf.mxu1  ;;  %v3614_v35 = vpop.f32.mrf.mxu0  ;;  %3818 = vmatmul.mubr.bf16.vlgmr.msra.gmra.mxu1 %v5622_v19 }
 0x4b8   :  { %v3971_v36 = vmul.f32 %v3891_v59, %v3573_v34  ;;  %v3973_v37 = vmul.f32 %v3899_v29, %v3614_v35  ;;  %v4035_v29 = vrot.slane %v6074_v20, %v5921_v8 }
 0x4b9   :  { %v3575_v42 = vpop.f32.mrf.mxu1  ;;  %v3616_v30 = vpop.f32.mrf.mxu0 }
 0x4ba   :  { %v4091_v45 = vadd.f32 %v4011_v13, %v3971_v36  ;;  %v4093_v46 = vadd.f32 %v4019_v32, %v3973_v37  ;;  %v3972_v31 = vmul.f32 %v3895_v33, %v3575_v42  ;;  %v3974_v48 = vmul.f32 %v3903_v38, %v3616_v30 }
 0x4bb   :  { %v3577_v50 = vpop.f32.mrf.mxu1  ;;  %v3618_v11 = vpop.f32.mrf.mxu0  ;;  %v3919_v13 = vrot.slane %v6069_v14, %v5935_v17  ;;  %v4031_v38 = vrot.slane %v6074_v20, %v5466_v25  ;;  %v4039_v36 = vrot.slane %v6074_v20, %v5935_v17 }
 0x4bc   :  { %v4110_v41 = vsub.f32 0.0, %v4091_v45  ;;  %v4112_v51 = vsub.f32 0.0, %v4093_v46  ;;  %v4092_v54 = vadd.f32 %v4015_v39, %v3972_v31  ;;  %v4094_v19 = vadd.f32 %v4023_v40, %v3974_v48 }
 0x4bd   :  { %v3578_v55 = vpop.f32.mrf.mxu1  ;;  %v3619_v56 = vpop.f32.mrf.mxu0 }
 0x4be   :  { %v4133_v57 = vmul.f32 1.442695, %v4110_v41  ;;  %v4137_v58 = vmul.f32 1.442695, %v4112_v51  ;;  %v4111_v60 = vsub.f32 0.0, %v4092_v54  ;;  %v4113_v43 = vsub.f32 0.0, %v4094_v19 }
 0x4c0   :  { %4664 = vpow2.f32 %v4133_v57  ;;  %v4135_v18 = vmul.f32 1.442695, %v4111_v60  ;;  %v4139_v44 = vmul.f32 1.442695, %v4113_v43 }
 0x4c1   :  { %4666 = vpow2.f32 %v4137_v58 }
 0x4c2   :  { %4668 = vpow2.f32 %v4135_v18 }
 0x4c3   :  { %4670 = vpow2.f32 %v4139_v44 }
 0x4cd   :  { %v4665_v61 = vpop.eup %4664 }
 0x4ce   :  { %v4667_v63 = vpop.eup %4666  ;;  %v4167_v15 = vadd.f32 1.0, %v4665_v61 }
 0x4cf   :  { %v4669_v0 = vpop.eup %4668  ;;  %v4169_v62 = vadd.f32 1.0, %v4667_v63 }
 0x4d0   :  { %v4671_v2 = vpop.eup %4670  ;;  %4672 = vrcp.f32 %v4167_v15  ;;  %v4168_v3 = vadd.f32 1.0, %v4669_v0 }
 0x4d1   :  { %4674 = vrcp.f32 %v4169_v62  ;;  %v4170_v4 = vadd.f32 1.0, %v4671_v2 }
 0x4d2   :  { %4676 = vrcp.f32 %v4168_v3 }
 0x4d3   :  { %4678 = vrcp.f32 %v4170_v4 }
 0x4dd   :  { %v4673_v5 = vpop.eup %4672 }
 0x4de   :  { %v4675_v6 = vpop.eup %4674 }
 0x4df   :  { %v4677_v52 = vpop.eup %4676 }
 0x4e0   :  { %v4679_v21 = vpop.eup %4678  ;;  %v4237_v7 = vcombine.low %v4673_v5, %v4677_v52 }
 0x4e1   :  { %v4238_v1 = vcombine.low %v4675_v6, %v4679_v21 }
 0x4e2   :  { %v4245_v10 = vrot.slane %v4237_v7, %v4889_v49  ;;  %v3923_v7 = vrot.slane %v6069_v14, %v6033_v47 }
 0x4e3   :  { %v4252_v12 = vrot.slane %v4238_v1, %v4889_v49  ;;  %v3931_v1 = vrot.slane %v6069_v14, %v6036_v26 }
 0x4e5   :  { %v4253_v53 = vcombine.low %v4245_v10, %v4252_v12  ;;  %v4043_v10 = vrot.slane %v6074_v20, %v6033_v47  ;;  %v3927_v12 = vrot.slane %v6069_v14, %v6039_v27  ;;  %v4055_v47 = vrot.slane %v6074_v20, %v6042_v28 }
 0x4e7   :  { %4310 = vst [vmem:[%s6151_s16 + $0x8] sm:$0xff] %v4253_v53 }
 0x4f7   :  { %v3655_v59 = vpop.f32.mrf.mxu1 }
 0x4f8   :  { %v3975_v32 = vmul.f32 %v3907_v22, %v3655_v59  ;;  %v3696_v33 = vpop.f32.mrf.mxu0  ;;  %v4051_v22 = vrot.slane %v6074_v20, %v6036_v26  ;;  %v4047_v59 = vrot.slane %v6074_v20, %v6039_v27 }
 0x4f9   :  { %v3977_v34 = vmul.f32 %v3915_v23, %v3696_v33  ;;  %v3657_v35 = vpop.f32.mrf.mxu1  ;;  %v3935_v23 = vrot.slane %v6069_v14, %v6042_v28 }
 0x4fa   :  { %v4095_v37 = vadd.f32 %v4027_v24, %v3975_v32  ;;  %v3976_v39 = vmul.f32 %v3911_v16, %v3657_v35  ;;  %v3698_v40 = vpop.f32.mrf.mxu0 }
 0x4fb   :  { %v4097_v42 = vadd.f32 %v4035_v29, %v3977_v34  ;;  %v3978_v30 = vmul.f32 %v3919_v13, %v3698_v40  ;;  %v3659_v45 = vpop.f32.mrf.mxu1 }
 0x4fc   :  { %v4114_v46 = vsub.f32 0.0, %v4095_v37  ;;  %v4096_v31 = vadd.f32 %v4031_v38, %v3976_v39  ;;  %v3700_v48 = vpop.f32.mrf.mxu0 }
 0x4fd   :  { %v4116_v50 = vsub.f32 0.0, %v4097_v42  ;;  %v4098_v11 = vadd.f32 %v4039_v36, %v3978_v30  ;;  %v3660_v41 = vpop.f32.mrf.mxu1 }
 0x4fe   :  { %v4141_v51 = vmul.f32 1.442695, %v4114_v46  ;;  %v4115_v54 = vsub.f32 0.0, %v4096_v31  ;;  %v3701_v19 = vpop.f32.mrf.mxu0 }
 0x4ff   :  { %v4145_v55 = vmul.f32 1.442695, %v4116_v50  ;;  %v4117_v56 = vsub.f32 0.0, %v4098_v11 }
 0x500   :  { %4680 = vpow2.f32 %v4141_v51  ;;  %v4143_v57 = vmul.f32 1.442695, %v4115_v54 }
 0x501   :  { %4682 = vpow2.f32 %v4145_v55  ;;  %v4147_v17 = vmul.f32 1.442695, %v4117_v56 }
 0x502   :  { %4684 = vpow2.f32 %v4143_v57 }
 0x503   :  { %4686 = vpow2.f32 %v4147_v17 }
 0x50d   :  { %v4681_v58 = vpop.eup %4680 }
 0x50e   :  { %v4683_v60 = vpop.eup %4682  ;;  %v4171_v43 = vadd.f32 1.0, %v4681_v58 }
 0x50f   :  { %v4685_v18 = vpop.eup %4684  ;;  %v4173_v44 = vadd.f32 1.0, %v4683_v60 }
 0x510   :  { %v4687_v61 = vpop.eup %4686  ;;  %4688 = vrcp.f32 %v4171_v43  ;;  %v4172_v63 = vadd.f32 1.0, %v4685_v18 }
 0x511   :  { %4690 = vrcp.f32 %v4173_v44  ;;  %v4174_v15 = vadd.f32 1.0, %v4687_v61 }
 0x512   :  { %4692 = vrcp.f32 %v4172_v63 }
 0x513   :  { %4694 = vrcp.f32 %v4174_v15 }
 0x51d   :  { %v4689_v0 = vpop.eup %4688 }
 0x51e   :  { %v4691_v62 = vpop.eup %4690 }
 0x51f   :  { %v4693_v2 = vpop.eup %4692 }
 0x520   :  { %v4695_v3 = vpop.eup %4694  ;;  %v4254_v4 = vcombine.low %v4689_v0, %v4693_v2  ;;  %v3868_v2 = vld [vmem:[%s6149_s14 + $0x10] sm:$0x7] }
 0x521   :  { %v4255_v5 = vcombine.low %v4691_v62, %v4695_v3 }
 0x522   :  { %v4262_v6 = vrot.slane %v4254_v4, %v4889_v49  ;;  %v3947_v4 = vrot.slane %v3868_v2, %v5921_v8 }
 0x523   :  { %v4269_v52 = vrot.slane %v4255_v5, %v4889_v49  ;;  %v3988_v5 = vld [vmem:[%s6150_s15 + $0x10] sm:$0x7] }
 0x525   :  { %v4270_v21 = vcombine.low %v4262_v6, %v4269_v52  ;;  %v4067_v52 = vrot.slane %v3988_v5, %v5921_v8 }
 0x527   :  { %4311 = vst [vmem:[%s6151_s16 + $0x10] sm:$0xff] %v4270_v21 }
 0x537   :  { %v3737_v53 = vpop.f32.mrf.mxu1 }
 0x538   :  { %v3979_v24 = vmul.f32 %v3923_v7, %v3737_v53  ;;  %v3778_v16 = vpop.f32.mrf.mxu0 }
 0x539   :  { %v3981_v29 = vmul.f32 %v3931_v1, %v3778_v16  ;;  %v3739_v13 = vpop.f32.mrf.mxu1  ;;  %v3939_v1 = vrot.slane %v3868_v2, %v5456_v9 }
 0x53a   :  { %v4099_v32 = vadd.f32 %v4043_v10, %v3979_v24  ;;  %v3980_v33 = vmul.f32 %v3927_v12, %v3739_v13  ;;  %v3780_v38 = vpop.f32.mrf.mxu0  ;;  %v4059_v10 = vrot.slane %v3988_v5, %v5456_v9  ;;  %v3943_v12 = vrot.slane %v3868_v2, %v5466_v25 }
 0x53b   :  { %v4101_v34 = vadd.f32 %v4051_v22, %v3981_v29  ;;  %v3982_v35 = vmul.f32 %v3935_v23, %v3780_v38  ;;  %v3741_v36 = vpop.f32.mrf.mxu1  ;;  %v4063_v24 = vrot.slane %v3988_v5, %v5466_v25 }
 0x53c   :  { %v4118_v26 = vsub.f32 0.0, %v4099_v32  ;;  %v4100_v37 = vadd.f32 %v4047_v59, %v3980_v33  ;;  %v3782_v39 = vpop.f32.mrf.mxu0 }
 0x53d   :  { %v4120_v14 = vsub.f32 0.0, %v4101_v34  ;;  %v4102_v40 = vadd.f32 %v4055_v47, %v3982_v35  ;;  %v3742_v42 = vpop.f32.mrf.mxu1 }
 0x53e   :  { %v4149_v30 = vmul.f32 1.442695, %v4118_v26  ;;  %v4119_v45 = vsub.f32 0.0, %v4100_v37  ;;  %v3783_v27 = vpop.f32.mrf.mxu0 }
 0x53f   :  { %v4153_v46 = vmul.f32 1.442695, %v4120_v14  ;;  %v4121_v31 = vsub.f32 0.0, %v4102_v40 }
 0x540   :  { %4696 = vpow2.f32 %v4149_v30  ;;  %v4151_v48 = vmul.f32 1.442695, %v4119_v45 }
 0x541   :  { %4698 = vpow2.f32 %v4153_v46  ;;  %v4155_v28 = vmul.f32 1.442695, %v4121_v31 }
 0x542   :  { %4700 = vpow2.f32 %v4151_v48 }
 0x543   :  { %4702 = vpow2.f32 %v4155_v28 }
 0x54d   :  { %v4697_v20 = vpop.eup %4696 }
 0x54e   :  { %v4699_v50 = vpop.eup %4698  ;;  %v4175_v11 = vadd.f32 1.0, %v4697_v20 }
 0x54f   :  { %v4701_v41 = vpop.eup %4700  ;;  %v4177_v51 = vadd.f32 1.0, %v4699_v50 }
 0x550   :  { %v4703_v54 = vpop.eup %4702  ;;  %4704 = vrcp.f32 %v4175_v11  ;;  %v4176_v19 = vadd.f32 1.0, %v4701_v41 }
 0x551   :  { %4706 = vrcp.f32 %v4177_v51  ;;  %v4178_v55 = vadd.f32 1.0, %v4703_v54 }
 0x552   :  { %4708 = vrcp.f32 %v4176_v19 }
 0x553   :  { %4710 = vrcp.f32 %v4178_v55 }
 0x558   :  { %v4635_v56 = vpop.f32.mrf.mxu0 }
 0x55a   :  { %v4636_v57 = vpop.f32.mrf.mxu0 }
 0x55b   :  { %v4637_v3 = vadd.f32 %v4636_v57, %v4635_v56 }
 0x55c   :  { %v4638_v17 = vpop.f32.mrf.mxu0 }
 0x55d   :  { %v4705_v58 = vpop.eup %4704  ;;  %v3985_v6 = vmul.f32 %v4637_v3, %v3947_v4 }
 0x55e   :  { %v4707_v60 = vpop.eup %4706  ;;  %v4639_v43 = vpop.f32.mrf.mxu0 }
 0x55f   :  { %v4709_v18 = vpop.eup %4708  ;;  %v4105_v21 = vadd.f32 %v4067_v52, %v3985_v6 }
 0x560   :  { %v4711_v44 = vpop.eup %4710  ;;  %v4271_v61 = vcombine.low %v4705_v58, %v4709_v18 }
 0x561   :  { %v4272_v63 = vcombine.low %v4707_v60, %v4711_v44  ;;  %v4124_v7 = vsub.f32 0.0, %v4105_v21 }
 0x562   :  { %v4279_v15 = vrot.slane %v4271_v61, %v4889_v49 }
 0x563   :  { %v4286_v0 = vrot.slane %v4272_v63, %v4889_v49  ;;  %v4161_v22 = vmul.f32 1.442695, %v4124_v7 }
 0x565   :  { %v4287_v62 = vcombine.low %v4279_v15, %v4286_v0  ;;  %4712 = vpow2.f32 %v4161_v22 }
 0x567   :  { %4312 = vst [vmem:[%s6151_s16 + $0x18] sm:$0xff] %v4287_v62 }
 0x572   :  { %v4713_v9 = vpop.eup %4712 }
 0x573   :  { %v4181_v35 = vadd.f32 1.0, %v4713_v9 }
 0x577   :  { %v3819_v53 = vpop.f32.mrf.mxu1 }
 0x578   :  { %v3983_v23 = vmul.f32 %v3939_v1, %v3819_v53 }
 0x579   :  { %v3821_v16 = vpop.f32.mrf.mxu1 }
 0x57a   :  { %v4103_v59 = vadd.f32 %v4059_v10, %v3983_v23  ;;  %v3984_v29 = vmul.f32 %v3943_v12, %v3821_v16 }
 0x57b   :  { %v3823_v13 = vpop.f32.mrf.mxu1 }
 0x57c   :  { %v4122_v47 = vsub.f32 0.0, %v4103_v59  ;;  %v4104_v8 = vadd.f32 %v4063_v24, %v3984_v29 }
 0x57d   :  { %v3824_v32 = vpop.f32.mrf.mxu1 }
 0x57e   :  { %v4157_v33 = vmul.f32 1.442695, %v4122_v47  ;;  %v4123_v38 = vsub.f32 0.0, %v4104_v8 }
 0x580   :  { %4714 = vpow2.f32 %v4157_v33  ;;  %v4159_v34 = vmul.f32 1.442695, %v4123_v38 }
 0x582   :  { %4716 = vpow2.f32 %v4159_v34 }
 0x583   :  { %4718 = vrcp.f32 %v4181_v35 }
 0x58d   :  { %v4715_v36 = vpop.eup %4714 }
 0x58e   :  { %v4179_v26 = vadd.f32 1.0, %v4715_v36 }
 0x58f   :  { %v4717_v37 = vpop.eup %4716 }
 0x590   :  { %v4180_v25 = vadd.f32 1.0, %v4717_v37  ;;  %4720 = vrcp.f32 %v4179_v26  ;;  %v4719_v39 = vpop.eup %4718 }
 0x591   :  { %v4302_v30 = vrot.slane %v4719_v39, %v4889_v49 }
 0x592   :  { %4722 = vrcp.f32 %v4180_v25 }
 0x59d   :  { %v4721_v14 = vpop.eup %4720 }
 0x59f   :  { %v4723_v40 = vpop.eup %4722 }
 0x5a0   :  { %v4288_v42 = vcombine.low %v4721_v14, %v4723_v40 }
 0x5a2   :  { %v4295_v45 = vrot.slane %v4288_v42, %v4889_v49 }
 0x5a4   :  { %v4303_v27 = vcombine.low %v4295_v45, %v4302_v30 }
 0x5a6   :  { %4318 = vst.msk [vmem:[%s6151_s16 + $0x20] sm:$0x3f] %vm4317_vm6, %v4303_v27 }

</bundles_post_ra>
